<compile_context>
chip_gen: v5e
topology: v5e:2x2
jax: 0.10.0
libtpu: 0.0.40
codegen_flags: <defaults>
</compile_context>

<pallas_src>
import functools

import jax
import jax.numpy as jnp
from jax.experimental import pallas as pl
from jax.experimental.pallas import tpu as pltpu

LANES = 128
KSIZE = 3
PAD = 1


def _round_up(x, m):
    return (x + m - 1) // m * m


# ----------------------------- Pallas kernel ------------------------------- #

def _basic_block_kernel(xs_ref, w1_ref, shift1_ref, w2_ref, shiftf_ref, *rest,
                        Ho, Wo, stride, has_proj):
    """Fused BasicBlock forward for one image.

    xs_ref    : (s*s, Hs, Ws, Cin_p)  bf16  phase-decomposed, padded input
    w1_ref    : (9, Cin_p, Cout_p)    bf16  conv1 taps, bn1 scale folded in
    shift1_ref: (1, Cout_p)           f32   bn1 shift
    w2_ref    : (9, Cout_p, Cout_p)   bf16  conv2 taps, bn2 scale folded in
    shiftf_ref: (1, Cout_p)           f32   bn2 shift (+ shortcut bn shift)
    ws_ref    : (Cin_p, Cout_p)       bf16  1x1 projection (only if has_proj)
    o_ref     : (Ho*Wo, Cout_p)       f32
    """
    if has_proj:
        ws_ref, o_ref = rest
    else:
        (o_ref,) = rest

    s = stride
    M = Ho * Wo
    cin = xs_ref.shape[-1]
    cout = o_ref.shape[-1]
    f32 = jnp.float32
    bf16 = jnp.bfloat16

    # ---- conv1 (bn1 scale folded into w1): 9 shifted-tap matmuls ---------- #
    acc1 = jnp.zeros((M, cout), f32)
    sc_in = None
    for r in range(s):
        for t in range(s):
            plane = xs_ref[r * s + t].astype(f32)            # (Hs, Ws, Cin_p)
            for di in range(r, KSIZE, s):
                for dj in range(t, KSIZE, s):
                    oi, oj = di // s, dj // s
                    a = plane[oi:oi + Ho, oj:oj + Wo, :]
                    a = a.reshape(M, cin).astype(bf16)
                    acc1 += jnp.dot(a, w1_ref[di * KSIZE + dj],
                                    preferred_element_type=f32)
            if r == PAD % s and t == PAD % s:
                # Input pixels at output resolution (shortcut path).
                o = PAD // s
                sc_in = plane[o:o + Ho, o:o + Wo, :]          # (Ho, Wo, Cin_p)

    y1 = jnp.maximum(acc1 + shift1_ref[...], 0.0)             # (M, Cout_p) f32
    y1 = y1.reshape(Ho, Wo, cout)

    # ---- conv2 (bn2 scale folded into w2): y1 stays on-chip --------------- #
    zcol = jnp.zeros((Ho, 1, cout), f32)
    zrow = jnp.zeros((1, Wo + 2, cout), f32)
    y1p = jnp.concatenate([zcol, y1, zcol], axis=1)           # (Ho, Wo+2, C)
    y1p = jnp.concatenate([zrow, y1p, zrow], axis=0)          # (Ho+2, Wo+2, C)

    acc2 = jnp.zeros((M, cout), f32)
    for di in range(KSIZE):
        for dj in range(KSIZE):
            a = y1p[di:di + Ho, dj:dj + Wo, :].reshape(M, cout).astype(bf16)
            acc2 += jnp.dot(a, w2_ref[di * KSIZE + dj],
                            preferred_element_type=f32)

    # ---- shortcut + final shift + ReLU ------------------------------------ #
    if has_proj:
        sc = jnp.dot(sc_in.reshape(M, cin).astype(bf16), ws_ref[...],
                     preferred_element_type=f32)
    else:
        sc = sc_in.reshape(M, cin)                            # Cin_p == Cout_p

    o_ref[...] = jnp.maximum(acc2 + shiftf_ref[...] + sc, 0.0)


# ------------------------------ JAX glue ----------------------------------- #

def _fold_bn(gamma, beta, mean, var, eps=1e-5):
    scale = gamma / jnp.sqrt(var + eps)
    return scale, beta - mean * scale


def _prep_conv_weight(w, scale, cin_p, cout_p):
    """(C_out, C_in, kH, kW) torch layout -> (kH*kW, Cin_p, Cout_p) bf16 with
    the BN scale folded into the output channels."""
    cout, cin, kh, kw = w.shape
    wf = (jnp.transpose(w, (2, 3, 1, 0)) * scale).astype(jnp.bfloat16)
    wp = jnp.zeros((kh, kw, cin_p, cout_p), jnp.bfloat16)
    wp = wp.at[:, :, :cin, :cout].set(wf)
    return wp.reshape(kh * kw, cin_p, cout_p)


def _pad_shift(shift, cout_p):
    return jnp.zeros((1, cout_p), jnp.float32).at[0, :shift.shape[0]].set(shift)


def _space_to_phases(x, stride, cin_p):
    """(N,H,W,C) -> (N, s*s, Hs, Ws, Cin_p) bf16.

    Zero-pads spatially (conv padding + round-up to a multiple of the stride)
    and on channels, then splits the grid into stride*stride phase planes so a
    strided 3x3 conv only needs contiguous static slices in-kernel.  Pure
    layout work, no data duplication (unlike im2col)."""
    n, h, w, c = x.shape
    s = stride
    hs = -(-(h + 2 * PAD) // s)
    ws = -(-(w + 2 * PAD) // s)
    xp = jnp.pad(x.astype(jnp.bfloat16),
                 ((0, 0), (PAD, hs * s - h - PAD), (PAD, ws * s - w - PAD),
                  (0, cin_p - c)))
    xp = xp.reshape(n, hs, s, ws, s, cin_p)
    xp = jnp.transpose(xp, (0, 2, 4, 1, 3, 5))
    return xp.reshape(n, s * s, hs, ws, cin_p)


def basic_block_forward(x_nhwc, params):
    """x_nhwc: (N, H, W, C_in) f32 -> (N, Ho, Wo, C_out) f32."""
    n, h, w, cin = x_nhwc.shape
    s = int(params["stride"])
    cout = params["w1"].shape[0]
    has_proj = bool(params["proj"])

    ho = (h + 2 * PAD - KSIZE) // s + 1
    wo = (w + 2 * PAD - KSIZE) // s + 1
    m = ho * wo
    cin_p = _round_up(cin, LANES)
    cout_p = _round_up(cout, LANES)
    # Sublane-clean in-kernel reshapes; holds for standard ResNet feature maps.
    assert wo % 8 == 0, "output width must be a multiple of 8"

    xs = _space_to_phases(x_nhwc, s, cin_p)          # (N, s*s, Hs, Ws, Cin_p)
    _, pp, hs, wsp, _ = xs.shape
    assert hs >= ho + (KSIZE - 1) // s and wsp >= wo + (KSIZE - 1) // s

    s1, b1 = _fold_bn(*params["bn1"])
    s2, b2 = _fold_bn(*params["bn2"])
    w1 = _prep_conv_weight(params["w1"], s1, cin_p, cout_p)
    w2 = _prep_conv_weight(params["w2"], s2, cout_p, cout_p)
    shift1 = _pad_shift(b1, cout_p)

    args = [xs, w1, shift1, w2]
    in_specs = [
        pl.BlockSpec((None, pp, hs, wsp, cin_p), lambda i: (i, 0, 0, 0, 0)),
        pl.BlockSpec((KSIZE * KSIZE, cin_p, cout_p), lambda i: (0, 0, 0)),
        pl.BlockSpec((1, cout_p), lambda i: (0, 0)),
        pl.BlockSpec((KSIZE * KSIZE, cout_p, cout_p), lambda i: (0, 0, 0)),
    ]
    if has_proj:
        ss, bs = _fold_bn(*params["bns"])
        ws_proj = _prep_conv_weight(params["ws"], ss, cin_p, cout_p)[0]
        args += [_pad_shift(b2 + bs, cout_p), ws_proj]
        in_specs += [pl.BlockSpec((1, cout_p), lambda i: (0, 0)),
                     pl.BlockSpec((cin_p, cout_p), lambda i: (0, 0))]
    else:
        args += [_pad_shift(b2, cout_p)]
        in_specs += [pl.BlockSpec((1, cout_p), lambda i: (0, 0))]

    kernel = functools.partial(_basic_block_kernel, Ho=ho, Wo=wo, stride=s,
                               has_proj=has_proj)
    out = pl.pallas_call(
        kernel,
        out_shape=jax.ShapeDtypeStruct((n, m, cout_p), jnp.float32),
        grid=(n,),
        in_specs=in_specs,
        out_specs=pl.BlockSpec((None, m, cout_p), lambda i: (i, 0, 0)),
        compiler_params=pltpu.CompilerParams(
            dimension_semantics=("parallel",),
            vmem_limit_bytes=32 * 1024 * 1024),
    )(*args)
    return out.reshape(n, ho, wo, cout_p)[..., :cout]


# --------------------------- reference (lax) -------------------------------- #

def basic_block_reference(x_nhwc, params):
    """Mirrors the kernel's bf16 quantization so the check is tight."""
    bf16 = jnp.bfloat16
    s = int(params["stride"])
    x = x_nhwc.astype(bf16)

    def conv(inp, w_hwio_bf16, stride, pad):
        return jax.lax.conv_general_dilated(
            inp.astype(bf16), w_hwio_bf16, (stride, stride),
            ((pad, pad), (pad, pad)),
            dimension_numbers=("NHWC", "HWIO", "NHWC"),
            preferred_element_type=jnp.float32)

    s1, b1 = _fold_bn(*params["bn1"])
    s2, b2 = _fold_bn(*params["bn2"])
    w1 = (jnp.transpose(params["w1"], (2, 3, 1, 0)) * s1).astype(bf16)
    w2 = (jnp.transpose(params["w2"], (2, 3, 1, 0)) * s2).astype(bf16)
    y = jnp.maximum(conv(x, w1, s, PAD) + b1, 0.0)
    y2 = conv(y, w2, 1, PAD) + b2
    if params["proj"]:
        ss, bs = _fold_bn(*params["bns"])
        wsq = (jnp.transpose(params["ws"], (2, 3, 1, 0)) * ss).astype(bf16)
        sc = conv(x, wsq, s, 0) + bs
    else:
        sc = x.astype(jnp.float32)
    return jnp.maximum(y2 + sc, 0.0)


# ------------------------------ params init --------------------------------- #

def init_bn(key, c):
    k0, k1, k2, k3 = jax.random.split(key, 4)
    gamma = jax.random.uniform(k0, (c,), jnp.float32, 0.5, 1.5)
    beta = jax.random.normal(k1, (c,), jnp.float32) * 0.1
    mean = jax.random.normal(k2, (c,), jnp.float32) * 0.1
    var = jax.random.uniform(k3, (c,), jnp.float32, 0.5, 1.5)
    return gamma, beta, mean, var


def init_basic_block(key, in_channels, out_channels, stride):
    ks = jax.random.split(key, 6)
    params = {
        "w1": jax.random.normal(ks[0], (out_channels, in_channels, 3, 3),
                                jnp.float32) * 0.1,
        "bn1": init_bn(ks[1], out_channels),
        "w2": jax.random.normal(ks[2], (out_channels, out_channels, 3, 3),
                                jnp.float32) * 0.1,
        "bn2": init_bn(ks[3], out_channels),
        "stride": stride,
        "proj": (stride != 1 or in_channels != out_channels),
    }
    if params["proj"]:
        params["ws"] = jax.random.normal(
            ks[4], (out_channels, in_channels, 1, 1), jnp.float32) * 0.1
        params["bns"] = init_bn(ks[5], out_channels)
    return params


# ------------------------------- main --------------------------------------- #

if __name__ == "__main__":
    key = jax.random.PRNGKey(0)
    kx, kp1, kp2 = jax.random.split(key, 3)

    # PyTorch input is NCHW (2, 4, 16, 16); the kernel uses NHWC.
    x_nchw = jax.random.normal(kx, (2, 4, 16, 16), jnp.float32)
    x_nhwc = jnp.transpose(x_nchw, (0, 2, 3, 1))

    # Config A: identity shortcut (in=out=4, stride=1).
    params_a = init_basic_block(kp1, 4, 4, stride=1)
    out_a = basic_block_forward(x_nhwc, params_a)
    jax.block_until_ready(out_a)
    ref_a = basic_block_reference(x_nhwc, params_a)
    assert out_a.shape == ref_a.shape, (out_a.shape, ref_a.shape)
    err_a = float(jnp.max(jnp.abs(out_a - ref_a)))
    assert err_a < 2e-2, f"config A max abs err {err_a}"

    # Config B: projection shortcut (in=4 -> out=8, stride=2).
    params_b = init_basic_block(kp2, 4, 8, stride=2)
    out_b = basic_block_forward(x_nhwc, params_b)
    jax.block_until_ready(out_b)
    ref_b = basic_block_reference(x_nhwc, params_b)
    assert out_b.shape == ref_b.shape, (out_b.shape, ref_b.shape)
    err_b = float(jnp.max(jnp.abs(out_b - ref_b)))
    assert err_b < 2e-2, f"config B max abs err {err_b}"

    print("KERNEL_OK")
</pallas_src>

<mosaic_0001>
module attributes {stable_mosaic.version = 11 : i64} {
  func.func @_basic_block_kernel(%arg0: i32, %arg1: memref<1x1x18x18x128xbf16, #tpu.memory_space<vmem>>, %arg2: memref<9x128x128xbf16, #tpu.memory_space<vmem>>, %arg3: memref<1x128xf32, #tpu.memory_space<vmem>>, %arg4: memref<9x128x128xbf16, #tpu.memory_space<vmem>>, %arg5: memref<1x128xf32, #tpu.memory_space<vmem>>, %arg6: memref<1x256x128xf32, #tpu.memory_space<vmem>>) attributes {dimension_semantics = [#tpu.dimension_semantics<parallel>], iteration_bounds = array<i64: 2>, scalar_prefetch = 0 : i64, scratch_operands = 0 : i64, tpu.core_type = #tpu.core_type<tc>, window_params = [{transform_indices = @transform_0, window_bounds = array<i64: 1, 1, 18, 18, 128>}, {pipeline_mode = #tpu.pipeline_mode<synchronous>, transform_indices = @transform_1, window_bounds = array<i64: 9, 128, 128>}, {pipeline_mode = #tpu.pipeline_mode<synchronous>, transform_indices = @transform_2, window_bounds = array<i64: 1, 128>}, {pipeline_mode = #tpu.pipeline_mode<synchronous>, transform_indices = @transform_3, window_bounds = array<i64: 9, 128, 128>}, {pipeline_mode = #tpu.pipeline_mode<synchronous>, transform_indices = @transform_4, window_bounds = array<i64: 1, 128>}, {transform_indices = @transform_5, window_bounds = array<i64: 1, 256, 128>}]} {
    %cst = arith.constant 0.000000e+00 : f32
    %0 = vector.broadcast %cst : f32 to vector<256x128xf32>
    %c0 = arith.constant 0 : index
    %c0_0 = arith.constant 0 : index
    %c0_1 = arith.constant 0 : index
    %c0_2 = arith.constant 0 : index
    %c0_3 = arith.constant 0 : index
    %1 = vector.load %arg1[%c0, %c0_0, %c0_1, %c0_2, %c0_3] : memref<1x1x18x18x128xbf16, #tpu.memory_space<vmem>>, vector<1x1x18x18x128xbf16>
    %2 = vector.shape_cast %1 : vector<1x1x18x18x128xbf16> to vector<18x18x128xbf16>
    %3 = arith.extf %2 : vector<18x18x128xbf16> to vector<18x18x128xf32>
    %4 = vector.extract_strided_slice %3 {offsets = [0, 0, 0], sizes = [16, 16, 128], strides = [1, 1, 1]} : vector<18x18x128xf32> to vector<16x16x128xf32>
    %5 = vector.shape_cast %4 : vector<16x16x128xf32> to vector<256x128xf32>
    %6 = arith.truncf %5 : vector<256x128xf32> to vector<256x128xbf16>
    %c0_4 = arith.constant 0 : index
    %c0_5 = arith.constant 0 : index
    %c0_6 = arith.constant 0 : index
    %7 = vector.load %arg2[%c0_4, %c0_5, %c0_6] : memref<9x128x128xbf16, #tpu.memory_space<vmem>>, vector<1x128x128xbf16>
    %8 = vector.shape_cast %7 : vector<1x128x128xbf16> to vector<128x128xbf16>
    %cst_7 = arith.constant dense<0.000000e+00> : vector<256x128xf32>
    %9 = tpu.matmul %6, %8, %cst_7 {dimension_numbers = #tpu.dot_dimension_numbers<[1], [0], [0], [1], [0, 0, 1, 1], [], []>} : vector<256x128xbf16>, vector<128x128xbf16>, vector<256x128xf32> -> vector<256x128xf32>
    %10 = arith.addf %0, %9 : vector<256x128xf32>
    %11 = vector.extract_strided_slice %3 {offsets = [0, 1, 0], sizes = [16, 16, 128], strides = [1, 1, 1]} : vector<18x18x128xf32> to vector<16x16x128xf32>
    %12 = vector.shape_cast %11 : vector<16x16x128xf32> to vector<256x128xf32>
    %13 = arith.truncf %12 : vector<256x128xf32> to vector<256x128xbf16>
    %c1 = arith.constant 1 : index
    %c0_8 = arith.constant 0 : index
    %c0_9 = arith.constant 0 : index
    %14 = vector.load %arg2[%c1, %c0_8, %c0_9] : memref<9x128x128xbf16, #tpu.memory_space<vmem>>, vector<1x128x128xbf16>
    %15 = vector.shape_cast %14 : vector<1x128x128xbf16> to vector<128x128xbf16>
    %cst_10 = arith.constant dense<0.000000e+00> : vector<256x128xf32>
    %16 = tpu.matmul %13, %15, %cst_10 {dimension_numbers = #tpu.dot_dimension_numbers<[1], [0], [0], [1], [0, 0, 1, 1], [], []>} : vector<256x128xbf16>, vector<128x128xbf16>, vector<256x128xf32> -> vector<256x128xf32>
    %17 = arith.addf %10, %16 : vector<256x128xf32>
    %18 = vector.extract_strided_slice %3 {offsets = [0, 2, 0], sizes = [16, 16, 128], strides = [1, 1, 1]} : vector<18x18x128xf32> to vector<16x16x128xf32>
    %19 = vector.shape_cast %18 : vector<16x16x128xf32> to vector<256x128xf32>
    %20 = arith.truncf %19 : vector<256x128xf32> to vector<256x128xbf16>
    %c2 = arith.constant 2 : index
    %c0_11 = arith.constant 0 : index
    %c0_12 = arith.constant 0 : index
    %21 = vector.load %arg2[%c2, %c0_11, %c0_12] : memref<9x128x128xbf16, #tpu.memory_space<vmem>>, vector<1x128x128xbf16>
    %22 = vector.shape_cast %21 : vector<1x128x128xbf16> to vector<128x128xbf16>
    %cst_13 = arith.constant dense<0.000000e+00> : vector<256x128xf32>
    %23 = tpu.matmul %20, %22, %cst_13 {dimension_numbers = #tpu.dot_dimension_numbers<[1], [0], [0], [1], [0, 0, 1, 1], [], []>} : vector<256x128xbf16>, vector<128x128xbf16>, vector<256x128xf32> -> vector<256x128xf32>
    %24 = arith.addf %17, %23 : vector<256x128xf32>
    %25 = vector.extract_strided_slice %3 {offsets = [1, 0, 0], sizes = [16, 16, 128], strides = [1, 1, 1]} : vector<18x18x128xf32> to vector<16x16x128xf32>
    %26 = vector.shape_cast %25 : vector<16x16x128xf32> to vector<256x128xf32>
    %27 = arith.truncf %26 : vector<256x128xf32> to vector<256x128xbf16>
    %c3 = arith.constant 3 : index
    %c0_14 = arith.constant 0 : index
    %c0_15 = arith.constant 0 : index
    %28 = vector.load %arg2[%c3, %c0_14, %c0_15] : memref<9x128x128xbf16, #tpu.memory_space<vmem>>, vector<1x128x128xbf16>
    %29 = vector.shape_cast %28 : vector<1x128x128xbf16> to vector<128x128xbf16>
    %cst_16 = arith.constant dense<0.000000e+00> : vector<256x128xf32>
    %30 = tpu.matmul %27, %29, %cst_16 {dimension_numbers = #tpu.dot_dimension_numbers<[1], [0], [0], [1], [0, 0, 1, 1], [], []>} : vector<256x128xbf16>, vector<128x128xbf16>, vector<256x128xf32> -> vector<256x128xf32>
    %31 = arith.addf %24, %30 : vector<256x128xf32>
    %32 = vector.extract_strided_slice %3 {offsets = [1, 1, 0], sizes = [16, 16, 128], strides = [1, 1, 1]} : vector<18x18x128xf32> to vector<16x16x128xf32>
    %33 = vector.shape_cast %32 : vector<16x16x128xf32> to vector<256x128xf32>
    %34 = arith.truncf %33 : vector<256x128xf32> to vector<256x128xbf16>
    %c4 = arith.constant 4 : index
    %c0_17 = arith.constant 0 : index
    %c0_18 = arith.constant 0 : index
    %35 = vector.load %arg2[%c4, %c0_17, %c0_18] : memref<9x128x128xbf16, #tpu.memory_space<vmem>>, vector<1x128x128xbf16>
    %36 = vector.shape_cast %35 : vector<1x128x128xbf16> to vector<128x128xbf16>
    %cst_19 = arith.constant dense<0.000000e+00> : vector<256x128xf32>
    %37 = tpu.matmul %34, %36, %cst_19 {dimension_numbers = #tpu.dot_dimension_numbers<[1], [0], [0], [1], [0, 0, 1, 1], [], []>} : vector<256x128xbf16>, vector<128x128xbf16>, vector<256x128xf32> -> vector<256x128xf32>
    %38 = arith.addf %31, %37 : vector<256x128xf32>
    %39 = vector.extract_strided_slice %3 {offsets = [1, 2, 0], sizes = [16, 16, 128], strides = [1, 1, 1]} : vector<18x18x128xf32> to vector<16x16x128xf32>
    %40 = vector.shape_cast %39 : vector<16x16x128xf32> to vector<256x128xf32>
    %41 = arith.truncf %40 : vector<256x128xf32> to vector<256x128xbf16>
    %c5 = arith.constant 5 : index
    %c0_20 = arith.constant 0 : index
    %c0_21 = arith.constant 0 : index
    %42 = vector.load %arg2[%c5, %c0_20, %c0_21] : memref<9x128x128xbf16, #tpu.memory_space<vmem>>, vector<1x128x128xbf16>
    %43 = vector.shape_cast %42 : vector<1x128x128xbf16> to vector<128x128xbf16>
    %cst_22 = arith.constant dense<0.000000e+00> : vector<256x128xf32>
    %44 = tpu.matmul %41, %43, %cst_22 {dimension_numbers = #tpu.dot_dimension_numbers<[1], [0], [0], [1], [0, 0, 1, 1], [], []>} : vector<256x128xbf16>, vector<128x128xbf16>, vector<256x128xf32> -> vector<256x128xf32>
    %45 = arith.addf %38, %44 : vector<256x128xf32>
    %46 = vector.extract_strided_slice %3 {offsets = [2, 0, 0], sizes = [16, 16, 128], strides = [1, 1, 1]} : vector<18x18x128xf32> to vector<16x16x128xf32>
    %47 = vector.shape_cast %46 : vector<16x16x128xf32> to vector<256x128xf32>
    %48 = arith.truncf %47 : vector<256x128xf32> to vector<256x128xbf16>
    %c6 = arith.constant 6 : index
    %c0_23 = arith.constant 0 : index
    %c0_24 = arith.constant 0 : index
    %49 = vector.load %arg2[%c6, %c0_23, %c0_24] : memref<9x128x128xbf16, #tpu.memory_space<vmem>>, vector<1x128x128xbf16>
    %50 = vector.shape_cast %49 : vector<1x128x128xbf16> to vector<128x128xbf16>
    %cst_25 = arith.constant dense<0.000000e+00> : vector<256x128xf32>
    %51 = tpu.matmul %48, %50, %cst_25 {dimension_numbers = #tpu.dot_dimension_numbers<[1], [0], [0], [1], [0, 0, 1, 1], [], []>} : vector<256x128xbf16>, vector<128x128xbf16>, vector<256x128xf32> -> vector<256x128xf32>
    %52 = arith.addf %45, %51 : vector<256x128xf32>
    %53 = vector.extract_strided_slice %3 {offsets = [2, 1, 0], sizes = [16, 16, 128], strides = [1, 1, 1]} : vector<18x18x128xf32> to vector<16x16x128xf32>
    %54 = vector.shape_cast %53 : vector<16x16x128xf32> to vector<256x128xf32>
    %55 = arith.truncf %54 : vector<256x128xf32> to vector<256x128xbf16>
    %c7 = arith.constant 7 : index
    %c0_26 = arith.constant 0 : index
    %c0_27 = arith.constant 0 : index
    %56 = vector.load %arg2[%c7, %c0_26, %c0_27] : memref<9x128x128xbf16, #tpu.memory_space<vmem>>, vector<1x128x128xbf16>
    %57 = vector.shape_cast %56 : vector<1x128x128xbf16> to vector<128x128xbf16>
    %cst_28 = arith.constant dense<0.000000e+00> : vector<256x128xf32>
    %58 = tpu.matmul %55, %57, %cst_28 {dimension_numbers = #tpu.dot_dimension_numbers<[1], [0], [0], [1], [0, 0, 1, 1], [], []>} : vector<256x128xbf16>, vector<128x128xbf16>, vector<256x128xf32> -> vector<256x128xf32>
    %59 = arith.addf %52, %58 : vector<256x128xf32>
    %60 = vector.extract_strided_slice %3 {offsets = [2, 2, 0], sizes = [16, 16, 128], strides = [1, 1, 1]} : vector<18x18x128xf32> to vector<16x16x128xf32>
    %61 = vector.shape_cast %60 : vector<16x16x128xf32> to vector<256x128xf32>
    %62 = arith.truncf %61 : vector<256x128xf32> to vector<256x128xbf16>
    %c8 = arith.constant 8 : index
    %c0_29 = arith.constant 0 : index
    %c0_30 = arith.constant 0 : index
    %63 = vector.load %arg2[%c8, %c0_29, %c0_30] : memref<9x128x128xbf16, #tpu.memory_space<vmem>>, vector<1x128x128xbf16>
    %64 = vector.shape_cast %63 : vector<1x128x128xbf16> to vector<128x128xbf16>
    %cst_31 = arith.constant dense<0.000000e+00> : vector<256x128xf32>
    %65 = tpu.matmul %62, %64, %cst_31 {dimension_numbers = #tpu.dot_dimension_numbers<[1], [0], [0], [1], [0, 0, 1, 1], [], []>} : vector<256x128xbf16>, vector<128x128xbf16>, vector<256x128xf32> -> vector<256x128xf32>
    %66 = arith.addf %59, %65 : vector<256x128xf32>
    %67 = vector.extract_strided_slice %3 {offsets = [1, 1, 0], sizes = [16, 16, 128], strides = [1, 1, 1]} : vector<18x18x128xf32> to vector<16x16x128xf32>
    %c0_32 = arith.constant 0 : index
    %c0_33 = arith.constant 0 : index
    %68 = vector.load %arg3[%c0_32, %c0_33] : memref<1x128xf32, #tpu.memory_space<vmem>>, vector<1x128xf32>
    %69 = vector.broadcast %68 : vector<1x128xf32> to vector<256x128xf32>
    %70 = arith.addf %66, %69 : vector<256x128xf32>
    %cst_34 = arith.constant 0.000000e+00 : f32
    %71 = vector.broadcast %cst_34 : f32 to vector<256x128xf32>
    %72 = arith.maximumf %70, %71 : vector<256x128xf32>
    %73 = vector.shape_cast %72 : vector<256x128xf32> to vector<16x16x128xf32>
    %cst_35 = arith.constant 0.000000e+00 : f32
    %74 = vector.broadcast %cst_35 : f32 to vector<16x1x128xf32>
    %cst_36 = arith.constant 0.000000e+00 : f32
    %75 = vector.broadcast %cst_36 : f32 to vector<1x18x128xf32>
    %76 = tpu.concatenate %74, %73, %74 in 1 : vector<16x1x128xf32>, vector<16x16x128xf32>, vector<16x1x128xf32> -> vector<16x18x128xf32>
    %77 = tpu.concatenate %75, %76, %75 in 0 : vector<1x18x128xf32>, vector<16x18x128xf32>, vector<1x18x128xf32> -> vector<18x18x128xf32>
    %cst_37 = arith.constant 0.000000e+00 : f32
    %78 = vector.broadcast %cst_37 : f32 to vector<256x128xf32>
    %79 = vector.extract_strided_slice %77 {offsets = [0, 0, 0], sizes = [16, 16, 128], strides = [1, 1, 1]} : vector<18x18x128xf32> to vector<16x16x128xf32>
    %80 = vector.shape_cast %79 : vector<16x16x128xf32> to vector<256x128xf32>
    %81 = arith.truncf %80 : vector<256x128xf32> to vector<256x128xbf16>
    %c0_38 = arith.constant 0 : index
    %c0_39 = arith.constant 0 : index
    %c0_40 = arith.constant 0 : index
    %82 = vector.load %arg4[%c0_38, %c0_39, %c0_40] : memref<9x128x128xbf16, #tpu.memory_space<vmem>>, vector<1x128x128xbf16>
    %83 = vector.shape_cast %82 : vector<1x128x128xbf16> to vector<128x128xbf16>
    %cst_41 = arith.constant dense<0.000000e+00> : vector<256x128xf32>
    %84 = tpu.matmul %81, %83, %cst_41 {dimension_numbers = #tpu.dot_dimension_numbers<[1], [0], [0], [1], [0, 0, 1, 1], [], []>} : vector<256x128xbf16>, vector<128x128xbf16>, vector<256x128xf32> -> vector<256x128xf32>
    %85 = arith.addf %78, %84 : vector<256x128xf32>
    %86 = vector.extract_strided_slice %77 {offsets = [0, 1, 0], sizes = [16, 16, 128], strides = [1, 1, 1]} : vector<18x18x128xf32> to vector<16x16x128xf32>
    %87 = vector.shape_cast %86 : vector<16x16x128xf32> to vector<256x128xf32>
    %88 = arith.truncf %87 : vector<256x128xf32> to vector<256x128xbf16>
    %c1_42 = arith.constant 1 : index
    %c0_43 = arith.constant 0 : index
    %c0_44 = arith.constant 0 : index
    %89 = vector.load %arg4[%c1_42, %c0_43, %c0_44] : memref<9x128x128xbf16, #tpu.memory_space<vmem>>, vector<1x128x128xbf16>
    %90 = vector.shape_cast %89 : vector<1x128x128xbf16> to vector<128x128xbf16>
    %cst_45 = arith.constant dense<0.000000e+00> : vector<256x128xf32>
    %91 = tpu.matmul %88, %90, %cst_45 {dimension_numbers = #tpu.dot_dimension_numbers<[1], [0], [0], [1], [0, 0, 1, 1], [], []>} : vector<256x128xbf16>, vector<128x128xbf16>, vector<256x128xf32> -> vector<256x128xf32>
    %92 = arith.addf %85, %91 : vector<256x128xf32>
    %93 = vector.extract_strided_slice %77 {offsets = [0, 2, 0], sizes = [16, 16, 128], strides = [1, 1, 1]} : vector<18x18x128xf32> to vector<16x16x128xf32>
    %94 = vector.shape_cast %93 : vector<16x16x128xf32> to vector<256x128xf32>
    %95 = arith.truncf %94 : vector<256x128xf32> to vector<256x128xbf16>
    %c2_46 = arith.constant 2 : index
    %c0_47 = arith.constant 0 : index
    %c0_48 = arith.constant 0 : index
    %96 = vector.load %arg4[%c2_46, %c0_47, %c0_48] : memref<9x128x128xbf16, #tpu.memory_space<vmem>>, vector<1x128x128xbf16>
    %97 = vector.shape_cast %96 : vector<1x128x128xbf16> to vector<128x128xbf16>
    %cst_49 = arith.constant dense<0.000000e+00> : vector<256x128xf32>
    %98 = tpu.matmul %95, %97, %cst_49 {dimension_numbers = #tpu.dot_dimension_numbers<[1], [0], [0], [1], [0, 0, 1, 1], [], []>} : vector<256x128xbf16>, vector<128x128xbf16>, vector<256x128xf32> -> vector<256x128xf32>
    %99 = arith.addf %92, %98 : vector<256x128xf32>
    %100 = vector.extract_strided_slice %77 {offsets = [1, 0, 0], sizes = [16, 16, 128], strides = [1, 1, 1]} : vector<18x18x128xf32> to vector<16x16x128xf32>
    %101 = vector.shape_cast %100 : vector<16x16x128xf32> to vector<256x128xf32>
    %102 = arith.truncf %101 : vector<256x128xf32> to vector<256x128xbf16>
    %c3_50 = arith.constant 3 : index
    %c0_51 = arith.constant 0 : index
    %c0_52 = arith.constant 0 : index
    %103 = vector.load %arg4[%c3_50, %c0_51, %c0_52] : memref<9x128x128xbf16, #tpu.memory_space<vmem>>, vector<1x128x128xbf16>
    %104 = vector.shape_cast %103 : vector<1x128x128xbf16> to vector<128x128xbf16>
    %cst_53 = arith.constant dense<0.000000e+00> : vector<256x128xf32>
    %105 = tpu.matmul %102, %104, %cst_53 {dimension_numbers = #tpu.dot_dimension_numbers<[1], [0], [0], [1], [0, 0, 1, 1], [], []>} : vector<256x128xbf16>, vector<128x128xbf16>, vector<256x128xf32> -> vector<256x128xf32>
    %106 = arith.addf %99, %105 : vector<256x128xf32>
    %107 = vector.extract_strided_slice %77 {offsets = [1, 1, 0], sizes = [16, 16, 128], strides = [1, 1, 1]} : vector<18x18x128xf32> to vector<16x16x128xf32>
    %108 = vector.shape_cast %107 : vector<16x16x128xf32> to vector<256x128xf32>
    %109 = arith.truncf %108 : vector<256x128xf32> to vector<256x128xbf16>
    %c4_54 = arith.constant 4 : index
    %c0_55 = arith.constant 0 : index
    %c0_56 = arith.constant 0 : index
    %110 = vector.load %arg4[%c4_54, %c0_55, %c0_56] : memref<9x128x128xbf16, #tpu.memory_space<vmem>>, vector<1x128x128xbf16>
    %111 = vector.shape_cast %110 : vector<1x128x128xbf16> to vector<128x128xbf16>
    %cst_57 = arith.constant dense<0.000000e+00> : vector<256x128xf32>
    %112 = tpu.matmul %109, %111, %cst_57 {dimension_numbers = #tpu.dot_dimension_numbers<[1], [0], [0], [1], [0, 0, 1, 1], [], []>} : vector<256x128xbf16>, vector<128x128xbf16>, vector<256x128xf32> -> vector<256x128xf32>
    %113 = arith.addf %106, %112 : vector<256x128xf32>
    %114 = vector.extract_strided_slice %77 {offsets = [1, 2, 0], sizes = [16, 16, 128], strides = [1, 1, 1]} : vector<18x18x128xf32> to vector<16x16x128xf32>
    %115 = vector.shape_cast %114 : vector<16x16x128xf32> to vector<256x128xf32>
    %116 = arith.truncf %115 : vector<256x128xf32> to vector<256x128xbf16>
    %c5_58 = arith.constant 5 : index
    %c0_59 = arith.constant 0 : index
    %c0_60 = arith.constant 0 : index
    %117 = vector.load %arg4[%c5_58, %c0_59, %c0_60] : memref<9x128x128xbf16, #tpu.memory_space<vmem>>, vector<1x128x128xbf16>
    %118 = vector.shape_cast %117 : vector<1x128x128xbf16> to vector<128x128xbf16>
    %cst_61 = arith.constant dense<0.000000e+00> : vector<256x128xf32>
    %119 = tpu.matmul %116, %118, %cst_61 {dimension_numbers = #tpu.dot_dimension_numbers<[1], [0], [0], [1], [0, 0, 1, 1], [], []>} : vector<256x128xbf16>, vector<128x128xbf16>, vector<256x128xf32> -> vector<256x128xf32>
    %120 = arith.addf %113, %119 : vector<256x128xf32>
    %121 = vector.extract_strided_slice %77 {offsets = [2, 0, 0], sizes = [16, 16, 128], strides = [1, 1, 1]} : vector<18x18x128xf32> to vector<16x16x128xf32>
    %122 = vector.shape_cast %121 : vector<16x16x128xf32> to vector<256x128xf32>
    %123 = arith.truncf %122 : vector<256x128xf32> to vector<256x128xbf16>
    %c6_62 = arith.constant 6 : index
    %c0_63 = arith.constant 0 : index
    %c0_64 = arith.constant 0 : index
    %124 = vector.load %arg4[%c6_62, %c0_63, %c0_64] : memref<9x128x128xbf16, #tpu.memory_space<vmem>>, vector<1x128x128xbf16>
    %125 = vector.shape_cast %124 : vector<1x128x128xbf16> to vector<128x128xbf16>
    %cst_65 = arith.constant dense<0.000000e+00> : vector<256x128xf32>
    %126 = tpu.matmul %123, %125, %cst_65 {dimension_numbers = #tpu.dot_dimension_numbers<[1], [0], [0], [1], [0, 0, 1, 1], [], []>} : vector<256x128xbf16>, vector<128x128xbf16>, vector<256x128xf32> -> vector<256x128xf32>
    %127 = arith.addf %120, %126 : vector<256x128xf32>
    %128 = vector.extract_strided_slice %77 {offsets = [2, 1, 0], sizes = [16, 16, 128], strides = [1, 1, 1]} : vector<18x18x128xf32> to vector<16x16x128xf32>
    %129 = vector.shape_cast %128 : vector<16x16x128xf32> to vector<256x128xf32>
    %130 = arith.truncf %129 : vector<256x128xf32> to vector<256x128xbf16>
    %c7_66 = arith.constant 7 : index
    %c0_67 = arith.constant 0 : index
    %c0_68 = arith.constant 0 : index
    %131 = vector.load %arg4[%c7_66, %c0_67, %c0_68] : memref<9x128x128xbf16, #tpu.memory_space<vmem>>, vector<1x128x128xbf16>
    %132 = vector.shape_cast %131 : vector<1x128x128xbf16> to vector<128x128xbf16>
    %cst_69 = arith.constant dense<0.000000e+00> : vector<256x128xf32>
    %133 = tpu.matmul %130, %132, %cst_69 {dimension_numbers = #tpu.dot_dimension_numbers<[1], [0], [0], [1], [0, 0, 1, 1], [], []>} : vector<256x128xbf16>, vector<128x128xbf16>, vector<256x128xf32> -> vector<256x128xf32>
    %134 = arith.addf %127, %133 : vector<256x128xf32>
    %135 = vector.extract_strided_slice %77 {offsets = [2, 2, 0], sizes = [16, 16, 128], strides = [1, 1, 1]} : vector<18x18x128xf32> to vector<16x16x128xf32>
    %136 = vector.shape_cast %135 : vector<16x16x128xf32> to vector<256x128xf32>
    %137 = arith.truncf %136 : vector<256x128xf32> to vector<256x128xbf16>
    %c8_70 = arith.constant 8 : index
    %c0_71 = arith.constant 0 : index
    %c0_72 = arith.constant 0 : index
    %138 = vector.load %arg4[%c8_70, %c0_71, %c0_72] : memref<9x128x128xbf16, #tpu.memory_space<vmem>>, vector<1x128x128xbf16>
    %139 = vector.shape_cast %138 : vector<1x128x128xbf16> to vector<128x128xbf16>
    %cst_73 = arith.constant dense<0.000000e+00> : vector<256x128xf32>
    %140 = tpu.matmul %137, %139, %cst_73 {dimension_numbers = #tpu.dot_dimension_numbers<[1], [0], [0], [1], [0, 0, 1, 1], [], []>} : vector<256x128xbf16>, vector<128x128xbf16>, vector<256x128xf32> -> vector<256x128xf32>
    %141 = arith.addf %134, %140 : vector<256x128xf32>
    %142 = vector.shape_cast %67 : vector<16x16x128xf32> to vector<256x128xf32>
    %c0_74 = arith.constant 0 : index
    %c0_75 = arith.constant 0 : index
    %143 = vector.load %arg5[%c0_74, %c0_75] : memref<1x128xf32, #tpu.memory_space<vmem>>, vector<1x128xf32>
    %144 = vector.broadcast %143 : vector<1x128xf32> to vector<256x128xf32>
    %145 = arith.addf %141, %144 : vector<256x128xf32>
    %146 = arith.addf %145, %142 : vector<256x128xf32>
    %cst_76 = arith.constant 0.000000e+00 : f32
    %147 = vector.broadcast %cst_76 : f32 to vector<256x128xf32>
    %148 = arith.maximumf %146, %147 : vector<256x128xf32>
    %c0_77 = arith.constant 0 : index
    %c0_78 = arith.constant 0 : index
    %c0_79 = arith.constant 0 : index
    %149 = vector.load %arg6[%c0_77, %c0_78, %c0_79] : memref<1x256x128xf32, #tpu.memory_space<vmem>>, vector<1x256x128xf32>
    %150 = vector.shape_cast %149 : vector<1x256x128xf32> to vector<256x128xf32>
    %151 = vector.shape_cast %148 : vector<256x128xf32> to vector<1x256x128xf32>
    tpu.vector_store %arg6[%c0_77, %c0_78, %c0_79], %151 {strides = array<i32>} : memref<1x256x128xf32, #tpu.memory_space<vmem>>, vector<1x256x128xf32>,
    return
  }
  func.func @transform_0(%arg0: i32) -> (i32, i32, i32, i32, i32) {
    %c0_i32 = arith.constant 0 : i32
    %c0_i32_0 = arith.constant 0 : i32
    %c0_i32_1 = arith.constant 0 : i32
    %c0_i32_2 = arith.constant 0 : i32
    %c0_i32_3 = arith.constant 0 : i32
    return %arg0, %c0_i32, %c0_i32_0, %c0_i32_1, %c0_i32_2 : i32, i32, i32, i32, i32
  }
  func.func @transform_1(%arg0: i32) -> (i32, i32, i32) {
    %c0_i32 = arith.constant 0 : i32
    %c0_i32_0 = arith.constant 0 : i32
    %c0_i32_1 = arith.constant 0 : i32
    %c0_i32_2 = arith.constant 0 : i32
    return %c0_i32, %c0_i32_0, %c0_i32_1 : i32, i32, i32
  }
  func.func @transform_2(%arg0: i32) -> (i32, i32) {
    %c0_i32 = arith.constant 0 : i32
    %c0_i32_0 = arith.constant 0 : i32
    %c0_i32_1 = arith.constant 0 : i32
    return %c0_i32, %c0_i32_0 : i32, i32
  }
  func.func @transform_3(%arg0: i32) -> (i32, i32, i32) {
    %c0_i32 = arith.constant 0 : i32
    %c0_i32_0 = arith.constant 0 : i32
    %c0_i32_1 = arith.constant 0 : i32
    %c0_i32_2 = arith.constant 0 : i32
    return %c0_i32, %c0_i32_0, %c0_i32_1 : i32, i32, i32
  }
  func.func @transform_4(%arg0: i32) -> (i32, i32) {
    %c0_i32 = arith.constant 0 : i32
    %c0_i32_0 = arith.constant 0 : i32
    %c0_i32_1 = arith.constant 0 : i32
    return %c0_i32, %c0_i32_0 : i32, i32
  }
  func.func @transform_5(%arg0: i32) -> (i32, i32, i32) {
    %c0_i32 = arith.constant 0 : i32
    %c0_i32_0 = arith.constant 0 : i32
    %c0_i32_1 = arith.constant 0 : i32
    return %arg0, %c0_i32, %c0_i32_0 : i32, i32, i32
  }
}

</mosaic_0001>

<bundles_post_ra>
// kernel: tpu_custom_call.1
= control target key start
LH: loop header
LB: loop body
LE: loop exit
PB: predicated region body
PF: predicated region fallthrough
CT: control target
= control target key end

     0   :  { %10 = vsyncpa [#allocation3], 0  ;;  %s8183_s0 = inlined_call_operand.vmem [shape: bf16[2,1,18,18,128], index: 0, kind: input, shape index: {}]   ;;  %s8184_s1 = inlined_call_operand.vmem [shape: bf16[9,128,128], index: 1, kind: input, shape index: {}]   ;;  %s8185_s2 = inlined_call_operand.vmem [shape: f32[1,128], index: 2, kind: input, shape index: {}]   ;;  %s8186_s3 = inlined_call_operand.hbm [shape: bf16[9,128,128], index: 3, kind: input, shape index: {}]   ;;  %s8187_s4 = inlined_call_operand.vmem [shape: f32[1,128], index: 4, kind: input, shape index: {}]   ;;  %s8188_s5 = inlined_call_operand.hbm [shape: f32[2,256,128], index: 5, kind: output, shape index: {}]  }
   0x1   :  { %11 = vsyncpa [#allocation4], 0 }
   0x2   :  { %13 = vsyncpa [#allocation4 + $0x1], 0  ;;  %s6003_s18 = smov 0   ;;  %s6005_s19 = smov 0  }
   0x3   :  { %s6007_s20 = smov 0   ;;  %s6009_s21 = smov 0  }
   0x4 LB: > { %s6024_s22 = sadd.s32 4294967295, %s5963_s21   ;;  %s4693_s23 = sadd.s32 4294967294, %s5963_s21   ;;  %s5963_s21 = sphi %s6009_s21, %s8609_s21   ;;  %s5959_s20 = sphi %s6007_s20, %s8608_s20   ;;  %s5955_s19 = sphi %s6005_s19, %s8607_s19   ;;  %s5951_s18 = sphi %s6003_s18, %s8606_s18  }
   0x5   : > { %s6028_s24 = sadd.s32 1, %s5963_s21   ;;  %s136_s25 = sadd.s32 1, %s5959_s20 }
   0x6   : > { %s133_s26 = ssub.s32 %s5963_s21, %s6028_s24  ;;  %p146_p0 = scmp.ne.s32.totalorder %s5959_s20, %s5955_s19 }
   0x7   : > { %p134_p1 = scmp.eq.s32.totalorder %s133_s26, 0  ;;  %p147_p2 = scmp.eq.s32.totalorder %s6024_s22, 1 }
   0x8   : > { %p152_p3 = scmp.ne.s32.totalorder %s5955_s19, %s5951_s18  ;;  %p153_p4 = scmp.eq.s32.totalorder %s4693_s23, 1 }
   0x9   : > { %s6039_s27 = scalar_select %p134_p1, %s5959_s20, %s136_s25  }
   0xa   : > { %p6041_p5 = por %p147_p2, %p146_p0  ;;  %p6045_p6 = por %p153_p4, %p152_p3 }
   0xb   : > { %p4694_p7 = scmp.ge.s32.totalorder %s5963_s21, 1  ;;  %p160_p8 = scmp.lt.s32.totalorder %s5963_s21, 3 }
   0xc   : > { %p5814_p9 = scmp.eq.s32.totalorder %s6024_s22, 0  ;;  %s177_s7 = sshll.u32 %s8186_s3, 4  ;;  %s178_s7 = int_to_ptr.hbm [resolvable:$true] %s177_s7 }
   0xd   : > { %p161_p10 = pnand %p4694_p7, %p160_p8  ;;  %s5965_s8 = smov [#allocation2]  }
   0xe   : > { %s179_s9 = sshll.u32 %s5965_s8, 4  ;;  %s5966_s10 = smov 64   ;;  %s180_s9 = int_to_ptr.vmem [resolvable:$true] %s179_s9 }
   0xf   : > { %p5806_p11 = pneg %p161_p10  ;;  %s5967_s11 = smov 4  }
  0x10   : > { %206 = sbr.rel (%p161_p10) target bundleno = 1478 (0x5c6), region = 40 }
  0x11   : > { %p5807_p12 = pnand %p5814_p9, %p5806_p11 }
  0x13   : > { %5809 = dma.hbm_to_vmem [thread:$0]  (!%p5807_p12), %s178_s7, 9216, %s180_s9, [#allocation3], %s5966_s10, %s5966_s10, %s5967_s11  }
  0x15   : > { %5942 = dma.done.wait (%p5814_p9), [#allocation3], 9216  }
  0x16   : > { %5944 = vsyncadd (%p5814_p9), [#allocation3], 4294958080  ;;  %p235_p13 = scmp.lt.s32.totalorder %s6024_s22, 1  ;;  %v5609_v0 = vld [vmem:[%s8184_s1 + $0x78] sm:$0xff]  ;;  %v5608_v2 = vld [vmem:[%s8184_s1 + $0x70] sm:$0xff]  ;;  %vm428_vm0 = vcmask 1046528  }
  0x17   : > { %v5601_v1 = vld [vmem:[%s8184_s1 + $0x38] sm:$0xff]  ;;  %622 = vmatpush.bf16.msra.mxu0 %v5609_v0  ;;  %5783 = vmatpush.bf16.msra.mxu2 %v5609_v0  ;;  %v5600_v3 = vld [vmem:[%s8184_s1 + $0x30] sm:$0xff]  ;;  %v5607_v4 = vld [vmem:[%s8184_s1 + $0x68] sm:$0xff]  ;;  %vm848_vm1 = vcmask 1045504   ;;  %vm2419_vm2 = vcmask 1040384   ;;  %vm5969_vm4 = vmmov 1  }
  0x18   : > { %5791 = vmatpush.bf16.msra.mxu3 %v5601_v1  ;;  %759 = vmatpush.bf16.msra.mxu1 %v5601_v1  ;;  %s236_s26 = scalar_select %p235_p13, %s6024_s22, 1  ;;  %v5599_v5 = vld [vmem:[%s8184_s1 + $0x28] sm:$0xff]  ;;  %v5606_v6 = vld [vmem:[%s8184_s1 + $0x60] sm:$0xff]  ;;  %v5605_v8 = vld [vmem:[%s8184_s1 + $0x58] sm:$0xff] }
  0x19   : > { %v5598_v7 = vld [vmem:[%s8184_s1 + $0x20] sm:$0xff]  ;;  %v5597_v9 = vld [vmem:[%s8184_s1 + $0x18] sm:$0xff]  ;;  %v5604_v16 = vld [vmem:[%s8184_s1 + $0x50] sm:$0xff]  ;;  %s232_s14 = sand.u32 1, %s5955_s19   ;;  %s5738_s23 = sshll.u32 %s6024_s22, 8 }
  0x1a   : > { %s5799_s9 = smul.u32 216, %s236_s26  ;;  %v5596_v21 = vld [vmem:[%s8184_s1 + $0x10] sm:$0xff]  ;;  %v5603_v24 = vld [vmem:[%s8184_s1 + $0x48] sm:$0xff]  ;;  %v5602_v31 = vld [vmem:[%s8184_s1 + $0x40] sm:$0xff]  ;;  %s4699_s15 = sshll.u32 %s232_s14, 8 }
  0x1b   : > { %623 = vmatpush.bf16.msra.mxu0 %v5608_v2  ;;  %5784 = vmatpush.bf16.msra.mxu2 %v5608_v2  ;;  %v5595_v29 = vld [vmem:[%s8184_s1 + $0x8] sm:$0xff]  ;;  %v5594_v35 = vld [vmem:[%s8184_s1] sm:$0xff]  ;;  %v5617_v36 = vld [vmem:[%s8184_s1 + $0xb8] sm:$0xff]  ;;  %s8015_s17 = scalar_lea.vmem [#allocation5], %s4699_s15  ;;  %s4615_s30 = scalar_lea.hbm %s8188_s5, %s5738_s23 }
  0x1c   : > { %5792 = vmatpush.bf16.msra.mxu3 %v5600_v3  ;;  %760 = vmatpush.bf16.msra.mxu1 %v5600_v3  ;;  %s6090_s16 = scalar_lea.vmem %s8183_s0, %s5799_s9  ;;  %v5625_v37 = vld [vmem:[%s8184_s1 + $0xf8] sm:$0xff]  ;;  %v5616_v45 = vld [vmem:[%s8184_s1 + $0xb0] sm:$0xff]  ;;  %v5615_v54 = vld [vmem:[%s8184_s1 + $0xa8] sm:$0xff]  ;;  %s4616_s6 = sshll.u32 %s8015_s17, 4  ;;  %s4617_s6 = int_to_ptr.vmem [resolvable:$true] %s4616_s6 }
  0x1d   : > { %v6099_v10 = vld [vmem:[%s6090_s16] sm:$0xff]   ;;  %v6102_v11 = vld [vmem:[%s6090_s16 + $0x8] sm:$0x1]  ;;  %v5633_v40 = vld [vmem:[%s8184_s1 + $0x138] sm:$0xff]  ;;  %s4618_s7 = sshll.u32 %s4615_s30, 4  ;;  %s4604_s22 = scalar_lea.sflag [#allocation4], %s232_s14  ;;  %s4619_s7 = int_to_ptr.hbm [resolvable:$true] %s4618_s7 }
  0x1e   : > { %v6105_v12 = vld [vmem:[%s6090_s16 + $0x60] sm:$0xff]   ;;  %v6108_v13 = vld [vmem:[%s6090_s16 + $0x68] sm:$0x1]  ;;  %v8218_v14 = vunpack.c.l.bf16 %v6099_v10  ;;  %v8217_v15 = vunpack.c.h.bf16 %v6099_v10  ;;  %v8216_v17 = vunpack.c.l.bf16 %v6102_v11  ;;  %v6168_v41 = vld [vmem:[%s6090_s16 + $0xc] sm:$0xff]   ;;  %s5911_s8 = sshra.s32 %s4619_s7, 4  ;;  %s5917_s11 = scalar_lea.hbm %s8188_s5, 512  ;;  %s5912_s8 = int_to_ptr.hbm [resolvable:$true] %s5911_s8 }
  0x1f   : > { %624 = vmatpush.bf16.msra.mxu0 %v5607_v4  ;;  %5785 = vmatpush.bf16.msra.mxu2 %v5607_v4  ;;  %v8200_v18 = vunpack.c.l.bf16 %v6105_v12  ;;  %v8199_v19 = vunpack.c.h.bf16 %v6105_v12  ;;  %v8198_v20 = vunpack.c.l.bf16 %v6108_v13  ;;  %v6171_v42 = vld [vmem:[%s6090_s16 + $0x14] sm:$0x1]  ;;  %v6174_v43 = vld [vmem:[%s6090_s16 + $0x6c] sm:$0xff]   ;;  %v8215_v47 = vunpack.c.l.bf16 %v6168_v41  ;;  %vm7317_vm3 = vmneg %vm2419_vm2  ;;  %s5913_s9 = scalar_lea.hbm %s5912_s8, 256  ;;  %p5918_p3 = scmp.lt.s32.totalorder %s5912_s8, %s8188_s5 }
  0x20   : > { %5793 = vmatpush.bf16.msra.mxu3 %v5599_v5  ;;  %761 = vmatpush.bf16.msra.mxu1 %v5599_v5  ;;  %v429_v22 = vrot.slane %v8218_v14, 1  ;;  %v430_v23 = vrot.slane %v8217_v15, 1  ;;  %v432_v25 = vrot.slane %v8216_v17, 1  ;;  %8326 = vst [vmem:[#allocation11_spill] sm:$0xff] %v6174_v43  ;;  %v6177_v44 = vld [vmem:[%s6090_s16 + $0x74] sm:$0x1]  ;;  %v8214_v48 = vunpack.c.h.bf16 %v6168_v41  ;;  %vm7331_vm5 = vmpackc.low %vm5969_vm4, %vm7317_vm3  ;;  %p5914_p0 = scmp.ne.s32.totalorder %s5912_s8, %s5913_s9  ;;  %p5919_p4 = scmp.lt.s32.totalorder %s5917_s11, %s5913_s9 }
  0x21   : > { %v469_v26 = vrot.slane %v8200_v18, 1  ;;  %v470_v27 = vrot.slane %v8199_v19, 1  ;;  %v472_v28 = vrot.slane %v8198_v20, 1  ;;  %v5624_v46 = vld [vmem:[%s8184_s1 + $0xf0] sm:$0xff]  ;;  %v8213_v49 = vunpack.c.l.bf16 %v6171_v42  ;;  %v5623_v55 = vld [vmem:[%s8184_s1 + $0xe8] sm:$0xff]  ;;  %v6239_v5 = vld [vmem:[%s6090_s16 + $0x18] sm:$0xff]  }
  0x22   : > { %v431_v30 = vsel %vm428_vm0, %v429_v22, %v430_v23  ;;  %v433_v32 = vsel %vm428_vm0, %v430_v23, %v432_v25  ;;  %v8197_v50 = vunpack.c.l.bf16 %v6174_v43  ;;  %v8196_v51 = vunpack.c.h.bf16 %v6174_v43  ;;  %v5632_v53 = vld [vmem:[%s8184_s1 + $0x130] sm:$0xff]  ;;  %v5631_v62 = vld [vmem:[%s8184_s1 + $0x128] sm:$0xff]  ;;  %v5614_v25 = vld [vmem:[%s8184_s1 + $0xa0] sm:$0xff]  ;;  %p5915_p1 = pnand %p5914_p0, %p6041_p5  ;;  %p5920_p7 = por %p5919_p4, %p5918_p3 }
  0x23   : > { %625 = vmatpush.bf16.msra.mxu0 %v5606_v6  ;;  %5786 = vmatpush.bf16.msra.mxu2 %v5606_v6  ;;  %v6146_v33 = vsel %vm428_vm0, %v469_v26, %v470_v27  ;;  %v6149_v34 = vsel %vm428_vm0, %v470_v27, %v472_v28  ;;  %v541_v38 = vpack.c.bf16 %v433_v32, %v431_v30  ;;  %v8195_v52 = vunpack.c.l.bf16 %v6177_v44  ;;  %v6242_v6 = vld [vmem:[%s6090_s16 + $0x20] sm:$0x1]  ;;  %v5628_v20 = vld [vmem:[%s8184_s1 + $0x110] sm:$0xff] }
  0x24   : > { %5794 = vmatpush.bf16.msra.mxu3 %v5598_v7  ;;  %762 = vmatpush.bf16.msra.mxu1 %v5598_v7  ;;  %8323 = vst [vmem:[#allocation8_spill] sm:$0xff] %v6146_v33  ;;  %v6162_v39 = vpack.c.bf16 %v6149_v34, %v6146_v33  ;;  %v434_v56 = vrot.slane %v8215_v47, 1  ;;  %v435_v57 = vrot.slane %v8214_v48, 1  ;;  %v437_v58 = vrot.slane %v8213_v49, 1  ;;  %v6245_v7 = vld [vmem:[%s6090_s16 + $0x78] sm:$0xff]   ;;  %v5622_v26 = vld [vmem:[%s8184_s1 + $0xe0] sm:$0xff]  ;;  %p5916_p2 = pneg %p5915_p1 }
  0x25   : > { %8324 = vst [vmem:[#allocation9_spill] sm:$0xff] %v6149_v34  ;;  %v474_v59 = vrot.slane %v8197_v50, 1  ;;  %v475_v60 = vrot.slane %v8196_v51, 1  ;;  %v477_v61 = vrot.slane %v8195_v52, 1  ;;  %v8194_v22 = vunpack.c.l.bf16 %v6245_v7  ;;  %v5630_v27 = vld [vmem:[%s8184_s1 + $0x120] sm:$0xff]  ;;  %v5612_v51 = vld [vmem:[%s8184_s1 + $0x90] sm:$0xff] }
  0x26   : > { %8325 = vst [vmem:[#allocation10_spill] sm:$0xff] %v6162_v39  ;;  %v6219_v63 = vsel %vm428_vm0, %v434_v56, %v435_v57  ;;  %v6222_v0 = vsel %vm428_vm0, %v435_v57, %v437_v58  ;;  %v8193_v23 = vunpack.c.h.bf16 %v6245_v7  ;;  %v6311_v56 = vld [vmem:[%s6090_s16 + $0x8c] sm:$0x1]  ;;  %v5620_v50 = vld [vmem:[%s8184_s1 + $0xd0] sm:$0xff]  ;;  %v5641_v47 = vld [vmem:[%s8184_s1 + $0x178] sm:$0xff]  ;;  %p5921_p8 = pnand %p5920_p7, %p5916_p2 }
  0x27   : > { %626 = vmatpush.bf16.msra.mxu0 %v5605_v8  ;;  %5787 = vmatpush.bf16.msra.mxu2 %v5605_v8  ;;  %8327 = vst [vmem:[#allocation12_spill] sm:$0xff] %v6219_v63  ;;  %v6225_v1 = vsel %vm428_vm0, %v474_v59, %v475_v60  ;;  %v6228_v2 = vsel %vm428_vm0, %v475_v60, %v477_v61  ;;  %v6248_v8 = vld [vmem:[%s6090_s16 + $0x80] sm:$0x1]  ;;  %v5619_v49 = vld [vmem:[%s8184_s1 + $0xc8] sm:$0xff] }
  0x28   : > { %5795 = vmatpush.bf16.msra.mxu3 %v5597_v9  ;;  %763 = vmatpush.bf16.msra.mxu1 %v5597_v9  ;;  %8328 = vst [vmem:[#allocation13_spill] sm:$0xff] %v6222_v0  ;;  %v6232_v3 = vpack.c.bf16 %v6222_v0, %v6219_v63  ;;  %v6236_v4 = vpack.c.bf16 %v6228_v2, %v6225_v1  ;;  %v8212_v9 = vunpack.c.l.bf16 %v6239_v5  ;;  %v480_v32 = vrot.slane %v8193_v23, 1  ;;  %v5627_v48 = vld [vmem:[%s8184_s1 + $0x108] sm:$0xff] }
  0x29   : > { %8329 = vst [vmem:[#allocation14_spill] sm:$0xff] %v6225_v1  ;;  %v5635_v33 = vld [vmem:[%s8184_s1 + $0x148] sm:$0xff] }
  0x2a   : > { %8330 = vst [vmem:[#allocation15_spill] sm:$0xff] %v6228_v2  ;;  %v439_v28 = vrot.slane %v8212_v9, 1  ;;  %v5611_v9 = vld [vmem:[%s8184_s1 + $0x88] sm:$0xff] }
  0x2b   : > { %627 = vmatpush.bf16.msra.mxu0 %v5604_v16  ;;  %5788 = vmatpush.bf16.msra.mxu2 %v5604_v16  ;;  %8331 = vst [vmem:[#allocation16_spill] sm:$0xff] %v6236_v4  ;;  %v8211_v16 = vunpack.c.h.bf16 %v6239_v5 }
  0x2c   : > { %5796 = vmatpush.bf16.msra.mxu3 %v5596_v21  ;;  %764 = vmatpush.bf16.msra.mxu1 %v5596_v21  ;;  %v8210_v21 = vunpack.c.l.bf16 %v6242_v6 }
  0x2e   : > { %v442_v30 = vrot.slane %v8210_v21, 1 }
  0x2f   : > { %628 = vmatpush.bf16.msra.mxu0 %v5603_v24  ;;  %5789 = vmatpush.bf16.msra.mxu2 %v5603_v24  ;;  %v8189_v24 = vunpack.c.l.bf16 %v6248_v8 }
  0x30   : > { %5797 = vmatpush.bf16.msra.mxu3 %v5595_v29  ;;  %765 = vmatpush.bf16.msra.mxu1 %v5595_v29  ;;  %v440_v29 = vrot.slane %v8211_v16, 1 }
  0x33   : > { %629 = vmatpush.bf16.msra.mxu0 %v5602_v31  ;;  %5790 = vmatpush.bf16.msra.mxu2 %v5602_v31  ;;  %v479_v31 = vrot.slane %v8194_v22, 1 }
  0x34   : > { %5798 = vmatpush.bf16.msra.mxu3 %v5594_v35  ;;  %766 = vmatpush.bf16.msra.mxu1 %v5594_v35  ;;  %v482_v35 = vrot.slane %v8189_v24, 1 }
  0x36   : > { %630 = vmatmul.bf16.vlgmr.msra.gmra.mxu0 %v541_v38  ;;  %670 = vmatmul.bf16.vlgmr.msra.gmra.mxu2 %v6162_v39  ;;  %v6288_v38 = vsel %vm428_vm0, %v479_v31, %v480_v32 }
  0x37   : > { %1042 = vmatpush.bf16.msrb.mxu2 %v5617_v36  ;;  %807 = vmatmul.bf16.vlgmr.msra.gmra.mxu3 %v6105_v12  ;;  %v6282_v36 = vsel %vm428_vm0, %v439_v28, %v440_v29  ;;  %8334 = vst [vmem:[#allocation19_spill] sm:$0xff] %v6288_v38 }
  0x38   : > { %1229 = vmatpush.bf16.msrb.mxu3 %v5625_v37  ;;  %767 = vmatmul.bf16.vlgmr.msra.gmra.mxu1 %v6099_v10  ;;  %8332 = vst [vmem:[#allocation17_spill] sm:$0xff] %v6282_v36  ;;  %v6285_v37 = vsel %vm428_vm0, %v440_v29, %v442_v30 }
  0x39   : > { %1426 = vmatpush.bf16.msrb.mxu0 %v5633_v40  ;;  %8333 = vst [vmem:[#allocation18_spill] sm:$0xff] %v6285_v37  ;;  %v6291_v40 = vsel %vm428_vm0, %v480_v32, %v482_v35  ;;  %1620 = vmatpush.bf16.msrb.mxu1 %v5641_v47 }
  0x3a   : > { %8335 = vst [vmem:[#allocation20_spill] sm:$0xff] %v6291_v40 }
  0x3b   : > { %1043 = vmatpush.bf16.msrb.mxu2 %v5616_v45  ;;  %v6295_v45 = vpack.c.bf16 %v6285_v37, %v6282_v36 }
  0x3c   : > { %1230 = vmatpush.bf16.msrb.mxu3 %v5624_v46  ;;  %v6299_v46 = vpack.c.bf16 %v6291_v40, %v6288_v38 }
  0x3d   : > { %1427 = vmatpush.bf16.msrb.mxu0 %v5632_v53  ;;  %v6302_v53 = vld [vmem:[%s6090_s16 + $0x24] sm:$0xff]  }
  0x3e   : > { %v8203_v57 = vunpack.c.l.bf16 %v6302_v53  ;;  %v8202_v58 = vunpack.c.h.bf16 %v6302_v53 }
  0x3f   : > { %1044 = vmatpush.bf16.msrb.mxu2 %v5615_v54  ;;  %v6305_v54 = vld [vmem:[%s6090_s16 + $0x2c] sm:$0x1] }
  0x40   : > { %1231 = vmatpush.bf16.msrb.mxu3 %v5623_v55  ;;  %v6308_v55 = vld [vmem:[%s6090_s16 + $0x84] sm:$0xff]   ;;  %v8201_v59 = vunpack.c.l.bf16 %v6305_v54  ;;  %v444_v28 = vrot.slane %v8203_v57, 1  ;;  %v445_v29 = vrot.slane %v8202_v58, 1 }
  0x41   : > { %1428 = vmatpush.bf16.msrb.mxu0 %v5631_v62  ;;  %v8190_v60 = vunpack.c.l.bf16 %v6308_v55  ;;  %v8191_v61 = vunpack.c.h.bf16 %v6308_v55  ;;  %v8192_v62 = vunpack.c.l.bf16 %v6311_v56 }
  0x42   : > { %v447_v30 = vrot.slane %v8201_v59, 1 }
  0x43   : > { %1045 = vmatpush.bf16.msrb.mxu2 %v5614_v25  ;;  %v5613_v25 = vld [vmem:[%s8184_s1 + $0x98] sm:$0xff]  ;;  %v484_v31 = vrot.slane %v8190_v60, 1  ;;  %v485_v32 = vrot.slane %v8191_v61, 1  ;;  %v487_v35 = vrot.slane %v8192_v62, 1  ;;  %v6365_v62 = vld [vmem:[%s6090_s16 + $0x30] sm:$0xff]  }
  0x44   : > { %1232 = vmatpush.bf16.msrb.mxu3 %v5622_v26  ;;  %v5621_v26 = vld [vmem:[%s8184_s1 + $0xd8] sm:$0xff] }
  0x45   : > { %1429 = vmatpush.bf16.msrb.mxu0 %v5630_v27  ;;  %v5629_v27 = vld [vmem:[%s8184_s1 + $0x118] sm:$0xff]  ;;  %v6354_v24 = vsel %vm428_vm0, %v485_v32, %v487_v35 }
  0x46   : > { %635 = vmatmul.bf16.gmra.mxu0 %v6232_v3  ;;  %675 = vmatmul.bf16.gmra.mxu2 %v6236_v4  ;;  %8339 = vst [vmem:[#allocation24_spill] sm:$0xff] %v6354_v24 }
  0x47   : > { %812 = vmatmul.bf16.gmra.mxu3 %v6174_v43  ;;  %1046 = vmatpush.bf16.msrb.mxu2 %v5613_v25  ;;  %v6345_v25 = vsel %vm428_vm0, %v444_v28, %v445_v29  ;;  %v6368_v28 = vld [vmem:[%s6090_s16 + $0x38] sm:$0x1] }
  0x48   : > { %772 = vmatmul.bf16.gmra.mxu1 %v6168_v41  ;;  %1233 = vmatpush.bf16.msrb.mxu3 %v5621_v26  ;;  %8336 = vst [vmem:[#allocation21_spill] sm:$0xff] %v6345_v25  ;;  %v6348_v26 = vsel %vm428_vm0, %v445_v29, %v447_v30  ;;  %v6371_v29 = vld [vmem:[%s6090_s16 + $0x90] sm:$0xff]   ;;  %v6374_v30 = vld [vmem:[%s6090_s16 + $0x98] sm:$0x1]  ;;  %v8205_v35 = vunpack.c.l.bf16 %v6368_v28 }
  0x49   : > { %1430 = vmatpush.bf16.msrb.mxu0 %v5629_v27  ;;  %8337 = vst [vmem:[#allocation22_spill] sm:$0xff] %v6348_v26  ;;  %v6351_v27 = vsel %vm428_vm0, %v484_v31, %v485_v32  ;;  %v6358_v60 = vpack.c.bf16 %v6348_v26, %v6345_v25  ;;  %v8204_v31 = vunpack.c.l.bf16 %v6365_v62  ;;  %v8209_v32 = vunpack.c.h.bf16 %v6365_v62 }
  0x4a   : > { %8338 = vst [vmem:[#allocation23_spill] sm:$0xff] %v6351_v27  ;;  %v6362_v61 = vpack.c.bf16 %v6354_v24, %v6351_v27  ;;  %v8206_v23 = vunpack.c.l.bf16 %v6371_v29  ;;  %v8207_v22 = vunpack.c.h.bf16 %v6371_v29  ;;  %v8208_v52 = vunpack.c.l.bf16 %v6374_v30  ;;  %v5639_v24 = vld [vmem:[%s8184_s1 + $0x168] sm:$0xff] }
  0x4b   : > { %8340 = vst [vmem:[#allocation25_spill] sm:$0xff] %v6358_v60  ;;  %1047 = vmatpush.bf16.msrb.mxu2 %v5612_v51  ;;  %v449_v19 = vrot.slane %v8204_v31, 1  ;;  %v450_v18 = vrot.slane %v8209_v32, 1  ;;  %v452_v59 = vrot.slane %v8205_v35, 1 }
  0x4c   : > { %1234 = vmatpush.bf16.msrb.mxu3 %v5620_v50  ;;  %v489_v58 = vrot.slane %v8206_v23, 1  ;;  %v490_v51 = vrot.slane %v8207_v22, 1  ;;  %v492_v50 = vrot.slane %v8208_v52, 1  ;;  %v6428_v52 = vld [vmem:[%s6090_s16 + $0x3c] sm:$0xff]  }
  0x4d   : > { %1431 = vmatpush.bf16.msrb.mxu0 %v5628_v20  ;;  %v6408_v57 = vsel %vm428_vm0, %v449_v19, %v450_v18  ;;  %v6411_v31 = vsel %vm428_vm0, %v450_v18, %v452_v59  ;;  %v6431_v19 = vld [vmem:[%s6090_s16 + $0x44] sm:$0x1]  ;;  %v6434_v18 = vld [vmem:[%s6090_s16 + $0x9c] sm:$0xff]  }
  0x4e   : > { %8341 = vst [vmem:[#allocation26_spill] sm:$0xff] %v6408_v57  ;;  %v6414_v20 = vsel %vm428_vm0, %v489_v58, %v490_v51  ;;  %v6417_v35 = vsel %vm428_vm0, %v490_v51, %v492_v50  ;;  %v6421_v23 = vpack.c.bf16 %v6411_v31, %v6408_v57  ;;  %v6437_v59 = vld [vmem:[%s6090_s16 + $0xa4] sm:$0x1]  ;;  %v8220_v58 = vunpack.c.l.bf16 %v6428_v52 }
  0x4f   : > { %8342 = vst [vmem:[#allocation27_spill] sm:$0xff] %v6411_v31  ;;  %v6425_v22 = vpack.c.bf16 %v6417_v35, %v6414_v20  ;;  %v8221_v51 = vunpack.c.h.bf16 %v6428_v52  ;;  %v8224_v50 = vunpack.c.l.bf16 %v6431_v19  ;;  %v8222_v32 = vunpack.c.l.bf16 %v6434_v18  ;;  %1048 = vmatpush.bf16.msrb.mxu2 %v5611_v9 }
  0x50   : > { %8343 = vst [vmem:[#allocation28_spill] sm:$0xff] %v6414_v20  ;;  %v8223_v21 = vunpack.c.h.bf16 %v6434_v18  ;;  %1235 = vmatpush.bf16.msrb.mxu3 %v5619_v49  ;;  %v454_v17 = vrot.slane %v8220_v58, 1  ;;  %v8346_v9 = vunpack.c.l.bf16 %v6437_v59 }
  0x51   : > { %8344 = vst [vmem:[#allocation29_spill] sm:$0xff] %v6417_v35  ;;  %v455_v15 = vrot.slane %v8221_v51, 1  ;;  %1432 = vmatpush.bf16.msrb.mxu0 %v5627_v48  ;;  %v457_v14 = vrot.slane %v8224_v50, 1  ;;  %v494_v16 = vrot.slane %v8222_v32, 1 }
  0x52   : > { %8345 = vst [vmem:[#allocation30_spill] sm:$0xff] %v6421_v23  ;;  %v495_v49 = vrot.slane %v8223_v21, 1  ;;  %v497_v35 = vrot.slane %v8346_v9, 1  ;;  %v6494_v9 = vld [vmem:[%s6090_s16 + $0x48] sm:$0xff]  }
  0x53   : > { %v6474_v58 = vsel %vm428_vm0, %v454_v17, %v455_v15  ;;  %v6477_v51 = vsel %vm428_vm0, %v455_v15, %v457_v14  ;;  %v6497_v17 = vld [vmem:[%s6090_s16 + $0x50] sm:$0x1]  ;;  %v6500_v14 = vld [vmem:[%s6090_s16 + $0xa8] sm:$0xff]   ;;  %v8352_v20 = vunpack.c.l.bf16 %v6494_v9  ;;  %v8353_v50 = vunpack.c.h.bf16 %v6494_v9 }
  0x54   : > { %8347 = vst [vmem:[#allocation31_spill] sm:$0xff] %v6474_v58  ;;  %v6480_v47 = vsel %vm428_vm0, %v494_v16, %v495_v49  ;;  %v6483_v48 = vsel %vm428_vm0, %v495_v49, %v497_v35  ;;  %v6487_v32 = vpack.c.bf16 %v6477_v51, %v6474_v58  ;;  %v6503_v15 = vld [vmem:[%s6090_s16 + $0xb0] sm:$0x1]  ;;  %v5610_v35 = vld [vmem:[%s8184_s1 + $0x80] sm:$0xff]  ;;  %v8355_v38 = vunpack.c.l.bf16 %v6500_v14 }
  0x55   : > { %8348 = vst [vmem:[#allocation32_spill] sm:$0xff] %v6477_v51  ;;  %v6491_v21 = vpack.c.bf16 %v6483_v48, %v6480_v47  ;;  %v5640_v49 = vld [vmem:[%s8184_s1 + $0x170] sm:$0xff]  ;;  %v5618_v16 = vld [vmem:[%s8184_s1 + $0xc0] sm:$0xff]  ;;  %1049 = vmatpush.bf16.msrb.mxu2 %v5610_v35  ;;  %v460_v27 = vrot.slane %v8353_v50, 1  ;;  %v8356_v1 = vunpack.c.h.bf16 %v6500_v14  ;;  %v8357_v35 = vunpack.c.l.bf16 %v6503_v15 }
  0x56   : > { %640 = vmatmul.bf16.gmra.mxu0 %v6295_v45  ;;  %680 = vmatmul.bf16.gmra.mxu2 %v6299_v46  ;;  %8349 = vst [vmem:[#allocation33_spill] sm:$0xff] %v6480_v47  ;;  %v459_v47 = vrot.slane %v8352_v20, 1  ;;  %v499_v2 = vrot.slane %v8355_v38, 1  ;;  %v5638_v50 = vld [vmem:[%s8184_s1 + $0x160] sm:$0xff] }
  0x57   : > { %817 = vmatmul.bf16.gmra.mxu3 %v6245_v7  ;;  %8350 = vst [vmem:[#allocation34_spill] sm:$0xff] %v6483_v48  ;;  %1621 = vmatpush.bf16.msrb.mxu1 %v5640_v49  ;;  %v5626_v48 = vld [vmem:[%s8184_s1 + $0x100] sm:$0xff]  ;;  %v8354_v49 = vunpack.c.l.bf16 %v6497_v17  ;;  %v502_v20 = vrot.slane %v8357_v35, 1  ;;  %v5657_v35 = vld [vmem:[%s8184_s1 + $0x1f8] sm:$0xff] }
  0x58   : > { %777 = vmatmul.bf16.gmra.mxu1 %v6239_v5  ;;  %8351 = vst [vmem:[#allocation35_spill] sm:$0xff] %v6487_v32  ;;  %1236 = vmatpush.bf16.msrb.mxu3 %v5618_v16  ;;  %v500_v16 = vrot.slane %v8356_v1, 1 }
  0x59   : > { %1433 = vmatpush.bf16.msrb.mxu0 %v5626_v48  ;;  %v462_v40 = vrot.slane %v8354_v49, 1  ;;  %v6546_v48 = vsel %vm428_vm0, %v459_v47, %v460_v27  ;;  %v6575_v47 = vld [vmem:[%s6090_s16 + $0xb4] sm:$0xff]  }
  0x5a   : > { %8358 = vst [vmem:[#allocation36_spill] sm:$0xff] %v6546_v48  ;;  %v6552_v38 = vsel %vm428_vm0, %v499_v2, %v500_v16  ;;  %v6555_v34 = vsel %vm428_vm0, %v500_v16, %v502_v20  ;;  %v6572_v2 = vld [vmem:[%s6090_s16 + $0x5c] sm:$0x1]  ;;  %v8366_v58 = vunpack.c.l.bf16 %v6575_v47 }
  0x5b   : > { %1622 = vmatpush.bf16.msrb.mxu1 %v5639_v24  ;;  %v6549_v49 = vsel %vm428_vm0, %v460_v27, %v462_v40  ;;  %8360 = vst [vmem:[#allocation38_spill] sm:$0xff] %v6552_v38  ;;  %v6563_v24 = vpack.c.bf16 %v6555_v34, %v6552_v38  ;;  %v5637_v40 = vld [vmem:[%s8184_s1 + $0x158] sm:$0xff]  ;;  %v8365_v38 = vunpack.c.l.bf16 %v6572_v2 }
  0x5c   : > { %8359 = vst [vmem:[#allocation37_spill] sm:$0xff] %v6549_v49  ;;  %v6559_v1 = vpack.c.bf16 %v6549_v49, %v6546_v48  ;;  %v6569_v27 = vld [vmem:[%s6090_s16 + $0x54] sm:$0xff]   ;;  %v6578_v16 = vld [vmem:[%s6090_s16 + $0xbc] sm:$0x1]  ;;  %2004 = vmatpush.bf16.msra.mxu3 %v5657_v35  ;;  %v504_v31 = vrot.slane %v8366_v58, 1 }
  0x5d   : > { %8361 = vst [vmem:[#allocation39_spill] sm:$0xff] %v6555_v34  ;;  %v5649_v20 = vld [vmem:[%s8184_s1 + $0x1b8] sm:$0xff]  ;;  %v8363_v49 = vunpack.c.l.bf16 %v6569_v27  ;;  %v467_v51 = vrot.slane %v8365_v38, 1  ;;  %v8368_v35 = vunpack.c.l.bf16 %v6578_v16 }
  0x5e   : > { %8362 = vst [vmem:[#allocation40_spill] sm:$0xff] %v6559_v1  ;;  %1807 = vmatpush.bf16.msra.mxu2 %v5649_v20 }
  0x5f   : > { %1623 = vmatpush.bf16.msrb.mxu1 %v5638_v50  ;;  %v5636_v50 = vld [vmem:[%s8184_s1 + $0x150] sm:$0xff]  ;;  %v464_v34 = vrot.slane %v8363_v49, 1  ;;  %v507_v57 = vrot.slane %v8368_v35, 1  ;;  %v5634_v49 = vld [vmem:[%s8184_s1 + $0x140] sm:$0xff] }
  0x63   : > { %1624 = vmatpush.bf16.msrb.mxu1 %v5637_v40  ;;  %v8364_v40 = vunpack.c.h.bf16 %v6569_v27 }
  0x65   : > { %v465_v48 = vrot.slane %v8364_v40, 1  ;;  %v5665_v40 = vld [vmem:[%s8184_s1 + $0x238] sm:$0xff] }
  0x66   : > { %645 = vmatmul.bf16.gmra.mxu0 %v6358_v60  ;;  %685 = vmatmul.bf16.gmra.mxu2 %v6362_v61 }
  0x67   : > { %822 = vmatmul.bf16.gmra.mxu3 %v6308_v55  ;;  %1625 = vmatpush.bf16.msrb.mxu1 %v5636_v50  ;;  %v8367_v50 = vunpack.c.h.bf16 %v6575_v47  ;;  %v6621_v38 = vsel %vm428_vm0, %v464_v34, %v465_v48  ;;  %v6624_v58 = vsel %vm428_vm0, %v465_v48, %v467_v51  ;;  %v8374_v34 = vunpack.c.l.bf16 %v6099_v10 }
  0x68   : > { %782 = vmatmul.bf16.gmra.mxu1 %v6302_v53  ;;  %8369 = vst [vmem:[#allocation41_spill] sm:$0xff] %v6621_v38  ;;  %2198 = vmatpush.bf16.msra.mxu0 %v5665_v40  ;;  %v8376_v48 = vunpack.c.l.bf16 %v6102_v11 }
  0x69   : > { %v505_v20 = vrot.slane %v8367_v50, 1  ;;  %8370 = vst [vmem:[#allocation42_spill] sm:$0xff] %v6624_v58 }
  0x6b   : > { %1626 = vmatpush.bf16.msrb.mxu1 %v5635_v33  ;;  %v6627_v50 = vsel %vm428_vm0, %v504_v31, %v505_v20  ;;  %v6630_v35 = vsel %vm428_vm0, %v505_v20, %v507_v57  ;;  %v6634_v33 = vpack.c.bf16 %v6624_v58, %v6621_v38  ;;  %v849_v57 = vrot.slane %v8374_v34, 2 }
  0x6c   : > { %8371 = vst [vmem:[#allocation43_spill] sm:$0xff] %v6627_v50  ;;  %v6638_v26 = vpack.c.bf16 %v6630_v35, %v6627_v50  ;;  %v8375_v31 = vunpack.c.h.bf16 %v6099_v10  ;;  %v852_v20 = vrot.slane %v8376_v48, 2  ;;  %v8379_v58 = vunpack.c.l.bf16 %v6171_v42  ;;  %v5648_v42 = vld [vmem:[%s8184_s1 + $0x1b0] sm:$0xff] }
  0x6d   : > { %8372 = vst [vmem:[#allocation44_spill] sm:$0xff] %v6630_v35  ;;  %v8378_v35 = vunpack.c.h.bf16 %v6168_v41  ;;  %1808 = vmatpush.bf16.msra.mxu2 %v5648_v42 }
  0x6e   : > { %8373 = vst [vmem:[#allocation45_spill] sm:$0xff] %v6634_v33  ;;  %v850_v51 = vrot.slane %v8375_v31, 2  ;;  %v857_v38 = vrot.slane %v8379_v58, 2 }
  0x6f   : > { %1627 = vmatpush.bf16.msrb.mxu1 %v5634_v49  ;;  %v8377_v49 = vunpack.c.l.bf16 %v6168_v41  ;;  %v855_v50 = vrot.slane %v8378_v35, 2 }
  0x70   : > { %v851_v25 = vsel %vm848_vm1, %v849_v57, %v850_v51  ;;  %v853_v34 = vsel %vm848_vm1, %v850_v51, %v852_v20  ;;  %v8381_v57 = vunpack.c.h.bf16 %v6239_v5  ;;  %v8382_v20 = vunpack.c.l.bf16 %v6242_v6 }
  0x71   : > { %v854_v40 = vrot.slane %v8377_v49, 2  ;;  %v858_v31 = vsel %vm848_vm1, %v855_v50, %v857_v38  ;;  %v961_v11 = vpack.c.bf16 %v853_v34, %v851_v25  ;;  %v5656_v38 = vld [vmem:[%s8184_s1 + $0x1f0] sm:$0xff] }
  0x72   : > { %2005 = vmatpush.bf16.msra.mxu3 %v5656_v38  ;;  %v860_v51 = vrot.slane %v8381_v57, 2  ;;  %v862_v49 = vrot.slane %v8382_v20, 2  ;;  %v5664_v34 = vld [vmem:[%s8184_s1 + $0x230] sm:$0xff] }
  0x73   : > { %v856_v10 = vsel %vm848_vm1, %v854_v40, %v855_v50  ;;  %2199 = vmatpush.bf16.msra.mxu0 %v5664_v34 }
  0x74   : > { %v962_v37 = vpack.c.bf16 %v858_v31, %v856_v10  ;;  %v863_v31 = vsel %vm848_vm1, %v860_v51, %v862_v49  ;;  %v8385_v49 = vunpack.c.h.bf16 %v6302_v53 }
  0x76   : > { %650 = vmatmul.bf16.gmra.mxu0 %v6421_v23  ;;  %690 = vmatmul.bf16.gmra.mxu2 %v6425_v22  ;;  %v865_v34 = vrot.slane %v8385_v49, 2 }
  0x77   : > { %827 = vmatmul.bf16.gmra.mxu3 %v6371_v29 }
  0x78   : > { %787 = vmatmul.bf16.gmra.mxu1 %v6365_v62 }
  0x86   : > { %655 = vmatmul.bf16.gmra.mxu0 %v6487_v32  ;;  %695 = vmatmul.bf16.gmra.mxu2 %v6491_v21 }
  0x87   : > { %832 = vmatmul.bf16.gmra.mxu3 %v6434_v18 }
  0x88   : > { %792 = vmatmul.bf16.gmra.mxu1 %v6428_v52 }
  0x96   : > { %660 = vmatmul.bf16.gmra.mxu0 %v6559_v1  ;;  %700 = vmatmul.bf16.gmra.mxu2 %v6563_v24 }
  0x97   : > { %837 = vmatmul.bf16.gmra.mxu3 %v6500_v14 }
  0x98   : > { %797 = vmatmul.bf16.gmra.mxu1 %v6494_v9 }
  0xa6   : > { %665 = vmatmul.bf16.gmra.mxu0 %v6634_v33  ;;  %705 = vmatmul.bf16.gmra.mxu2 %v6638_v26 }
  0xa7   : > { %842 = vmatmul.bf16.gmra.mxu3 %v6575_v47 }
  0xa8   : > { %802 = vmatmul.bf16.gmra.mxu1 %v6569_v27 }
  0xb3   : > { %v631_v48 = vpop.f32.mrf.mxu0 }
  0xb5   : > { %v768_v36 = vpop.f32.mrf.mxu1 }
  0xb6   : > { %v6660_v0 = vadd.f32 %v768_v36, %v631_v48  ;;  %1050 = vmatmul.bf16.vlgmr.msrb.gmra.mxu2 %v961_v11  ;;  %1434 = vmatmul.bf16.vlgmr.msrb.gmra.mxu0 %v6232_v3  ;;  %v8380_v3 = vunpack.c.l.bf16 %v6239_v5 }
  0xb7   : > { %1237 = vmatmul.bf16.vlgmr.msrb.gmra.mxu3 %v6168_v41 }
  0xb8   : > { %1628 = vmatmul.bf16.vlgmr.msrb.gmra.mxu1 %v962_v37  ;;  %v859_v41 = vrot.slane %v8380_v3, 2 }
  0xb9   : > { %v671_v25 = vpop.f32.mrf.mxu2 }
  0xba   : > { %v808_v58 = vpop.f32.mrf.mxu3  ;;  %v861_v10 = vsel %vm848_vm1, %v859_v41, %v860_v51  ;;  %v8384_v51 = vunpack.c.l.bf16 %v6302_v53 }
  0xbb   : > { %v6670_v36 = vadd.f32 %v808_v58, %v671_v25  ;;  %v633_v50 = vpop.f32.mrf.mxu0  ;;  %v6687_v25 = vpack.c.bf16 %v863_v31, %v861_v10 }
  0xbc   : > { %v864_v20 = vrot.slane %v8384_v51, 2 }
  0xbd   : > { %v770_v35 = vpop.f32.mrf.mxu1 }
  0xbe   : > { %v6678_v40 = vadd.f32 %v770_v35, %v633_v50 }
  0xc1   : > { %v673_v11 = vpop.f32.mrf.mxu2 }
  0xc2   : > { %v810_v48 = vpop.f32.mrf.mxu3 }
  0xc3   : > { %v6685_v42 = vadd.f32 %v810_v48, %v673_v11  ;;  %v636_v38 = vpop.f32.mrf.mxu0 }
  0xc5   : > { %v773_v6 = vpop.f32.mrf.mxu1 }
  0xc6   : > { %v6689_v58 = vadd.f32 %v773_v6, %v636_v38  ;;  %1055 = vmatmul.bf16.gmra.mxu2 %v962_v37  ;;  %1439 = vmatmul.bf16.gmra.mxu0 %v6295_v45  ;;  %v8386_v37 = vunpack.c.l.bf16 %v6305_v54  ;;  %v5647_v54 = vld [vmem:[%s8184_s1 + $0x1a8] sm:$0xff] }
  0xc7   : > { %1242 = vmatmul.bf16.gmra.mxu3 %v6239_v5  ;;  %v866_v5 = vsel %vm848_vm1, %v864_v20, %v865_v34  ;;  %1809 = vmatpush.bf16.msra.mxu2 %v5647_v54  ;;  %v5663_v54 = vld [vmem:[%s8184_s1 + $0x228] sm:$0xff] }
  0xc8   : > { %1633 = vmatmul.bf16.gmra.mxu1 %v6687_v25  ;;  %v867_v10 = vrot.slane %v8386_v37, 2  ;;  %2200 = vmatpush.bf16.msra.mxu0 %v5663_v54 }
  0xc9   : > { %v676_v50 = vpop.f32.mrf.mxu2 }
  0xca   : > { %v813_v35 = vpop.f32.mrf.mxu3  ;;  %v868_v11 = vsel %vm848_vm1, %v865_v34, %v867_v10  ;;  %v8389_v10 = vunpack.c.l.bf16 %v6365_v62 }
  0xcb   : > { %v6694_v3 = vadd.f32 %v813_v35, %v676_v50  ;;  %v638_v41 = vpop.f32.mrf.mxu0  ;;  %v6708_v35 = vpack.c.bf16 %v868_v11, %v866_v5  ;;  %v8390_v11 = vunpack.c.h.bf16 %v6365_v62 }
  0xcc   : > { %v869_v5 = vrot.slane %v8389_v10, 2 }
  0xcd   : > { %8383 = vst [vmem:[#allocation46_spill] sm:$0xff] %v6694_v3  ;;  %v775_v57 = vpop.f32.mrf.mxu1 }
  0xce   : > { %v6702_v31 = vadd.f32 %v775_v57, %v638_v41  ;;  %v5655_v41 = vld [vmem:[%s8184_s1 + $0x1e8] sm:$0xff] }
  0xcf   : > { %2006 = vmatpush.bf16.msra.mxu3 %v5655_v41 }
  0xd1   : > { %v678_v48 = vpop.f32.mrf.mxu2 }
  0xd2   : > { %v815_v38 = vpop.f32.mrf.mxu3 }
  0xd3   : > { %v6706_v6 = vadd.f32 %v815_v38, %v678_v48  ;;  %v641_v50 = vpop.f32.mrf.mxu0  ;;  %v870_v48 = vrot.slane %v8390_v11, 2  ;;  %v8391_v38 = vunpack.c.l.bf16 %v6368_v28 }
  0xd5   : > { %8387 = vst [vmem:[#allocation47_spill] sm:$0xff] %v6706_v6  ;;  %v778_v51 = vpop.f32.mrf.mxu1  ;;  %v871_v41 = vsel %vm848_vm1, %v869_v5, %v870_v48 }
  0xd6   : > { %v6710_v63 = vadd.f32 %v778_v51, %v641_v50  ;;  %1060 = vmatmul.bf16.gmra.mxu2 %v6687_v25  ;;  %1444 = vmatmul.bf16.gmra.mxu0 %v6358_v60  ;;  %v872_v50 = vrot.slane %v8391_v38, 2 }
  0xd7   : > { %1247 = vmatmul.bf16.gmra.mxu3 %v6302_v53 }
  0xd8   : > { %1638 = vmatmul.bf16.gmra.mxu1 %v6708_v35 }
  0xd9   : > { %v681_v57 = vpop.f32.mrf.mxu2 }
  0xda   : > { %v818_v20 = vpop.f32.mrf.mxu3 }
  0xdb   : > { %v6722_v49 = vadd.f32 %v818_v20, %v681_v57  ;;  %v643_v34 = vpop.f32.mrf.mxu0  ;;  %v873_v57 = vsel %vm848_vm1, %v870_v48, %v872_v50  ;;  %v8394_v50 = vunpack.c.l.bf16 %v6428_v52 }
  0xdc   : > { %v6739_v11 = vpack.c.bf16 %v873_v57, %v871_v41  ;;  %v8396_v57 = vunpack.c.l.bf16 %v6431_v19  ;;  %v5646_v19 = vld [vmem:[%s8184_s1 + $0x1a0] sm:$0xff] }
  0xdd   : > { %8388 = vst [vmem:[#allocation48_spill] sm:$0xff] %v6722_v49  ;;  %v780_v37 = vpop.f32.mrf.mxu1  ;;  %v874_v54 = vrot.slane %v8394_v50, 2  ;;  %1810 = vmatpush.bf16.msra.mxu2 %v5646_v19  ;;  %v5662_v19 = vld [vmem:[%s8184_s1 + $0x220] sm:$0xff] }
  0xde   : > { %v6730_v51 = vadd.f32 %v780_v37, %v643_v34  ;;  %2201 = vmatpush.bf16.msra.mxu0 %v5662_v19 }
  0xe1   : > { %v683_v20 = vpop.f32.mrf.mxu2 }
  0xe2   : > { %v820_v49 = vpop.f32.mrf.mxu3 }
  0xe3   : > { %v6737_v10 = vadd.f32 %v820_v49, %v683_v20  ;;  %v646_v6 = vpop.f32.mrf.mxu0  ;;  %v877_v20 = vrot.slane %v8396_v57, 2  ;;  %v8401_v57 = vunpack.c.h.bf16 %v6494_v9 }
  0xe5   : > { %8392 = vst [vmem:[#allocation49_spill] sm:$0xff] %v6737_v10  ;;  %v783_v28 = vpop.f32.mrf.mxu1 }
  0xe6   : > { %v6741_v38 = vadd.f32 %v783_v28, %v646_v6  ;;  %1065 = vmatmul.bf16.gmra.mxu2 %v6708_v35  ;;  %1449 = vmatmul.bf16.gmra.mxu0 %v6421_v23  ;;  %v8395_v6 = vunpack.c.h.bf16 %v6428_v52 }
  0xe7   : > { %1252 = vmatmul.bf16.gmra.mxu3 %v6365_v62 }
  0xe8   : > { %1643 = vmatmul.bf16.gmra.mxu1 %v6739_v11  ;;  %v875_v41 = vrot.slane %v8395_v6, 2  ;;  %v8400_v6 = vunpack.c.l.bf16 %v6494_v9 }
  0xe9   : > { %v686_v34 = vpop.f32.mrf.mxu2 }
  0xea   : > { %v823_v37 = vpop.f32.mrf.mxu3  ;;  %v876_v62 = vsel %vm848_vm1, %v874_v54, %v875_v41  ;;  %v878_v10 = vsel %vm848_vm1, %v875_v41, %v877_v20  ;;  %v879_v41 = vrot.slane %v8400_v6, 2  ;;  %v880_v20 = vrot.slane %v8401_v57, 2 }
  0xeb   : > { %v6747_v5 = vadd.f32 %v823_v37, %v686_v34  ;;  %v648_v49 = vpop.f32.mrf.mxu0  ;;  %v6761_v3 = vpack.c.bf16 %v878_v10, %v876_v62  ;;  %v8402_v62 = vunpack.c.l.bf16 %v6497_v17 }
  0xed   : > { %8393 = vst [vmem:[#allocation50_spill] sm:$0xff] %v6747_v5  ;;  %v785_v48 = vpop.f32.mrf.mxu1 }
  0xee   : > { %v6755_v28 = vadd.f32 %v785_v48, %v648_v49  ;;  %8398 = vst [vmem:[#allocation52_spill] sm:$0xff] %v6761_v3 }
  0xf1   : > { %v688_v23 = vpop.f32.mrf.mxu2 }
  0xf2   : > { %v825_v34 = vpop.f32.mrf.mxu3 }
  0xf3   : > { %v6759_v37 = vadd.f32 %v825_v34, %v688_v23  ;;  %v651_v5 = vpop.f32.mrf.mxu0  ;;  %v5654_v23 = vld [vmem:[%s8184_s1 + $0x1e0] sm:$0xff]  ;;  %v882_v34 = vrot.slane %v8402_v62, 2 }
  0xf4   : > { %2007 = vmatpush.bf16.msra.mxu3 %v5654_v23  ;;  %v881_v23 = vsel %vm848_vm1, %v879_v41, %v880_v20 }
  0xf5   : > { %8397 = vst [vmem:[#allocation51_spill] sm:$0xff] %v6759_v37  ;;  %v788_v50 = vpop.f32.mrf.mxu1 }
  0xf6   : > { %v6763_v60 = vadd.f32 %v788_v50, %v651_v5  ;;  %1070 = vmatmul.bf16.gmra.mxu2 %v6739_v11  ;;  %1454 = vmatmul.bf16.gmra.mxu0 %v6487_v32 }
  0xf7   : > { %1257 = vmatmul.bf16.gmra.mxu3 %v6428_v52 }
  0xf8   : > { %1648 = vmatmul.bf16.gmra.mxu1 %v6761_v3 }
  0xf9   : > { %v691_v10 = vpop.f32.mrf.mxu2 }
  0xfa   : > { %v828_v5 = vpop.f32.mrf.mxu3 }
  0xfb   : > { %v6775_v49 = vadd.f32 %v828_v5, %v691_v10  ;;  %v653_v48 = vpop.f32.mrf.mxu0  ;;  %v883_v10 = vsel %vm848_vm1, %v880_v20, %v882_v34  ;;  %v8405_v34 = vunpack.c.l.bf16 %v6569_v27 }
  0xfc   : > { %v6792_v57 = vpack.c.bf16 %v883_v10, %v881_v23  ;;  %v8407_v10 = vunpack.c.l.bf16 %v6572_v2  ;;  %v5645_v2 = vld [vmem:[%s8184_s1 + $0x198] sm:$0xff] }
  0xfd   : > { %8399 = vst [vmem:[#allocation53_spill] sm:$0xff] %v6775_v49  ;;  %v790_v54 = vpop.f32.mrf.mxu1  ;;  %v884_v19 = vrot.slane %v8405_v34, 2  ;;  %1811 = vmatpush.bf16.msra.mxu2 %v5645_v2 }
  0xfe   : > { %v6783_v50 = vadd.f32 %v790_v54, %v653_v48 }
 0x101   : > { %v693_v5 = vpop.f32.mrf.mxu2 }
 0x102   : > { %v830_v49 = vpop.f32.mrf.mxu3 }
 0x103   : > { %v6790_v6 = vadd.f32 %v830_v49, %v693_v5  ;;  %v656_v37 = vpop.f32.mrf.mxu0  ;;  %v887_v5 = vrot.slane %v8407_v10, 2  ;;  %v8411_v10 = vunpack.c.h.bf16 %v6105_v12 }
 0x105   : > { %8403 = vst [vmem:[#allocation54_spill] sm:$0xff] %v6790_v6  ;;  %v793_v17 = vpop.f32.mrf.mxu1 }
 0x106   : > { %v6794_v62 = vadd.f32 %v793_v17, %v656_v37  ;;  %1075 = vmatmul.bf16.gmra.mxu2 %v6761_v3  ;;  %1459 = vmatmul.bf16.gmra.mxu0 %v6559_v1  ;;  %v8406_v37 = vunpack.c.h.bf16 %v6569_v27 }
 0x107   : > { %1262 = vmatmul.bf16.gmra.mxu3 %v6494_v9 }
 0x108   : > { %1653 = vmatmul.bf16.gmra.mxu1 %v6792_v57  ;;  %v885_v23 = vrot.slane %v8406_v37, 2  ;;  %v8410_v37 = vunpack.c.l.bf16 %v6105_v12 }
 0x109   : > { %v696_v48 = vpop.f32.mrf.mxu2 }
 0x10a   : > { %v833_v54 = vpop.f32.mrf.mxu3  ;;  %v886_v9 = vsel %vm848_vm1, %v884_v19, %v885_v23  ;;  %v888_v6 = vsel %vm848_vm1, %v885_v23, %v887_v5  ;;  %v889_v23 = vrot.slane %v8410_v37, 2  ;;  %v890_v5 = vrot.slane %v8411_v10, 2 }
 0x10b   : > { %v6800_v41 = vadd.f32 %v833_v54, %v696_v48  ;;  %v658_v49 = vpop.f32.mrf.mxu0  ;;  %v6814_v32 = vpack.c.bf16 %v888_v6, %v886_v9  ;;  %v8412_v9 = vunpack.c.l.bf16 %v6108_v13 }
 0x10d   : > { %8404 = vst [vmem:[#allocation55_spill] sm:$0xff] %v6800_v41  ;;  %v795_v20 = vpop.f32.mrf.mxu1 }
 0x10e   : > { %v6808_v17 = vadd.f32 %v795_v20, %v658_v49 }
 0x111   : > { %v698_v1 = vpop.f32.mrf.mxu2 }
 0x112   : > { %v835_v48 = vpop.f32.mrf.mxu3 }
 0x113   : > { %v6812_v54 = vadd.f32 %v835_v48, %v698_v1  ;;  %v661_v41 = vpop.f32.mrf.mxu0  ;;  %v5653_v1 = vld [vmem:[%s8184_s1 + $0x1d8] sm:$0xff]  ;;  %v892_v48 = vrot.slane %v8412_v9, 2 }
 0x114   : > { %2008 = vmatpush.bf16.msra.mxu3 %v5653_v1  ;;  %v5661_v1 = vld [vmem:[%s8184_s1 + $0x218] sm:$0xff] }
 0x115   : > { %8408 = vst [vmem:[#allocation56_spill] sm:$0xff] %v6812_v54  ;;  %v798_v34 = vpop.f32.mrf.mxu1  ;;  %v891_v54 = vsel %vm848_vm1, %v889_v23, %v890_v5  ;;  %v893_v2 = vsel %vm848_vm1, %v890_v5, %v892_v48  ;;  %2202 = vmatpush.bf16.msra.mxu0 %v5661_v1  ;;  %v5681_v9 = vld [vmem:[#allocation2 + $0x78] sm:$0xff] }
 0x116   : > { %v6816_v3 = vadd.f32 %v798_v34, %v661_v41  ;;  %1080 = vmatmul.bf16.gmra.mxu2 %v6792_v57  ;;  %1464 = vmatmul.bf16.gmra.mxu0 %v6634_v33  ;;  %v6845_v10 = vpack.c.bf16 %v893_v2, %v891_v54  ;;  %v8416_v2 = vunpack.c.l.bf16 %v6174_v43 }
 0x117   : > { %1267 = vmatmul.bf16.gmra.mxu3 %v6569_v27  ;;  %2800 = vmatpush.bf16.msra.mxu1 %v5681_v9 }
 0x118   : > { %1658 = vmatmul.bf16.gmra.mxu1 %v6814_v32  ;;  %8414 = vst [vmem:[#allocation59_spill] sm:$0xff] %v6845_v10  ;;  %v894_v1 = vrot.slane %v8416_v2, 2 }
 0x119   : > { %v701_v6 = vpop.f32.mrf.mxu2 }
 0x11a   : > { %v838_v41 = vpop.f32.mrf.mxu3 }
 0x11b   : > { %v6828_v49 = vadd.f32 %v838_v41, %v701_v6  ;;  %v663_v20 = vpop.f32.mrf.mxu0 }
 0x11d   : > { %8409 = vst [vmem:[#allocation57_spill] sm:$0xff] %v6828_v49  ;;  %v800_v19 = vpop.f32.mrf.mxu1 }
 0x11e   : > { %v6836_v34 = vadd.f32 %v800_v19, %v663_v20 }
 0x121   : > { %v703_v6 = vpop.f32.mrf.mxu2 }
 0x122   : > { %v840_v41 = vpop.f32.mrf.mxu3 }
 0x123   : > { %v6843_v37 = vadd.f32 %v840_v41, %v703_v6  ;;  %v666_v49 = vpop.f32.mrf.mxu0  ;;  %v8418_v41 = vunpack.c.l.bf16 %v6177_v44  ;;  %v5644_v44 = vld [vmem:[%s8184_s1 + $0x190] sm:$0xff] }
 0x124   : > { %1812 = vmatpush.bf16.msra.mxu2 %v5644_v44 }
 0x125   : > { %8413 = vst [vmem:[#allocation58_spill] sm:$0xff] %v6843_v37  ;;  %v803_v13 = vpop.f32.mrf.mxu1 }
 0x126   : > { %v6847_v20 = vadd.f32 %v803_v13, %v666_v49  ;;  %1085 = vmatmul.bf16.gmra.mxu2 %v6814_v32  ;;  %1469 = vmatmul.bf16.gmra.mxu0 %v6162_v39  ;;  %v8417_v49 = vunpack.c.h.bf16 %v6174_v43  ;;  %v897_v13 = vrot.slane %v8418_v41, 2 }
 0x127   : > { %1272 = vmatmul.bf16.gmra.mxu3 %v6105_v12 }
 0x128   : > { %1663 = vmatmul.bf16.gmra.mxu1 %v6845_v10  ;;  %v895_v6 = vrot.slane %v8417_v49, 2 }
 0x129   : > { %v706_v19 = vpop.f32.mrf.mxu2 }
 0x12a   : > { %v843_v23 = vpop.f32.mrf.mxu3  ;;  %v896_v12 = vsel %vm848_vm1, %v894_v1, %v895_v6  ;;  %v898_v9 = vsel %vm848_vm1, %v895_v6, %v897_v13  ;;  %v8420_v13 = vunpack.c.l.bf16 %v6245_v7 }
 0x12b   : > { %v6853_v5 = vadd.f32 %v843_v23, %v706_v19  ;;  %v668_v48 = vpop.f32.mrf.mxu0  ;;  %v6867_v33 = vpack.c.bf16 %v898_v9, %v896_v12  ;;  %v8421_v9 = vunpack.c.h.bf16 %v6245_v7 }
 0x12c   : > { %v899_v12 = vrot.slane %v8420_v13, 2 }
 0x12d   : > { %8415 = vst [vmem:[#allocation60_spill] sm:$0xff] %v6853_v5  ;;  %v805_v54 = vpop.f32.mrf.mxu1 }
 0x12e   : > { %v6861_v37 = vadd.f32 %v805_v54, %v668_v48 }
 0x131   : > { %v708_v39 = vpop.f32.mrf.mxu2 }
 0x132   : > { %v845_v19 = vpop.f32.mrf.mxu3 }
 0x133   : > { %v6865_v23 = vadd.f32 %v845_v19, %v708_v39  ;;  %v1435_v5 = vpop.f32.mrf.mxu0  ;;  %v5652_v39 = vld [vmem:[%s8184_s1 + $0x1d0] sm:$0xff]  ;;  %v900_v19 = vrot.slane %v8421_v9, 2 }
 0x134   : > { %2009 = vmatpush.bf16.msra.mxu3 %v5652_v39  ;;  %v5660_v39 = vld [vmem:[%s8184_s1 + $0x210] sm:$0xff] }
 0x135   : > { %8419 = vst [vmem:[#allocation61_spill] sm:$0xff] %v6865_v23  ;;  %v1629_v2 = vpop.f32.mrf.mxu1  ;;  %v8422_v23 = vunpack.c.l.bf16 %v6248_v8  ;;  %v901_v44 = vsel %vm848_vm1, %v899_v12, %v900_v19  ;;  %2203 = vmatpush.bf16.msra.mxu0 %v5660_v39 }
 0x136   : > { %1090 = vmatmul.bf16.gmra.mxu2 %v6845_v10  ;;  %1474 = vmatmul.bf16.gmra.mxu0 %v6236_v4 }
 0x137   : > { %1277 = vmatmul.bf16.gmra.mxu3 %v6174_v43  ;;  %v902_v4 = vrot.slane %v8422_v23, 2 }
 0x138   : > { %1668 = vmatmul.bf16.gmra.mxu1 %v6867_v33 }
 0x139   : > { %v1051_v48 = vpop.f32.mrf.mxu2 }
 0x13a   : > { %v1131_v54 = vadd.f32 %v1051_v48, %v6660_v0  ;;  %v1238_v1 = vpop.f32.mrf.mxu3  ;;  %v903_v0 = vsel %vm848_vm1, %v900_v19, %v902_v4 }
 0x13b   : > { %v1437_v49 = vpop.f32.mrf.mxu0  ;;  %v6894_v9 = vpack.c.bf16 %v903_v0, %v901_v44  ;;  %v8424_v0 = vunpack.c.l.bf16 %v6308_v55 }
 0x13c   : > { %v1318_v6 = vadd.f32 %v1238_v1, %v1131_v54 }
 0x13d   : > { %v1631_v41 = vpop.f32.mrf.mxu1  ;;  %v904_v39 = vrot.slane %v8424_v0, 2 }
 0x13e   : > { %v1515_v43 = vadd.f32 %v1435_v5, %v1318_v6 }
 0x140   : > { %v6886_v10 = vadd.f32 %v1629_v2, %v1515_v43  ;;  %v5680_v43 = vld [vmem:[#allocation2 + $0x70] sm:$0xff] }
 0x141   : > { %v1053_v48 = vpop.f32.mrf.mxu2  ;;  %2801 = vmatpush.bf16.msra.mxu1 %v5680_v43 }
 0x142   : > { %v1132_v54 = vadd.f32 %v1053_v48, %v6678_v40  ;;  %v1240_v1 = vpop.f32.mrf.mxu3  ;;  %v8425_v48 = vunpack.c.h.bf16 %v6308_v55 }
 0x143   : > { %v1440_v13 = vpop.f32.mrf.mxu0 }
 0x144   : > { %v1319_v8 = vadd.f32 %v1240_v1, %v1132_v54 }
 0x145   : > { %v1634_v5 = vpop.f32.mrf.mxu1 }
 0x146   : > { %1095 = vmatmul.bf16.gmra.mxu2 %v6867_v33  ;;  %1479 = vmatmul.bf16.gmra.mxu0 %v6299_v46  ;;  %v1516_v4 = vadd.f32 %v1437_v49, %v1319_v8  ;;  %v905_v49 = vrot.slane %v8425_v48, 2 }
 0x147   : > { %1282 = vmatmul.bf16.gmra.mxu3 %v6245_v7  ;;  %v8426_v7 = vunpack.c.l.bf16 %v6311_v56 }
 0x148   : > { %1673 = vmatmul.bf16.gmra.mxu1 %v6894_v9  ;;  %v6900_v23 = vadd.f32 %v1631_v41, %v1516_v4  ;;  %v906_v8 = vsel %vm848_vm1, %v904_v39, %v905_v49 }
 0x149   : > { %v1056_v40 = vpop.f32.mrf.mxu2  ;;  %v907_v54 = vrot.slane %v8426_v7, 2 }
 0x14a   : > { %8423 = vst [vmem:[#allocation62_spill] sm:$0xff] %v6900_v23  ;;  %v1133_v2 = vadd.f32 %v1056_v40, %v6689_v58  ;;  %v1243_v6 = vpop.f32.mrf.mxu3 }
 0x14b   : > { %v1442_v12 = vpop.f32.mrf.mxu0  ;;  %v908_v58 = vsel %vm848_vm1, %v905_v49, %v907_v54  ;;  %v8427_v54 = vunpack.c.l.bf16 %v6371_v29 }
 0x14c   : > { %v1320_v19 = vadd.f32 %v1243_v6, %v1133_v2  ;;  %v6914_v6 = vpack.c.bf16 %v908_v58, %v906_v8  ;;  %v8428_v8 = vunpack.c.h.bf16 %v6371_v29  ;;  %v8429_v58 = vunpack.c.l.bf16 %v6374_v30 }
 0x14d   : > { %v1636_v44 = vpop.f32.mrf.mxu1 }
 0x14e   : > { %v1517_v1 = vadd.f32 %v1440_v13, %v1320_v19  ;;  %v5643_v13 = vld [vmem:[%s8184_s1 + $0x188] sm:$0xff] }
 0x14f   : > { %1813 = vmatpush.bf16.msra.mxu2 %v5643_v13 }
 0x150   : > { %v6909_v41 = vadd.f32 %v1634_v5, %v1517_v1  ;;  %v5651_v5 = vld [vmem:[%s8184_s1 + $0x1c8] sm:$0xff]  ;;  %v909_v1 = vrot.slane %v8427_v54, 2 }
 0x151   : > { %v1058_v43 = vpop.f32.mrf.mxu2  ;;  %2010 = vmatpush.bf16.msra.mxu3 %v5651_v5 }
 0x152   : > { %v1134_v4 = vadd.f32 %v1058_v43, %v6702_v31  ;;  %v1245_v40 = vpop.f32.mrf.mxu3  ;;  %v912_v43 = vrot.slane %v8429_v58, 2 }
 0x153   : > { %v1445_v2 = vpop.f32.mrf.mxu0 }
 0x154   : > { %v1321_v0 = vadd.f32 %v1245_v40, %v1134_v4 }
 0x155   : > { %v1639_v23 = vpop.f32.mrf.mxu1 }
 0x156   : > { %1100 = vmatmul.bf16.gmra.mxu2 %v6894_v9  ;;  %1484 = vmatmul.bf16.gmra.mxu0 %v6362_v61  ;;  %v1518_v56 = vadd.f32 %v1442_v12, %v1321_v0 }
 0x157   : > { %1287 = vmatmul.bf16.gmra.mxu3 %v6308_v55 }
 0x158   : > { %1678 = vmatmul.bf16.gmra.mxu1 %v6914_v6  ;;  %v6923_v31 = vadd.f32 %v1636_v44, %v1518_v56  ;;  %v910_v44 = vrot.slane %v8428_v8, 2  ;;  %v5659_v56 = vld [vmem:[%s8184_s1 + $0x208] sm:$0xff] }
 0x159   : > { %v1061_v19 = vpop.f32.mrf.mxu2  ;;  %2204 = vmatpush.bf16.msra.mxu0 %v5659_v56 }
 0x15a   : > { %v1135_v39 = vadd.f32 %v1061_v19, %v6710_v63  ;;  %v1248_v48 = vpop.f32.mrf.mxu3  ;;  %v911_v0 = vsel %vm848_vm1, %v909_v1, %v910_v44  ;;  %v913_v63 = vsel %vm848_vm1, %v910_v44, %v912_v43 }
 0x15b   : > { %v1447_v12 = vpop.f32.mrf.mxu0 }
 0x15c   : > { %v1322_v49 = vadd.f32 %v1248_v48, %v1135_v39  ;;  %v6943_v48 = vpack.c.bf16 %v913_v63, %v911_v0  ;;  %v8431_v63 = vunpack.c.h.bf16 %v6434_v18 }
 0x15d   : > { %v1641_v7 = vpop.f32.mrf.mxu1 }
 0x15e   : > { %v1519_v4 = vadd.f32 %v1445_v2, %v1322_v49 }
 0x160   : > { %v6935_v40 = vadd.f32 %v1639_v23, %v1519_v4  ;;  %v5679_v23 = vld [vmem:[#allocation2 + $0x68] sm:$0xff]  ;;  %v8430_v4 = vunpack.c.l.bf16 %v6434_v18 }
 0x161   : > { %v1063_v13 = vpop.f32.mrf.mxu2  ;;  %2802 = vmatpush.bf16.msra.mxu1 %v5679_v23 }
 0x162   : > { %v1136_v5 = vadd.f32 %v1063_v13, %v6730_v51  ;;  %v1250_v19 = vpop.f32.mrf.mxu3  ;;  %v914_v0 = vrot.slane %v8430_v4, 2 }
 0x163   : > { %v1450_v39 = vpop.f32.mrf.mxu0 }
 0x164   : > { %v1323_v30 = vadd.f32 %v1250_v19, %v1136_v5 }
 0x165   : > { %v1644_v2 = vpop.f32.mrf.mxu1 }
 0x166   : > { %1105 = vmatmul.bf16.gmra.mxu2 %v6914_v6  ;;  %1489 = vmatmul.bf16.gmra.mxu0 %v6425_v22  ;;  %v1520_v49 = vadd.f32 %v1447_v12, %v1323_v30  ;;  %v915_v12 = vrot.slane %v8431_v63, 2 }
 0x167   : > { %1292 = vmatmul.bf16.gmra.mxu3 %v6371_v29  ;;  %v8432_v29 = vunpack.c.l.bf16 %v6437_v59 }
 0x168   : > { %1683 = vmatmul.bf16.gmra.mxu1 %v6943_v48  ;;  %v6949_v54 = vadd.f32 %v1641_v7, %v1520_v49  ;;  %v916_v5 = vsel %vm848_vm1, %v914_v0, %v915_v12 }
 0x169   : > { %v1066_v51 = vpop.f32.mrf.mxu2  ;;  %v917_v56 = vrot.slane %v8432_v29, 2  ;;  %v8433_v29 = vunpack.c.l.bf16 %v6500_v14 }
 0x16a   : > { %v1137_v1 = vadd.f32 %v1066_v51, %v6741_v38  ;;  %v1253_v8 = vpop.f32.mrf.mxu3 }
 0x16b   : > { %v1452_v44 = vpop.f32.mrf.mxu0  ;;  %v918_v38 = vsel %vm848_vm1, %v915_v12, %v917_v56  ;;  %v919_v56 = vrot.slane %v8433_v29, 2 }
 0x16c   : > { %v1324_v58 = vadd.f32 %v1253_v8, %v1137_v1  ;;  %v6963_v51 = vpack.c.bf16 %v918_v38, %v916_v5  ;;  %v8435_v5 = vunpack.c.l.bf16 %v6503_v15 }
 0x16d   : > { %v1646_v43 = vpop.f32.mrf.mxu1 }
 0x16e   : > { %v1521_v13 = vadd.f32 %v1450_v39, %v1324_v58  ;;  %v5642_v39 = vld [vmem:[%s8184_s1 + $0x180] sm:$0xff]  ;;  %v922_v38 = vrot.slane %v8435_v5, 2  ;;  %v8437_v5 = vunpack.c.l.bf16 %v6575_v47 }
 0x16f   : > { %1814 = vmatpush.bf16.msra.mxu2 %v5642_v39 }
 0x170   : > { %v6958_v7 = vadd.f32 %v1644_v2, %v1521_v13  ;;  %v5650_v2 = vld [vmem:[%s8184_s1 + $0x1c0] sm:$0xff] }
 0x171   : > { %v1068_v19 = vpop.f32.mrf.mxu2  ;;  %2011 = vmatpush.bf16.msra.mxu3 %v5650_v2 }
 0x172   : > { %v1138_v30 = vadd.f32 %v1068_v19, %v6755_v28  ;;  %v1255_v23 = vpop.f32.mrf.mxu3 }
 0x173   : > { %v1455_v49 = vpop.f32.mrf.mxu0 }
 0x174   : > { %v1325_v1 = vadd.f32 %v1255_v23, %v1138_v30 }
 0x175   : > { %v1649_v8 = vpop.f32.mrf.mxu1 }
 0x176   : > { %1110 = vmatmul.bf16.gmra.mxu2 %v6943_v48  ;;  %1494 = vmatmul.bf16.gmra.mxu0 %v6491_v21  ;;  %v1522_v59 = vadd.f32 %v1452_v44, %v1325_v1  ;;  %v5658_v1 = vld [vmem:[%s8184_s1 + $0x200] sm:$0xff] }
 0x177   : > { %1297 = vmatmul.bf16.gmra.mxu3 %v6434_v18  ;;  %2205 = vmatpush.bf16.msra.mxu0 %v5658_v1 }
 0x178   : > { %1688 = vmatmul.bf16.gmra.mxu1 %v6963_v51  ;;  %v6972_v28 = vadd.f32 %v1646_v43, %v1522_v59  ;;  %v8434_v43 = vunpack.c.h.bf16 %v6500_v14 }
 0x179   : > { %v1071_v58 = vpop.f32.mrf.mxu2 }
 0x17a   : > { %v1139_v4 = vadd.f32 %v1071_v58, %v6763_v60  ;;  %v1258_v0 = vpop.f32.mrf.mxu3  ;;  %v920_v13 = vrot.slane %v8434_v43, 2 }
 0x17b   : > { %v1457_v44 = vpop.f32.mrf.mxu0 }
 0x17c   : > { %v1326_v63 = vadd.f32 %v1258_v0, %v1139_v4  ;;  %v921_v60 = vsel %vm848_vm1, %v919_v56, %v920_v13  ;;  %v923_v23 = vsel %vm848_vm1, %v920_v13, %v922_v38  ;;  %v924_v38 = vrot.slane %v8437_v5, 2  ;;  %v7019_v5 = vld [vmem:[%s6090_s16 + $0xc0] sm:$0xff]  }
 0x17d   : > { %v6978_v12 = vpop.f32.mrf.mxu1  ;;  %v6994_v4 = vpack.c.bf16 %v923_v23, %v921_v60 }
 0x17e   : > { %v1523_v19 = vadd.f32 %v1455_v49, %v1326_v63 }
 0x180   : > { %v6986_v30 = vadd.f32 %v1649_v8, %v1523_v19  ;;  %v5678_v8 = vld [vmem:[#allocation2 + $0x60] sm:$0xff] }
 0x181   : > { %v1073_v59 = vpop.f32.mrf.mxu2  ;;  %2803 = vmatpush.bf16.msra.mxu1 %v5678_v8 }
 0x182   : > { %v1140_v39 = vadd.f32 %v1073_v59, %v6783_v50  ;;  %v1260_v2 = vpop.f32.mrf.mxu3 }
 0x183   : > { %v1460_v58 = vpop.f32.mrf.mxu0 }
 0x184   : > { %v1327_v15 = vadd.f32 %v1260_v2, %v1140_v39 }
 0x185   : > { %v1654_v49 = vpop.f32.mrf.mxu1 }
 0x186   : > { %1115 = vmatmul.bf16.gmra.mxu2 %v6963_v51  ;;  %1499 = vmatmul.bf16.gmra.mxu0 %v6563_v24  ;;  %v6998_v0 = vadd.f32 %v1457_v44, %v1327_v15  ;;  %v8438_v44 = vunpack.c.h.bf16 %v6575_v47 }
 0x187   : > { %1302 = vmatmul.bf16.gmra.mxu3 %v6500_v14  ;;  %v8439_v14 = vunpack.c.l.bf16 %v6578_v16  ;;  %v290_v16 = vld [vmem:[%s6090_s16 + $0xc8] sm:$0x1] }
 0x188   : > { %1693 = vmatmul.bf16.gmra.mxu1 %v6994_v4  ;;  %v925_v19 = vrot.slane %v8438_v44, 2 }
 0x189   : > { %v1076_v50 = vpop.f32.mrf.mxu2  ;;  %v927_v60 = vrot.slane %v8439_v14, 2 }
 0x18a   : > { %v1141_v63 = vadd.f32 %v1076_v50, %v6794_v62  ;;  %v1263_v29 = vpop.f32.mrf.mxu3  ;;  %v926_v62 = vsel %vm848_vm1, %v924_v38, %v925_v19 }
 0x18b   : > { %v1462_v56 = vpop.f32.mrf.mxu0  ;;  %v928_v59 = vsel %vm848_vm1, %v925_v19, %v927_v60 }
 0x18c   : > { %v1328_v43 = vadd.f32 %v1263_v29, %v1141_v63  ;;  %v7016_v50 = vpack.c.bf16 %v928_v59, %v926_v62 }
 0x18d   : > { %v7003_v13 = vpop.f32.mrf.mxu1 }
 0x18e   : > { %8436 = vst [vmem:[#allocation63_spill] sm:$0xff] %v7003_v13  ;;  %v1525_v23 = vadd.f32 %v1460_v58, %v1328_v43  ;;  %v344_v43 = vunpack.c.l.bf16 %v290_v16 }
 0x190   : > { %v7011_v1 = vadd.f32 %v1654_v49, %v1525_v23  ;;  %v5774_v49 = vunpack.c.h.bf16 %v7019_v5  ;;  %v1356_v62 = vrot.slane %v344_v43, 1 }
 0x191   : > { %v1078_v39 = vpop.f32.mrf.mxu2 }
 0x192   : > { %8440 = vst [vmem:[#allocation64_spill] sm:$0xff] %v7011_v1  ;;  %v1142_v2 = vadd.f32 %v1078_v39, %v6808_v17  ;;  %v1265_v15 = vpop.f32.mrf.mxu3  ;;  %v5773_v17 = vunpack.c.l.bf16 %v7019_v5  ;;  %v1354_v23 = vrot.slane %v5774_v49, 1 }
 0x193   : > { %v1465_v8 = vpop.f32.mrf.mxu0 }
 0x194   : > { %v1329_v63 = vadd.f32 %v1265_v15, %v1142_v2  ;;  %v1353_v60 = vrot.slane %v5773_v17, 1  ;;  %v1547_v39 = vrot.slane %v5773_v17, 2  ;;  %v1548_v2 = vrot.slane %v5774_v49, 2 }
 0x195   : > { %v1659_v29 = vpop.f32.mrf.mxu1  ;;  %v1550_v15 = vrot.slane %v344_v43, 2  ;;  %v7037_v16 = vsel %vm428_vm0, %v1354_v23, %v1356_v62 }
 0x196   : > { %1120 = vmatmul.bf16.gmra.mxu2 %v6994_v4  ;;  %1504 = vmatmul.bf16.gmra.mxu0 %v6638_v26  ;;  %v7024_v58 = vadd.f32 %v1462_v56, %v1329_v63  ;;  %v7034_v13 = vsel %vm428_vm0, %v1353_v60, %v1354_v23  ;;  %8443 = vst [vmem:[#allocation67_spill] sm:$0xff] %v7037_v16  ;;  %v5677_v23 = vld [vmem:[#allocation2 + $0x58] sm:$0xff] }
 0x197   : > { %1307 = vmatmul.bf16.gmra.mxu3 %v6575_v47  ;;  %8442 = vst [vmem:[#allocation66_spill] sm:$0xff] %v7034_v13  ;;  %v7046_v17 = vpack.c.bf16 %v7037_v16, %v7034_v13  ;;  %2804 = vmatpush.bf16.msra.mxu1 %v5677_v23  ;;  %v5859_v16 = vld [vmem:[%s6090_s16 + $0x18] sm:$0xff]  }
 0x198   : > { %8441 = vst [vmem:[#allocation65_spill] sm:$0xff] %v7024_v58  ;;  %1698 = vmatmul.bf16.gmra.mxu1 %v7016_v50 }
 0x199   : > { %v1081_v38 = vpop.f32.mrf.mxu2 }
 0x19a   : > { %v1143_v44 = vadd.f32 %v1081_v38, %v6816_v3  ;;  %v1268_v19 = vpop.f32.mrf.mxu3  ;;  %v1549_v3 = vsel %vm848_vm1, %v1547_v39, %v1548_v2  ;;  %v1551_v38 = vsel %vm848_vm1, %v1548_v2, %v1550_v15 }
 0x19b   : > { %v1467_v14 = vpop.f32.mrf.mxu0  ;;  %v7048_v49 = vpack.c.bf16 %v1551_v38, %v1549_v3 }
 0x19c   : > { %v1330_v59 = vadd.f32 %v1268_v19, %v1143_v44 }
 0x19d   : > { %v7031_v56 = vpop.f32.mrf.mxu1 }
 0x19e   : > { %v1527_v63 = vadd.f32 %v1465_v8, %v1330_v59 }
 0x1a0   : > { %v7039_v58 = vadd.f32 %v1659_v29, %v1527_v63 }
 0x1a1   : > { %v1083_v1 = vpop.f32.mrf.mxu2 }
 0x1a2   : > { %v1144_v44 = vadd.f32 %v1083_v1, %v6836_v34  ;;  %v1270_v19 = vpop.f32.mrf.mxu3 }
 0x1a3   : > { %v1470_v8 = vpop.f32.mrf.mxu0 }
 0x1a4   : > { %v1331_v43 = vadd.f32 %v1270_v19, %v1144_v44 }
 0x1a5   : > { %v1664_v60 = vpop.f32.mrf.mxu1 }
 0x1a6   : > { %1125 = vmatmul.bf16.gmra.mxu2 %v7016_v50  ;;  %1509 = vmatmul.bf16.gmra.mxu0 %v7046_v17  ;;  %v7052_v29 = vadd.f32 %v1467_v14, %v1331_v43 }
 0x1a7   : > { %1312 = vmatmul.bf16.gmra.mxu3 %v7019_v5 }
 0x1a8   : > { %1703 = vmatmul.bf16.gmra.mxu1 %v7048_v49 }
 0x1a9   : > { %v1086_v34 = vpop.f32.mrf.mxu2 }
 0x1aa   : > { %v1145_v1 = vadd.f32 %v1086_v34, %v6847_v20  ;;  %v1273_v62 = vpop.f32.mrf.mxu3 }
 0x1ab   : > { %v1472_v59 = vpop.f32.mrf.mxu0 }
 0x1ac   : > { %v1332_v39 = vadd.f32 %v1273_v62, %v1145_v1 }
 0x1ad   : > { %v7057_v2 = vpop.f32.mrf.mxu1 }
 0x1ae   : > { %v1529_v15 = vadd.f32 %v1470_v8, %v1332_v39 }
 0x1b0   : > { %v7059_v63 = vadd.f32 %v1664_v60, %v1529_v15 }
 0x1b1   : > { %v1088_v3 = vpop.f32.mrf.mxu2 }
 0x1b2   : > { %v1146_v14 = vadd.f32 %v1088_v3, %v6861_v37  ;;  %v1275_v38 = vpop.f32.mrf.mxu3 }
 0x1b3   : > { %v1475_v44 = vpop.f32.mrf.mxu0 }
 0x1b4   : > { %v1333_v19 = vadd.f32 %v1275_v38, %v1146_v14  ;;  %v5676_v38 = vld [vmem:[#allocation2 + $0x50] sm:$0xff] }
 0x1b5   : > { %v1669_v43 = vpop.f32.mrf.mxu1  ;;  %2805 = vmatpush.bf16.msra.mxu1 %v5676_v38 }
 0x1b6   : > { %1815 = vmatmul.bf16.vlgmr.msra.gmra.mxu2 %v5859_v16  ;;  %2206 = vmatmul.bf16.vlgmr.msra.gmra.mxu0 %v6687_v25  ;;  %v7064_v20 = vadd.f32 %v1472_v59, %v1333_v19  ;;  %v8445_v19 = vld [vmem:[#allocation46_spill] sm:$0xff] }
 0x1b7   : > { %2012 = vmatmul.bf16.vlgmr.msra.gmra.mxu3 %v6295_v45 }
 0x1b9   : > { %v1091_v23 = vpop.f32.mrf.mxu2 }
 0x1ba   : > { %v1147_v8 = vadd.f32 %v1091_v23, %v6670_v36  ;;  %v1278_v60 = vpop.f32.mrf.mxu3  ;;  %v8444_v36 = vld [vmem:[#allocation25_spill] sm:$0xff] }
 0x1bb   : > { %v1477_v34 = vpop.f32.mrf.mxu0 }
 0x1bc   : > { %v1334_v1 = vadd.f32 %v1278_v60, %v1147_v8 }
 0x1bd   : > { %v7068_v62 = vpop.f32.mrf.mxu1 }
 0x1be   : > { %v1531_v37 = vadd.f32 %v1475_v44, %v1334_v1 }
 0x1c0   : > { %v7070_v39 = vadd.f32 %v1669_v43, %v1531_v37 }
 0x1c1   : > { %v1093_v15 = vpop.f32.mrf.mxu2 }
 0x1c2   : > { %v1148_v16 = vadd.f32 %v1093_v15, %v6685_v42  ;;  %v1280_v3 = vpop.f32.mrf.mxu3  ;;  %v8447_v15 = vld [vmem:[#allocation47_spill] sm:$0xff] }
 0x1c3   : > { %v1480_v25 = vpop.f32.mrf.mxu0 }
 0x1c4   : > { %v1335_v59 = vadd.f32 %v1280_v3, %v1148_v16 }
 0x1c5   : > { %v1674_v14 = vpop.f32.mrf.mxu1 }
 0x1c6   : > { %1820 = vmatmul.bf16.gmra.mxu2 %v6302_v53  ;;  %2211 = vmatmul.bf16.gmra.mxu0 %v6708_v35  ;;  %v7075_v45 = vadd.f32 %v1477_v34, %v1335_v59 }
 0x1c7   : > { %2017 = vmatmul.bf16.gmra.mxu3 %v8444_v36  ;;  %v5860_v36 = vld [vmem:[%s6090_s16 + $0x30] sm:$0xff]  }
 0x1c9   : > { %v1096_v44 = vpop.f32.mrf.mxu2 }
 0x1ca   : > { %v1149_v43 = vadd.f32 %v1096_v44, %v8445_v19  ;;  %v1283_v23 = vpop.f32.mrf.mxu3  ;;  %v8448_v44 = vld [vmem:[#allocation30_spill] sm:$0xff] }
 0x1cb   : > { %v1482_v42 = vpop.f32.mrf.mxu0 }
 0x1cc   : > { %v1336_v8 = vadd.f32 %v1283_v23, %v1149_v43  ;;  %v8449_v43 = vld [vmem:[#allocation48_spill] sm:$0xff] }
 0x1cd   : > { %v7079_v60 = vpop.f32.mrf.mxu1 }
 0x1ce   : > { %8446 = vst [vmem:[#allocation25_spill] sm:$0xff] %v7079_v60  ;;  %v1533_v1 = vadd.f32 %v1480_v25, %v1336_v8  ;;  %v5675_v60 = vld [vmem:[#allocation2 + $0x48] sm:$0xff] }
 0x1cf   : > { %2806 = vmatpush.bf16.msra.mxu1 %v5675_v60 }
 0x1d0   : > { %v7081_v37 = vadd.f32 %v1674_v14, %v1533_v1 }
 0x1d1   : > { %v1098_v53 = vpop.f32.mrf.mxu2 }
 0x1d2   : > { %v1150_v35 = vadd.f32 %v1098_v53, %v8447_v15  ;;  %v1285_v34 = vpop.f32.mrf.mxu3 }
 0x1d3   : > { %v1485_v16 = vpop.f32.mrf.mxu0 }
 0x1d4   : > { %v1337_v3 = vadd.f32 %v1285_v34, %v1150_v35  ;;  %v8451_v34 = vld [vmem:[#allocation49_spill] sm:$0xff] }
 0x1d5   : > { %v1679_v59 = vpop.f32.mrf.mxu1 }
 0x1d6   : > { %1825 = vmatmul.bf16.gmra.mxu2 %v5860_v36  ;;  %2216 = vmatmul.bf16.gmra.mxu0 %v6739_v11  ;;  %v7086_v38 = vadd.f32 %v1482_v42, %v1337_v3 }
 0x1d7   : > { %2022 = vmatmul.bf16.gmra.mxu3 %v8448_v44  ;;  %v8452_v44 = vld [vmem:[#allocation52_spill] sm:$0xff] }
 0x1d9   : > { %v1101_v19 = vpop.f32.mrf.mxu2 }
 0x1da   : > { %v1151_v25 = vadd.f32 %v1101_v19, %v8449_v43  ;;  %v1288_v14 = vpop.f32.mrf.mxu3  ;;  %v8454_v43 = vld [vmem:[#allocation35_spill] sm:$0xff] }
 0x1db   : > { %v1487_v23 = vpop.f32.mrf.mxu0 }
 0x1dc   : > { %v1338_v8 = vadd.f32 %v1288_v14, %v1151_v25 }
 0x1dd   : > { %v7090_v1 = vpop.f32.mrf.mxu1 }
 0x1de   : > { %8450 = vst [vmem:[#allocation46_spill] sm:$0xff] %v7090_v1  ;;  %v1535_v53 = vadd.f32 %v1485_v16, %v1338_v8 }
 0x1e0   : > { %v7092_v15 = vadd.f32 %v1679_v59, %v1535_v53  ;;  %v8455_v59 = vld [vmem:[#allocation50_spill] sm:$0xff] }
 0x1e1   : > { %v1103_v35 = vpop.f32.mrf.mxu2 }
 0x1e2   : > { %v1152_v36 = vadd.f32 %v1103_v35, %v8451_v34  ;;  %v1290_v13 = vpop.f32.mrf.mxu3 }
 0x1e3   : > { %v1490_v11 = vpop.f32.mrf.mxu0 }
 0x1e4   : > { %v1339_v42 = vadd.f32 %v1290_v13, %v1152_v36  ;;  %v8457_v36 = vld [vmem:[#allocation51_spill] sm:$0xff] }
 0x1e5   : > { %v1684_v3 = vpop.f32.mrf.mxu1 }
 0x1e6   : > { %1830 = vmatmul.bf16.gmra.mxu2 %v6428_v52  ;;  %2221 = vmatmul.bf16.gmra.mxu0 %v8452_v44  ;;  %v7097_v19 = vadd.f32 %v1487_v23, %v1339_v42 }
 0x1e7   : > { %2027 = vmatmul.bf16.gmra.mxu3 %v8454_v43 }
 0x1e8   : > { %8453 = vst [vmem:[#allocation47_spill] sm:$0xff] %v7097_v19  ;;  %v5861_v19 = vld [vmem:[%s6090_s16 + $0x48] sm:$0xff]  }
 0x1e9   : > { %v1106_v16 = vpop.f32.mrf.mxu2 }
 0x1ea   : > { %v1153_v25 = vadd.f32 %v1106_v16, %v8455_v59  ;;  %v1293_v14 = vpop.f32.mrf.mxu3  ;;  %v8459_v16 = vld [vmem:[#allocation40_spill] sm:$0xff] }
 0x1eb   : > { %v1492_v8 = vpop.f32.mrf.mxu0 }
 0x1ec   : > { %v1340_v53 = vadd.f32 %v1293_v14, %v1153_v25  ;;  %v8460_v25 = vld [vmem:[#allocation53_spill] sm:$0xff] }
 0x1ed   : > { %v7101_v35 = vpop.f32.mrf.mxu1 }
 0x1ee   : > { %8456 = vst [vmem:[#allocation30_spill] sm:$0xff] %v7101_v35  ;;  %v1537_v13 = vadd.f32 %v1490_v11, %v1340_v53 }
 0x1f0   : > { %v7103_v34 = vadd.f32 %v1684_v3, %v1537_v13 }
 0x1f1   : > { %v1108_v52 = vpop.f32.mrf.mxu2 }
 0x1f2   : > { %v1154_v44 = vadd.f32 %v1108_v52, %v8457_v36  ;;  %v1295_v23 = vpop.f32.mrf.mxu3 }
 0x1f3   : > { %v1495_v42 = vpop.f32.mrf.mxu0 }
 0x1f4   : > { %v1341_v1 = vadd.f32 %v1295_v23, %v1154_v44  ;;  %v8462_v23 = vld [vmem:[#allocation54_spill] sm:$0xff] }
 0x1f5   : > { %v1689_v43 = vpop.f32.mrf.mxu1 }
 0x1f6   : > { %1835 = vmatmul.bf16.gmra.mxu2 %v5861_v19  ;;  %2226 = vmatmul.bf16.gmra.mxu0 %v6792_v57  ;;  %v7108_v60 = vadd.f32 %v1492_v8, %v1341_v1  ;;  %v5674_v8 = vld [vmem:[#allocation2 + $0x40] sm:$0xff] }
 0x1f7   : > { %2032 = vmatmul.bf16.gmra.mxu3 %v8459_v16  ;;  %2807 = vmatpush.bf16.msra.mxu1 %v5674_v8  ;;  %v8468_v8 = vld [vmem:[#allocation59_spill] sm:$0xff] }
 0x1f8   : > { %8458 = vst [vmem:[#allocation48_spill] sm:$0xff] %v7108_v60 }
 0x1f9   : > { %v1111_v59 = vpop.f32.mrf.mxu2 }
 0x1fa   : > { %v1155_v11 = vadd.f32 %v1111_v59, %v8460_v25  ;;  %v1298_v3 = vpop.f32.mrf.mxu3  ;;  %v8463_v59 = vld [vmem:[#allocation45_spill] sm:$0xff] }
 0x1fb   : > { %v1497_v14 = vpop.f32.mrf.mxu0 }
 0x1fc   : > { %v1342_v53 = vadd.f32 %v1298_v3, %v1155_v11 }
 0x1fd   : > { %v7112_v13 = vpop.f32.mrf.mxu1 }
 0x1fe   : > { %8461 = vst [vmem:[#allocation49_spill] sm:$0xff] %v7112_v13  ;;  %v1539_v52 = vadd.f32 %v1495_v42, %v1342_v53  ;;  %v5862_v13 = vld [vmem:[%s6090_s16 + $0x60] sm:$0xff]  }
 0x200   : > { %v7114_v36 = vadd.f32 %v1689_v43, %v1539_v52  ;;  %v8464_v43 = vld [vmem:[#allocation55_spill] sm:$0xff] }
 0x201   : > { %v1113_v44 = vpop.f32.mrf.mxu2 }
 0x202   : > { %v1156_v19 = vadd.f32 %v1113_v44, %v8462_v23  ;;  %v1300_v35 = vpop.f32.mrf.mxu3  ;;  %v8467_v23 = vld [vmem:[#allocation56_spill] sm:$0xff] }
 0x203   : > { %v1500_v57 = vpop.f32.mrf.mxu0 }
 0x204   : > { %v1343_v1 = vadd.f32 %v1300_v35, %v1156_v19 }
 0x205   : > { %v1694_v60 = vpop.f32.mrf.mxu1 }
 0x206   : > { %1840 = vmatmul.bf16.gmra.mxu2 %v6569_v27  ;;  %2231 = vmatmul.bf16.gmra.mxu0 %v6814_v32  ;;  %v7119_v16 = vadd.f32 %v1497_v14, %v1343_v1 }
 0x207   : > { %2037 = vmatmul.bf16.gmra.mxu3 %v8463_v59 }
 0x209   : > { %v1116_v42 = vpop.f32.mrf.mxu2 }
 0x20a   : > { %v1157_v25 = vadd.f32 %v1116_v42, %v8464_v43  ;;  %v1303_v11 = vpop.f32.mrf.mxu3  ;;  %v8470_v42 = vld [vmem:[#allocation10_spill] sm:$0xff]  ;;  %v5673_v43 = vld [vmem:[#allocation2 + $0x38] sm:$0xff] }
 0x20b   : > { %v1502_v3 = vpop.f32.mrf.mxu0  ;;  %2937 = vmatpush.bf16.msrb.mxu2 %v5673_v43 }
 0x20c   : > { %v1344_v53 = vadd.f32 %v1303_v11, %v1157_v25  ;;  %v8266_v11 = vmov 0.0  }
 0x20d   : > { %v7123_v35 = vpop.f32.mrf.mxu1 }
 0x20e   : > { %v1541_v52 = vadd.f32 %v1500_v57, %v1344_v53  ;;  %8465 = vst [vmem:[#allocation52_spill] sm:$0xff] %v7123_v35  ;;  %v8471_v53 = vld [vmem:[#allocation57_spill] sm:$0xff] }
 0x210   : > { %v7125_v44 = vadd.f32 %v1694_v60, %v1541_v52  ;;  %v2611_v60 = vrot.slane %v8266_v11, 1 }
 0x211   : > { %v1118_v27 = vpop.f32.mrf.mxu2 }
 0x212   : > { %8466 = vst [vmem:[#allocation35_spill] sm:$0xff] %v7125_v44  ;;  %v1158_v32 = vadd.f32 %v1118_v27, %v8467_v23  ;;  %v1305_v14 = vpop.f32.mrf.mxu3 }
 0x213   : > { %v1505_v19 = vpop.f32.mrf.mxu0 }
 0x214   : > { %v1345_v1 = vadd.f32 %v1305_v14, %v1158_v32  ;;  %v7135_v32 = vpack.c.bf16 %v2611_v60, %v2611_v60  ;;  %v5689_v60 = vld [vmem:[#allocation2 + $0xb8] sm:$0xff] }
 0x215   : > { %v1699_v25 = vpop.f32.mrf.mxu1  ;;  %3215 = vmatpush.bf16.msrb.mxu3 %v5689_v60 }
 0x216   : > { %1845 = vmatmul.bf16.gmra.mxu2 %v5862_v13  ;;  %2236 = vmatmul.bf16.gmra.mxu0 %v8468_v8  ;;  %v7130_v59 = vadd.f32 %v1502_v3, %v1345_v1  ;;  %8472 = vst [vmem:[#allocation51_spill] sm:$0xff] %v7135_v32  ;;  %v8473_v8 = vld [vmem:[#allocation58_spill] sm:$0xff] }
 0x217   : > { %2042 = vmatmul.bf16.gmra.mxu3 %v8470_v42  ;;  %2808 = vmatmul.bf16.vlgmr.msra.gmra.mxu1 %v7135_v32 }
 0x218   : > { %8469 = vst [vmem:[#allocation50_spill] sm:$0xff] %v7130_v59 }
 0x219   : > { %v1121_v57 = vpop.f32.mrf.mxu2 }
 0x21a   : > { %v1159_v52 = vadd.f32 %v1121_v57, %v8471_v53  ;;  %v1308_v27 = vpop.f32.mrf.mxu3  ;;  %v8475_v57 = vld [vmem:[#allocation11_spill] sm:$0xff]  ;;  %v8476_v53 = vld [vmem:[#allocation16_spill] sm:$0xff] }
 0x21b   : > { %v1507_v23 = vpop.f32.mrf.mxu0 }
 0x21c   : > { %v1346_v13 = vadd.f32 %v1308_v27, %v1159_v52 }
 0x21d   : > { %v7141_v44 = vpop.f32.mrf.mxu1 }
 0x21e   : > { %v1543_v3 = vadd.f32 %v1505_v19, %v1346_v13  ;;  %8474 = vst [vmem:[#allocation40_spill] sm:$0xff] %v7141_v44  ;;  %v5863_v44 = vld [vmem:[%s6090_s16 + $0x78] sm:$0xff]  }
 0x220   : > { %v7138_v14 = vadd.f32 %v1699_v25, %v1543_v3  ;;  %v8477_v25 = vld [vmem:[#allocation60_spill] sm:$0xff] }
 0x221   : > { %v1123_v1 = vpop.f32.mrf.mxu2 }
 0x222   : > { %v1160_v42 = vadd.f32 %v1123_v1, %v8473_v8  ;;  %v1310_v35 = vpop.f32.mrf.mxu3 }
 0x223   : > { %v1510_v59 = vpop.f32.mrf.mxu0 }
 0x224   : > { %v1347_v11 = vadd.f32 %v1310_v35, %v1160_v42  ;;  %v5697_v35 = vld [vmem:[#allocation2 + $0xf8] sm:$0xff] }
 0x225   : > { %v1704_v1 = vpop.f32.mrf.mxu1  ;;  %v5705_v42 = vld [vmem:[#allocation2 + $0x138] sm:$0xff]  ;;  %3402 = vmatpush.bf16.msrb.mxu0 %v5697_v35  ;;  %v5672_v35 = vld [vmem:[#allocation2 + $0x30] sm:$0xff] }
 0x226   : > { %1850 = vmatmul.bf16.gmra.mxu2 %v8475_v57  ;;  %2241 = vmatmul.bf16.gmra.mxu0 %v6867_v33  ;;  %v7145_v43 = vadd.f32 %v1507_v23, %v1347_v11  ;;  %v8478_v11 = vld [vmem:[#allocation61_spill] sm:$0xff] }
 0x227   : > { %2047 = vmatmul.bf16.gmra.mxu3 %v8476_v53  ;;  %3598 = vmatpush.bf16.msrb.mxu1 %v5705_v42 }
 0x228   : > { %2938 = vmatpush.bf16.msrb.mxu2 %v5672_v35 }
 0x229   : > { %v1126_v19 = vpop.f32.mrf.mxu2 }
 0x22a   : > { %v1161_v52 = vadd.f32 %v1126_v19, %v8477_v25  ;;  %v1313_v27 = vpop.f32.mrf.mxu3 }
 0x22b   : > { %v1512_v13 = vpop.f32.mrf.mxu0 }
 0x22c   : > { %v1348_v3 = vadd.f32 %v1313_v27, %v1161_v52 }
 0x22e   : > { %v1545_v8 = vadd.f32 %v1510_v59, %v1348_v3 }
 0x230   : > { %v7149_v57 = vadd.f32 %v1704_v1, %v1545_v8  ;;  %v7161_v1 = vld [vmem:[%s8185_s2] ss:$0 sm:$0xff] }
 0x231   : > { %v1128_v33 = vpop.f32.mrf.mxu2 }
 0x232   : > { %v1162_v23 = vadd.f32 %v1128_v33, %v8478_v11  ;;  %v1315_v53 = vpop.f32.mrf.mxu3 }
 0x233   : > { %v2207_v60 = vpop.f32.mrf.mxu0 }
 0x234   : > { %v1349_v32 = vadd.f32 %v1315_v53, %v1162_v23  ;;  %v5688_v53 = vld [vmem:[#allocation2 + $0xb0] sm:$0xff] }
 0x235   : > { %3216 = vmatpush.bf16.msrb.mxu3 %v5688_v53 }
 0x236   : > { %1855 = vmatmul.bf16.gmra.mxu2 %v5863_v44  ;;  %2246 = vmatmul.bf16.gmra.mxu0 %v6894_v9  ;;  %v7154_v19 = vadd.f32 %v1512_v13, %v1349_v32  ;;  %v8479_v13 = vld [vmem:[#allocation62_spill] sm:$0xff] }
 0x237   : > { %2052 = vmatmul.bf16.gmra.mxu3 %v6299_v46 }
 0x239   : > { %v1816_v59 = vpop.f32.mrf.mxu2 }
 0x23a   : > { %v1896_v25 = vadd.f32 %v1816_v59, %v6886_v10  ;;  %v2013_v52 = vpop.f32.mrf.mxu3 }
 0x23b   : > { %v2209_v27 = vpop.f32.mrf.mxu0 }
 0x23c   : > { %v2093_v3 = vadd.f32 %v2013_v52, %v1896_v25 }
 0x23e   : > { %v2287_v8 = vadd.f32 %v2207_v60, %v2093_v3 }
 0x240   : > { %v2323_v44 = vadd.f32 %v7161_v1, %v2287_v8 }
 0x241   : > { %v1818_v9 = vpop.f32.mrf.mxu2 }
 0x242   : > { %v2355_v32 = vmax.f32 %v2323_v44, 0.0  ;;  %v1897_v46 = vadd.f32 %v1818_v9, %v8479_v13  ;;  %v2015_v42 = vpop.f32.mrf.mxu3  ;;  %v5704_v13 = vld [vmem:[#allocation2 + $0x130] sm:$0xff] }
 0x243   : > { %v2212_v33 = vpop.f32.mrf.mxu0  ;;  %3599 = vmatpush.bf16.msrb.mxu1 %v5704_v13  ;;  %v5864_v13 = vld [vmem:[%s6090_s16 + $0x90] sm:$0xff]  }
 0x244   : > { %v2094_v10 = vadd.f32 %v2015_v42, %v1897_v46  ;;  %v2420_v11 = vrot.slane %v2355_v32, 7 }
 0x246   : > { %v2288_v23 = vadd.f32 %v2209_v27, %v2094_v10  ;;  %1860 = vmatmul.bf16.gmra.mxu2 %v6308_v55  ;;  %2251 = vmatmul.bf16.gmra.mxu0 %v6914_v6  ;;  %v2516_v25 = vsel %vm2419_vm2, 0.0, %v2420_v11 }
 0x247   : > { %2057 = vmatmul.bf16.gmra.mxu3 %v6362_v61  ;;  %v2613_v55 = vrot.slane %v2516_v25, 1  ;;  %v5696_v61 = vld [vmem:[#allocation2 + $0xf0] sm:$0xff]  ;;  %v3028_v46 = vrot.slane %v2516_v25, 2 }
 0x248   : > { %v2324_v60 = vadd.f32 %v7161_v1, %v2288_v23  ;;  %3403 = vmatpush.bf16.msrb.mxu0 %v5696_v61 }
 0x249   : > { %v1821_v59 = vpop.f32.mrf.mxu2 }
 0x24a   : > { %v2356_v52 = vmax.f32 %v2324_v60, 0.0  ;;  %v1898_v3 = vadd.f32 %v1821_v59, %v6909_v41  ;;  %v2018_v8 = vpop.f32.mrf.mxu3 }
 0x24b   : > { %v2214_v35 = vpop.f32.mrf.mxu0 }
 0x24c   : > { %v2421_v27 = vrot.slane %v2356_v52, 7  ;;  %v2095_v44 = vadd.f32 %v2018_v8, %v1898_v3 }
 0x24e   : > { %v2422_v6 = vsel %vm2419_vm2, %v2420_v11, %v2421_v27  ;;  %v2532_v9 = vsel %vm2419_vm2, %v2421_v27, 0.0  ;;  %v2289_v32 = vadd.f32 %v2212_v33, %v2095_v44 }
 0x24f   : > { %v7173_v42 = vpack.c.bf16 %v2422_v6, %v2420_v11  ;;  %v2614_v10 = vrot.slane %v2422_v6, 1  ;;  %v2616_v23 = vrot.slane %v2532_v9, 1  ;;  %v3029_v53 = vrot.slane %v2422_v6, 2 }
 0x250   : > { %v2325_v41 = vadd.f32 %v7161_v1, %v2289_v32  ;;  %v3031_v60 = vrot.slane %v2532_v9, 2 }
 0x251   : > { %v1823_v59 = vpop.f32.mrf.mxu2  ;;  %v2615_v52 = vsel %vm428_vm0, %v2613_v55, %v2614_v10  ;;  %v2617_v3 = vsel %vm428_vm0, %v2614_v10, %v2616_v23  ;;  %v3030_v33 = vsel %vm848_vm1, %v3028_v46, %v3029_v53 }
 0x252   : > { %v2357_v8 = vmax.f32 %v2325_v41, 0.0  ;;  %v1899_v11 = vadd.f32 %v1823_v59, %v6923_v31  ;;  %v2020_v25 = vpop.f32.mrf.mxu3  ;;  %v7180_v27 = vpack.c.bf16 %v2617_v3, %v2615_v52  ;;  %v3032_v44 = vsel %vm848_vm1, %v3029_v53, %v3031_v60 }
 0x253   : > { %v2217_v6 = vpop.f32.mrf.mxu0  ;;  %v7183_v32 = vpack.c.bf16 %v3032_v44, %v3030_v33 }
 0x254   : > { %v2096_v9 = vadd.f32 %v2020_v25, %v1899_v11  ;;  %2813 = vmatmul.bf16.gmra.mxu1 %v7180_v27  ;;  %v2423_v61 = vrot.slane %v2357_v8, 7  ;;  %v5671_v8 = vld [vmem:[#allocation2 + $0x28] sm:$0xff] }
 0x255   : > { %8480 = vst [vmem:[#allocation53_spill] sm:$0xff] %v7183_v32  ;;  %2939 = vmatpush.bf16.msrb.mxu2 %v5671_v8 }
 0x256   : > { %v2290_v55 = vadd.f32 %v2214_v35, %v2096_v9  ;;  %1865 = vmatmul.bf16.gmra.mxu2 %v5864_v13  ;;  %2256 = vmatmul.bf16.gmra.mxu0 %v6943_v48  ;;  %v2517_v10 = vsel %vm2419_vm2, 0.0, %v2423_v61 }
 0x257   : > { %2062 = vmatmul.bf16.gmra.mxu3 %v6425_v22  ;;  %v2618_v3 = vrot.slane %v2517_v10, 1  ;;  %v3033_v22 = vrot.slane %v2517_v10, 2 }
 0x258   : > { %v2326_v31 = vadd.f32 %v7161_v1, %v2290_v55 }
 0x259   : > { %v1826_v46 = vpop.f32.mrf.mxu2 }
 0x25a   : > { %v2358_v23 = vmax.f32 %v2326_v31, 0.0  ;;  %v1900_v53 = vadd.f32 %v1826_v46, %v6935_v40  ;;  %v2023_v41 = vpop.f32.mrf.mxu3 }
 0x25b   : > { %v2219_v60 = vpop.f32.mrf.mxu0 }
 0x25c   : > { %v2424_v59 = vrot.slane %v2358_v23, 7  ;;  %v2097_v52 = vadd.f32 %v2023_v41, %v1900_v53 }
 0x25e   : > { %v2425_v35 = vsel %vm2419_vm2, %v2423_v61, %v2424_v59  ;;  %v2533_v33 = vsel %vm2419_vm2, %v2424_v59, 0.0  ;;  %v2291_v48 = vadd.f32 %v2217_v6, %v2097_v52 }
 0x25f   : > { %v2619_v11 = vrot.slane %v2425_v35, 1  ;;  %v2621_v25 = vrot.slane %v2533_v33, 1  ;;  %v7194_v44 = vpack.c.bf16 %v2425_v35, %v2423_v61  ;;  %v3034_v9 = vrot.slane %v2425_v35, 2 }
 0x260   : > { %v2327_v55 = vadd.f32 %v7161_v1, %v2291_v48  ;;  %v3036_v40 = vrot.slane %v2533_v33, 2  ;;  %v5687_v48 = vld [vmem:[#allocation2 + $0xa8] sm:$0xff] }
 0x261   : > { %8481 = vst [vmem:[#allocation54_spill] sm:$0xff] %v7194_v44  ;;  %v1828_v13 = vpop.f32.mrf.mxu2  ;;  %v2620_v31 = vsel %vm428_vm0, %v2618_v3, %v2619_v11  ;;  %v2622_v46 = vsel %vm428_vm0, %v2619_v11, %v2621_v25  ;;  %v3035_v23 = vsel %vm848_vm1, %v3033_v22, %v3034_v9  ;;  %3217 = vmatpush.bf16.msrb.mxu3 %v5687_v48 }
 0x262   : > { %v2359_v53 = vmax.f32 %v2327_v55, 0.0  ;;  %v1901_v6 = vadd.f32 %v1828_v13, %v6949_v54  ;;  %v2025_v10 = vpop.f32.mrf.mxu3  ;;  %v7201_v41 = vpack.c.bf16 %v2622_v46, %v2620_v31  ;;  %v3037_v61 = vsel %vm848_vm1, %v3034_v9, %v3036_v40  ;;  %v5703_v46 = vld [vmem:[#allocation2 + $0x128] sm:$0xff] }
 0x263   : > { %v2222_v59 = vpop.f32.mrf.mxu0  ;;  %v7204_v52 = vpack.c.bf16 %v3037_v61, %v3035_v23  ;;  %3600 = vmatpush.bf16.msrb.mxu1 %v5703_v46 }
 0x264   : > { %v2098_v35 = vadd.f32 %v2025_v10, %v1901_v6  ;;  %2818 = vmatmul.bf16.gmra.mxu1 %v7201_v41  ;;  %v2426_v33 = vrot.slane %v2359_v53, 7 }
 0x265   : > { %8482 = vst [vmem:[#allocation45_spill] sm:$0xff] %v7204_v52 }
 0x266   : > { %v2292_v3 = vadd.f32 %v2219_v60, %v2098_v35  ;;  %1870 = vmatmul.bf16.gmra.mxu2 %v6434_v18  ;;  %2261 = vmatmul.bf16.gmra.mxu0 %v6963_v51  ;;  %v2518_v22 = vsel %vm2419_vm2, 0.0, %v2426_v33 }
 0x267   : > { %2067 = vmatmul.bf16.gmra.mxu3 %v6491_v21  ;;  %v2623_v13 = vrot.slane %v2518_v22, 1  ;;  %v5695_v21 = vld [vmem:[#allocation2 + $0xe8] sm:$0xff]  ;;  %v3038_v23 = vrot.slane %v2518_v22, 2 }
 0x268   : > { %v2328_v54 = vadd.f32 %v7161_v1, %v2292_v3  ;;  %3404 = vmatpush.bf16.msrb.mxu0 %v5695_v21 }
 0x269   : > { %v1831_v8 = vpop.f32.mrf.mxu2 }
 0x26a   : > { %v2360_v11 = vmax.f32 %v2328_v54, 0.0  ;;  %v1902_v25 = vadd.f32 %v1831_v8, %v6958_v7  ;;  %v2028_v9 = vpop.f32.mrf.mxu3 }
 0x26b   : > { %v2224_v55 = vpop.f32.mrf.mxu0 }
 0x26c   : > { %v2427_v40 = vrot.slane %v2360_v11, 7  ;;  %v2099_v60 = vadd.f32 %v2028_v9, %v1902_v25 }
 0x26e   : > { %v2428_v18 = vsel %vm2419_vm2, %v2426_v33, %v2427_v40  ;;  %v2534_v51 = vsel %vm2419_vm2, %v2427_v40, 0.0  ;;  %v2293_v31 = vadd.f32 %v2222_v59, %v2099_v60 }
 0x26f   : > { %v2624_v53 = vrot.slane %v2428_v18, 1  ;;  %v2626_v6 = vrot.slane %v2534_v51, 1  ;;  %v7215_v10 = vpack.c.bf16 %v2428_v18, %v2426_v33  ;;  %v3039_v61 = vrot.slane %v2428_v18, 2 }
 0x270   : > { %v2329_v7 = vadd.f32 %v7161_v1, %v2293_v31  ;;  %v3041_v35 = vrot.slane %v2534_v51, 2  ;;  %v5865_v51 = vld [vmem:[%s6090_s16 + $0xa8] sm:$0xff]  }
 0x271   : > { %8483 = vst [vmem:[#allocation55_spill] sm:$0xff] %v7215_v10  ;;  %v1833_v3 = vpop.f32.mrf.mxu2  ;;  %v2625_v48 = vsel %vm428_vm0, %v2623_v13, %v2624_v53  ;;  %v2627_v54 = vsel %vm428_vm0, %v2624_v53, %v2626_v6  ;;  %v3040_v59 = vsel %vm848_vm1, %v3038_v23, %v3039_v61 }
 0x272   : > { %v2361_v8 = vmax.f32 %v2329_v7, 0.0  ;;  %v1903_v22 = vadd.f32 %v1833_v3, %v6972_v28  ;;  %v2030_v11 = vpop.f32.mrf.mxu3  ;;  %v7222_v33 = vpack.c.bf16 %v2627_v54, %v2625_v48  ;;  %v3042_v25 = vsel %vm848_vm1, %v3039_v61, %v3041_v35  ;;  %v5670_v48 = vld [vmem:[#allocation2 + $0x20] sm:$0xff] }
 0x273   : > { %v2227_v9 = vpop.f32.mrf.mxu0  ;;  %v7225_v40 = vpack.c.bf16 %v3042_v25, %v3040_v59  ;;  %2940 = vmatpush.bf16.msrb.mxu2 %v5670_v48 }
 0x274   : > { %v2100_v60 = vadd.f32 %v2030_v11, %v1903_v22  ;;  %2823 = vmatmul.bf16.gmra.mxu1 %v7222_v33  ;;  %v2429_v18 = vrot.slane %v2361_v8, 7 }
 0x275   : > { %8484 = vst [vmem:[#allocation56_spill] sm:$0xff] %v7225_v40 }
 0x276   : > { %v2294_v13 = vadd.f32 %v2224_v55, %v2100_v60  ;;  %1875 = vmatmul.bf16.gmra.mxu2 %v5865_v51  ;;  %2266 = vmatmul.bf16.gmra.mxu0 %v6994_v4  ;;  %v2519_v21 = vsel %vm2419_vm2, 0.0, %v2429_v18 }
 0x277   : > { %2072 = vmatmul.bf16.gmra.mxu3 %v6563_v24  ;;  %v2628_v35 = vrot.slane %v2519_v21, 1  ;;  %v3043_v24 = vrot.slane %v2519_v21, 2 }
 0x278   : > { %v2330_v28 = vadd.f32 %v7161_v1, %v2294_v13 }
 0x279   : > { %v1836_v31 = vpop.f32.mrf.mxu2 }
 0x27a   : > { %v2362_v46 = vmax.f32 %v2330_v28, 0.0  ;;  %v1904_v23 = vadd.f32 %v1836_v31, %v6986_v30  ;;  %v2033_v53 = vpop.f32.mrf.mxu3  ;;  %v1718_v30 = vadd.f32 %v6978_v12, %v6998_v0 }
 0x27b   : > { %v2229_v6 = vpop.f32.mrf.mxu0 }
 0x27c   : > { %v2430_v61 = vrot.slane %v2362_v46, 7  ;;  %v2101_v7 = vadd.f32 %v2033_v53, %v1904_v23  ;;  %v5686_v46 = vld [vmem:[#allocation2 + $0xa0] sm:$0xff] }
 0x27d   : > { %v5694_v23 = vld [vmem:[#allocation2 + $0xe0] sm:$0xff]  ;;  %3218 = vmatpush.bf16.msrb.mxu3 %v5686_v46  ;;  %v5683_v46 = vld [vmem:[#allocation2 + $0x88] sm:$0xff] }
 0x27e   : > { %v2431_v55 = vsel %vm2419_vm2, %v2429_v18, %v2430_v61  ;;  %v2535_v3 = vsel %vm2419_vm2, %v2430_v61, 0.0  ;;  %v2295_v4 = vadd.f32 %v2227_v9, %v2101_v7  ;;  %3405 = vmatpush.bf16.msrb.mxu0 %v5694_v23 }
 0x27f   : > { %v2629_v54 = vrot.slane %v2431_v55, 1  ;;  %v2631_v59 = vrot.slane %v2535_v3, 1  ;;  %v7236_v8 = vpack.c.bf16 %v2431_v55, %v2429_v18  ;;  %v3044_v22 = vrot.slane %v2431_v55, 2  ;;  %v5685_v55 = vld [vmem:[#allocation2 + $0x98] sm:$0xff] }
 0x280   : > { %v2331_v11 = vadd.f32 %v7161_v1, %v2295_v4  ;;  %v3046_v51 = vrot.slane %v2535_v3, 2  ;;  %v5693_v3 = vld [vmem:[#allocation2 + $0xd8] sm:$0xff] }
 0x281   : > { %8485 = vst [vmem:[#allocation59_spill] sm:$0xff] %v7236_v8  ;;  %v1838_v25 = vpop.f32.mrf.mxu2  ;;  %v2630_v60 = vsel %vm428_vm0, %v2628_v35, %v2629_v54  ;;  %v2632_v13 = vsel %vm428_vm0, %v2629_v54, %v2631_v59  ;;  %v3045_v9 = vsel %vm848_vm1, %v3043_v24, %v3044_v22  ;;  %v5669_v35 = vld [vmem:[#allocation2 + $0x18] sm:$0xff]  ;;  %3219 = vmatpush.bf16.msrb.mxu3 %v5685_v55  ;;  %v8487_v59 = vld [vmem:[#allocation64_spill] sm:$0xff] }
 0x282   : > { %v2363_v28 = vmax.f32 %v2331_v11, 0.0  ;;  %v1905_v31 = vadd.f32 %v1838_v25, %v1718_v30  ;;  %v2035_v21 = vpop.f32.mrf.mxu3  ;;  %v7244_v18 = vpack.c.bf16 %v2632_v13, %v2630_v60  ;;  %v3047_v0 = vsel %vm848_vm1, %v3044_v22, %v3046_v51  ;;  %2941 = vmatpush.bf16.msrb.mxu2 %v5669_v35  ;;  %3406 = vmatpush.bf16.msrb.mxu0 %v5693_v3  ;;  %v5684_v30 = vld [vmem:[#allocation2 + $0x90] sm:$0xff]  ;;  %v8489_v3 = vld [vmem:[#allocation65_spill] sm:$0xff] }
 0x283   : > { %v2232_v53 = vpop.f32.mrf.mxu0  ;;  %v7251_v4 = vpack.c.bf16 %v3047_v0, %v3045_v9  ;;  %v5692_v11 = vld [vmem:[#allocation2 + $0xd0] sm:$0xff] }
 0x284   : > { %v2102_v12 = vadd.f32 %v2035_v21, %v1905_v31  ;;  %2828 = vmatmul.bf16.gmra.mxu1 %v7244_v18  ;;  %v2432_v61 = vrot.slane %v2363_v28, 7  ;;  %v5702_v31 = vld [vmem:[#allocation2 + $0x120] sm:$0xff]  ;;  %v5667_v21 = vld [vmem:[#allocation2 + $0x8] sm:$0xff] }
 0x285   : > { %8486 = vst [vmem:[#allocation10_spill] sm:$0xff] %v7251_v4  ;;  %3220 = vmatpush.bf16.msrb.mxu3 %v5684_v30  ;;  %3601 = vmatpush.bf16.msrb.mxu1 %v5702_v31 }
 0x286   : > { %v2296_v7 = vadd.f32 %v2229_v6, %v2102_v12  ;;  %1880 = vmatmul.bf16.gmra.mxu2 %v6575_v47  ;;  %2271 = vmatmul.bf16.gmra.mxu0 %v7016_v50  ;;  %v2520_v54 = vsel %vm2419_vm2, 0.0, %v2432_v61  ;;  %v5668_v50 = vld [vmem:[#allocation2 + $0x10] sm:$0xff] }
 0x287   : > { %2077 = vmatmul.bf16.gmra.mxu3 %v6638_v26  ;;  %2942 = vmatpush.bf16.msrb.mxu2 %v5668_v50  ;;  %v2633_v13 = vrot.slane %v2520_v54, 1  ;;  %v3048_v23 = vrot.slane %v2520_v54, 2  ;;  %v7266_v54 = vld [vmem:[%s6090_s16 + $0xcc] sm:$0xff]   ;;  %v293_v50 = vld [vmem:[%s6090_s16 + $0xd4] sm:$0x1] }
 0x288   : > { %v2332_v48 = vadd.f32 %v7161_v1, %v2296_v7  ;;  %3407 = vmatpush.bf16.msrb.mxu0 %v5692_v11  ;;  %v5691_v7 = vld [vmem:[#allocation2 + $0xc8] sm:$0xff] }
 0x289   : > { %v1841_v24 = vpop.f32.mrf.mxu2  ;;  %3221 = vmatpush.bf16.msrb.mxu3 %v5683_v46  ;;  %v345_v46 = vunpack.c.l.bf16 %v7266_v54 }
 0x28a   : > { %v2364_v6 = vmax.f32 %v2332_v48, 0.0  ;;  %v1906_v47 = vadd.f32 %v1841_v24, %v8487_v59  ;;  %v2038_v22 = vpop.f32.mrf.mxu3  ;;  %v8490_v48 = vld [vmem:[#allocation63_spill] sm:$0xff] }
 0x28b   : > { %v2234_v25 = vpop.f32.mrf.mxu0  ;;  %v1720_v24 = vadd.f32 %v8490_v48, %v8489_v3  ;;  %2943 = vmatpush.bf16.msrb.mxu2 %v5667_v21 }
 0x28c   : > { %v2433_v60 = vrot.slane %v2364_v6, 7  ;;  %v2103_v26 = vadd.f32 %v2038_v22, %v1906_v47  ;;  %3408 = vmatpush.bf16.msrb.mxu0 %v5691_v7 }
 0x28e   : > { %v2434_v9 = vsel %vm2419_vm2, %v2432_v61, %v2433_v60  ;;  %v2536_v51 = vsel %vm2419_vm2, %v2433_v60, 0.0  ;;  %v2297_v28 = vadd.f32 %v2232_v53, %v2103_v26 }
 0x28f   : > { %v2634_v12 = vrot.slane %v2434_v9, 1  ;;  %v2636_v0 = vrot.slane %v2536_v51, 1  ;;  %v7258_v35 = vpack.c.bf16 %v2434_v9, %v2432_v61  ;;  %v3049_v55 = vrot.slane %v2434_v9, 2  ;;  %v5666_v9 = vld [vmem:[#allocation2] sm:$0xff] }
 0x290   : > { %v2333_v6 = vadd.f32 %v7161_v1, %v2297_v28  ;;  %v3051_v53 = vrot.slane %v2536_v51, 2  ;;  %v5682_v28 = vld [vmem:[#allocation2 + $0x80] sm:$0xff]  ;;  %2944 = vmatpush.bf16.msrb.mxu2 %v5666_v9 }
 0x291   : > { %8488 = vst [vmem:[#allocation57_spill] sm:$0xff] %v7258_v35  ;;  %v1843_v59 = vpop.f32.mrf.mxu2  ;;  %v2635_v47 = vsel %vm428_vm0, %v2633_v13, %v2634_v12  ;;  %v2637_v22 = vsel %vm428_vm0, %v2634_v12, %v2636_v0  ;;  %v3050_v61 = vsel %vm848_vm1, %v3048_v23, %v3049_v55  ;;  %v5690_v51 = vld [vmem:[#allocation2 + $0xc0] sm:$0xff]  ;;  %v346_v23 = vunpack.c.h.bf16 %v7266_v54  ;;  %3222 = vmatpush.bf16.msrb.mxu3 %v5682_v28 }
 0x292   : > { %v2365_v30 = vmax.f32 %v2333_v6, 0.0  ;;  %v1907_v11 = vadd.f32 %v1843_v59, %v1720_v24  ;;  %v2040_v60 = vpop.f32.mrf.mxu3  ;;  %v7270_v26 = vpack.c.bf16 %v2637_v22, %v2635_v47  ;;  %v3052_v31 = vsel %vm848_vm1, %v3049_v55, %v3051_v53  ;;  %3409 = vmatpush.bf16.msrb.mxu0 %v5690_v51 }
 0x293   : > { %v2237_v13 = vpop.f32.mrf.mxu0  ;;  %v7273_v21 = vpack.c.bf16 %v3052_v31, %v3050_v61  ;;  %v347_v0 = vunpack.c.l.bf16 %v293_v50  ;;  %v2125_v24 = vrot.slane %v345_v46, 2  ;;  %v2126_v6 = vrot.slane %v346_v23, 2 }
 0x294   : > { %v2104_v12 = vadd.f32 %v2040_v60, %v1907_v11  ;;  %2833 = vmatmul.bf16.gmra.mxu1 %v7270_v26  ;;  %v2435_v7 = vrot.slane %v2365_v30, 7  ;;  %v1931_v61 = vrot.slane %v345_v46, 1 }
 0x295   : > { %8491 = vst [vmem:[#allocation58_spill] sm:$0xff] %v7273_v21  ;;  %v2128_v53 = vrot.slane %v347_v0, 2  ;;  %v1934_v11 = vrot.slane %v347_v0, 1  ;;  %v2127_v9 = vsel %vm848_vm1, %v2125_v24, %v2126_v6 }
 0x296   : > { %v2298_v3 = vadd.f32 %v2234_v25, %v2104_v12  ;;  %1885 = vmatmul.bf16.gmra.mxu2 %v7019_v5  ;;  %2276 = vmatmul.bf16.gmra.mxu0 %v7048_v49  ;;  %v2521_v59 = vsel %vm2419_vm2, 0.0, %v2435_v7  ;;  %v1722_v25 = vadd.f32 %v7031_v56, %v7052_v29 }
 0x297   : > { %2082 = vmatmul.bf16.gmra.mxu3 %v7046_v17  ;;  %v1932_v17 = vrot.slane %v346_v23, 1  ;;  %v2638_v60 = vrot.slane %v2521_v59, 1  ;;  %v2129_v28 = vsel %vm848_vm1, %v2126_v6, %v2128_v53  ;;  %v3053_v12 = vrot.slane %v2521_v59, 2 }
 0x298   : > { %v2334_v55 = vadd.f32 %v7161_v1, %v2298_v3 }
 0x299   : > { %v1846_v48 = vpop.f32.mrf.mxu2  ;;  %v1933_v23 = vsel %vm428_vm0, %v1931_v61, %v1932_v17  ;;  %v1935_v0 = vsel %vm428_vm0, %v1932_v17, %v1934_v11 }
 0x29a   : > { %v2366_v47 = vmax.f32 %v2334_v55, 0.0  ;;  %v1908_v22 = vadd.f32 %v1846_v48, %v7039_v58  ;;  %v2043_v50 = vpop.f32.mrf.mxu3  ;;  %v1938_v61 = vpack.c.bf16 %v1935_v0, %v1933_v23  ;;  %v8494_v23 = vmov 0.0  }
 0x29b   : > { %v2239_v5 = vpop.f32.mrf.mxu0  ;;  %v3026_v0 = vrot.slane %v8494_v23, 2  ;;  %v8268_v23 = vmov 0.0|0.0  }
 0x29c   : > { %v2436_v49 = vrot.slane %v2366_v47, 7  ;;  %v2105_v30 = vadd.f32 %v2043_v50, %v1908_v22  ;;  %v2132_v47 = vpack.c.bf16 %v2129_v28, %v2127_v9 }
 0x29e   : > { %v2437_v51 = vsel %vm2419_vm2, %v2435_v7, %v2436_v49  ;;  %v2537_v31 = vsel %vm2419_vm2, %v2436_v49, 0.0  ;;  %v2299_v58 = vadd.f32 %v2237_v13, %v2105_v30 }
 0x29f   : > { %v2639_v3 = vrot.slane %v2437_v51, 1  ;;  %v2641_v55 = vrot.slane %v2537_v31, 1  ;;  %v7290_v56 = vpack.c.bf16 %v2437_v51, %v2435_v7  ;;  %v3054_v29 = vrot.slane %v2437_v51, 2 }
 0x2a0   : > { %v2335_v46 = vadd.f32 %v7161_v1, %v2299_v58  ;;  %v3056_v48 = vrot.slane %v2537_v31, 2 }
 0x2a1   : > { %8492 = vst [vmem:[#allocation11_spill] sm:$0xff] %v7290_v56  ;;  %v1848_v24 = vpop.f32.mrf.mxu2  ;;  %v2640_v6 = vsel %vm428_vm0, %v2638_v60, %v2639_v3  ;;  %v2642_v53 = vsel %vm428_vm0, %v2639_v3, %v2641_v55  ;;  %v3055_v13 = vsel %vm848_vm1, %v3053_v12, %v3054_v29 }
 0x2a2   : > { %v2367_v59 = vmax.f32 %v2335_v46, 0.0  ;;  %v1909_v22 = vadd.f32 %v1848_v24, %v1722_v25  ;;  %v2045_v7 = vpop.f32.mrf.mxu3  ;;  %v7298_v50 = vpack.c.bf16 %v2642_v53, %v2640_v6  ;;  %v3057_v49 = vsel %vm848_vm1, %v3054_v29, %v3056_v48  ;;  %v5701_v24 = vld [vmem:[#allocation2 + $0x118] sm:$0xff] }
 0x2a3   : > { %v2242_v30 = vpop.f32.mrf.mxu0  ;;  %v7301_v51 = vpack.c.bf16 %v3057_v49, %v3055_v13  ;;  %3602 = vmatpush.bf16.msrb.mxu1 %v5701_v24 }
 0x2a4   : > { %v2106_v17 = vadd.f32 %v2045_v7, %v1909_v22  ;;  %2838 = vmatmul.bf16.gmra.mxu1 %v7298_v50  ;;  %v2438_v11 = vrot.slane %v2367_v59, 7 }
 0x2a5   : > { %8493 = vst [vmem:[#allocation16_spill] sm:$0xff] %v7301_v51 }
 0x2a6   : > { %v2300_v60 = vadd.f32 %v2239_v5, %v2106_v17  ;;  %1890 = vmatmul.bf16.gmra.mxu2 %v7266_v54  ;;  %2281 = vmatmul.bf16.gmra.mxu0 %v2132_v47  ;;  %v2522_v28 = vsel %vm2419_vm2, 0.0, %v2438_v11 }
 0x2a7   : > { %2087 = vmatmul.bf16.gmra.mxu3 %v1938_v61  ;;  %v2643_v46 = vrot.slane %v2522_v28, 1  ;;  %v3058_v6 = vrot.slane %v2522_v28, 2 }
 0x2a8   : > { %v2336_v25 = vadd.f32 %v7161_v1, %v2300_v60 }
 0x2a9   : > { %v1851_v9 = vpop.f32.mrf.mxu2 }
 0x2aa   : > { %v2368_v31 = vmax.f32 %v2336_v25, 0.0  ;;  %v1910_v58 = vadd.f32 %v1851_v9, %v7059_v63  ;;  %v2048_v12 = vpop.f32.mrf.mxu3  ;;  %v1724_v63 = vadd.f32 %v7057_v2, %v7064_v20 }
 0x2ab   : > { %v2244_v3 = vpop.f32.mrf.mxu0 }
 0x2ac   : > { %v2439_v55 = vrot.slane %v2368_v31, 7  ;;  %v2107_v29 = vadd.f32 %v2048_v12, %v1910_v58  ;;  %v7327_v31 = vpack.c.bf16 %v3026_v0, %v3026_v0  ;;  %v7342_v0 = vpop.f32.mrf.mxu1 }
 0x2ae   : > { %v2440_v5 = vsel %vm2419_vm2, %v2438_v11, %v2439_v55  ;;  %v2538_v54 = vsel %vm2419_vm2, %v2439_v55, 0.0  ;;  %v2301_v48 = vadd.f32 %v2242_v30, %v2107_v29  ;;  %8497 = vst [vmem:[#allocation60_spill] sm:$0xff] %v7327_v31 }
 0x2af   : > { %v2644_v53 = vrot.slane %v2440_v5, 1  ;;  %v2646_v47 = vrot.slane %v2538_v54, 1  ;;  %v7311_v13 = vpack.c.bf16 %v2440_v5, %v2438_v11  ;;  %v3059_v59 = vrot.slane %v2440_v5, 2 }
 0x2b0   : > { %v2337_v22 = vadd.f32 %v7161_v1, %v2301_v48  ;;  %v3061_v49 = vrot.slane %v2538_v54, 2 }
 0x2b1   : > { %v1853_v30 = vpop.f32.mrf.mxu2  ;;  %v2645_v61 = vsel %vm428_vm0, %v2643_v46, %v2644_v53  ;;  %v2647_v17 = vsel %vm428_vm0, %v2644_v53, %v2646_v47  ;;  %v3060_v11 = vsel %vm848_vm1, %v3058_v6, %v3059_v59 }
 0x2b2   : > { %v2369_v60 = vmax.f32 %v2337_v22, 0.0  ;;  %v1911_v25 = vadd.f32 %v1853_v30, %v1724_v63  ;;  %v2050_v9 = vpop.f32.mrf.mxu3  ;;  %v7324_v2 = vpack.c.bf16 %v2647_v17, %v2645_v61  ;;  %v3062_v20 = vsel %vm848_vm1, %v3059_v59, %v3061_v49 }
 0x2b3   : > { %v2247_v28 = vpop.f32.mrf.mxu0  ;;  %v7335_v12 = vpack.c.bf16 %v3062_v20, %v3060_v11 }
 0x2b4   : > { %v2108_v55 = vadd.f32 %v2050_v9, %v1911_v25  ;;  %2843 = vmatmul.bf16.gmra.mxu1 %v7324_v2  ;;  %v2441_v29 = vrot.slane %v2369_v60, 7  ;;  %v7350_v61 = vpop.f32.mrf.mxu1 }
 0x2b5   : > { %8500 = vst [vmem:[#allocation61_spill] sm:$0xff] %v7335_v12 }
 0x2b6   : > { %v2302_v46 = vadd.f32 %v2244_v3, %v2108_v55  ;;  %2945 = vmatmul.bf16.vlgmr.msrb.gmra.mxu2 %v8268_v23  ;;  %5308 = vmatmul.msk.bf16.vlgmr.msrb.gmra.mxu0 %vm7331_vm5, %v7173_v42  ;;  %v2523_v48 = vsel %vm2419_vm2, 0.0, %v2441_v29 }
 0x2b7   : > { %3223 = vmatmul.bf16.vlgmr.msrb.gmra.mxu3 %v7327_v31  ;;  %v2648_v63 = vrot.slane %v2523_v48, 1  ;;  %v3063_v30 = vrot.slane %v2523_v48, 2 }
 0x2b8   : > { %v2338_v5 = vadd.f32 %v7161_v1, %v2302_v46 }
 0x2b9   : > { %v1856_v54 = vpop.f32.mrf.mxu2 }
 0x2ba   : > { %v2370_v24 = vmax.f32 %v2338_v5, 0.0  ;;  %v1912_v6 = vadd.f32 %v1856_v54, %v7070_v39  ;;  %v2053_v3 = vpop.f32.mrf.mxu3  ;;  %v1726_v39 = vadd.f32 %v7068_v62, %v7075_v45 }
 0x2bb   : > { %v2249_v53 = vpop.f32.mrf.mxu0 }
 0x2bc   : > { %v2442_v47 = vrot.slane %v2370_v24, 7  ;;  %v2109_v59 = vadd.f32 %v2053_v3, %v1912_v6 }
 0x2be   : > { %v2443_v22 = vsel %vm2419_vm2, %v2441_v29, %v2442_v47  ;;  %v2539_v7 = vsel %vm2419_vm2, %v2442_v47, 0.0  ;;  %v2303_v49 = vadd.f32 %v2247_v28, %v2109_v59 }
 0x2bf   : > { %v2649_v17 = vrot.slane %v2443_v22, 1  ;;  %v2651_v11 = vrot.slane %v2539_v7, 1  ;;  %v7352_v60 = vpack.c.bf16 %v2443_v22, %v2441_v29  ;;  %v3064_v25 = vrot.slane %v2443_v22, 2  ;;  %v7374_v22 = vpop.f32.mrf.mxu1 }
 0x2c0   : > { %v2339_v9 = vadd.f32 %v7161_v1, %v2303_v49  ;;  %v3066_v20 = vrot.slane %v2539_v7, 2 }
 0x2c1   : > { %v1858_v55 = vpop.f32.mrf.mxu2  ;;  %v2650_v46 = vsel %vm428_vm0, %v2648_v63, %v2649_v17  ;;  %v2652_v5 = vsel %vm428_vm0, %v2649_v17, %v2651_v11  ;;  %v3065_v28 = vsel %vm848_vm1, %v3063_v30, %v3064_v25 }
 0x2c2   : > { %v2371_v54 = vmax.f32 %v2339_v9, 0.0  ;;  %v1913_v48 = vadd.f32 %v1858_v55, %v1726_v39  ;;  %v2055_v24 = vpop.f32.mrf.mxu3  ;;  %v7360_v6 = vpack.c.bf16 %v2652_v5, %v2650_v46  ;;  %v3067_v29 = vsel %vm848_vm1, %v3064_v25, %v3066_v20  ;;  %v5700_v46 = vld [vmem:[#allocation2 + $0x110] sm:$0xff] }
 0x2c3   : > { %v2252_v3 = vpop.f32.mrf.mxu0  ;;  %v7363_v47 = vpack.c.bf16 %v3067_v29, %v3065_v28  ;;  %v8503_v29 = vld [vmem:[#allocation25_spill] sm:$0xff]  ;;  %3603 = vmatpush.bf16.msrb.mxu1 %v5700_v46 }
 0x2c4   : > { %8501 = vst [vmem:[#allocation62_spill] sm:$0xff] %v7360_v6  ;;  %v2110_v62 = vadd.f32 %v2055_v24, %v1913_v48  ;;  %2848 = vmatmul.bf16.gmra.mxu1 %v7360_v6  ;;  %v2444_v45 = vrot.slane %v2371_v54, 7 }
 0x2c5   : > { %8502 = vst [vmem:[#allocation64_spill] sm:$0xff] %v7363_v47 }
 0x2c6   : > { %v2304_v59 = vadd.f32 %v2249_v53, %v2110_v62  ;;  %5184 = vmatmul.msk.bf16.gmra.mxu2 %vm7331_vm5, %v7173_v42  ;;  %5312 = vmatmul.msk.bf16.gmra.mxu0 %vm7331_vm5, %v7194_v44  ;;  %v2524_v49 = vsel %vm2419_vm2, 0.0, %v2444_v45 }
 0x2c7   : > { %3228 = vmatmul.bf16.gmra.mxu3 %v7183_v32  ;;  %v2653_v39 = vrot.slane %v2524_v49, 1  ;;  %v3068_v5 = vrot.slane %v2524_v49, 2 }
 0x2c8   : > { %v2340_v63 = vadd.f32 %v7161_v1, %v2304_v59 }
 0x2c9   : > { %v1861_v7 = vpop.f32.mrf.mxu2 }
 0x2ca   : > { %v2372_v30 = vmax.f32 %v2340_v63, 0.0  ;;  %v1914_v53 = vadd.f32 %v1861_v7, %v7081_v37  ;;  %v2058_v17 = vpop.f32.mrf.mxu3  ;;  %v1728_v37 = vadd.f32 %v8503_v29, %v7086_v38 }
 0x2cb   : > { %v2254_v11 = vpop.f32.mrf.mxu0 }
 0x2cc   : > { %v2445_v25 = vrot.slane %v2372_v30, 7  ;;  %v2111_v42 = vadd.f32 %v2058_v17, %v1914_v53 }
 0x2ce   : > { %v2446_v9 = vsel %vm2419_vm2, %v2444_v45, %v2445_v25  ;;  %v2540_v20 = vsel %vm2419_vm2, %v2445_v25, 0.0  ;;  %v2305_v55 = vadd.f32 %v2252_v3, %v2111_v42 }
 0x2cf   : > { %v2654_v28 = vrot.slane %v2446_v9, 1  ;;  %v2656_v54 = vrot.slane %v2540_v20, 1  ;;  %v7380_v48 = vpack.c.bf16 %v2446_v9, %v2444_v45  ;;  %v3069_v24 = vrot.slane %v2446_v9, 2 }
 0x2d0   : > { %v2341_v62 = vadd.f32 %v7161_v1, %v2305_v55  ;;  %v3071_v59 = vrot.slane %v2540_v20, 2 }
 0x2d1   : > { %v1863_v63 = vpop.f32.mrf.mxu2  ;;  %v7385_v7 = vpop.f32.mrf.mxu1  ;;  %v2655_v30 = vsel %vm428_vm0, %v2653_v39, %v2654_v28  ;;  %v2657_v3 = vsel %vm428_vm0, %v2654_v28, %v2656_v54  ;;  %v3070_v49 = vsel %vm848_vm1, %v3068_v5, %v3069_v24 }
 0x2d2   : > { %v2373_v53 = vmax.f32 %v2341_v62, 0.0  ;;  %v1915_v45 = vadd.f32 %v1863_v63, %v1728_v37  ;;  %v2060_v17 = vpop.f32.mrf.mxu3  ;;  %v7390_v25 = vpack.c.bf16 %v2657_v3, %v2655_v30  ;;  %v3072_v38 = vsel %vm848_vm1, %v3069_v24, %v3071_v59 }
 0x2d3   : > { %v2257_v42 = vpop.f32.mrf.mxu0  ;;  %v7393_v9 = vpack.c.bf16 %v3072_v38, %v3070_v49 }
 0x2d4   : > { %8504 = vst [vmem:[#allocation65_spill] sm:$0xff] %v7390_v25  ;;  %v2112_v20 = vadd.f32 %v2060_v17, %v1915_v45  ;;  %2853 = vmatmul.bf16.gmra.mxu1 %v7390_v25  ;;  %v2447_v55 = vrot.slane %v2373_v53, 7 }
 0x2d6   : > { %v2306_v46 = vadd.f32 %v2254_v11, %v2112_v20  ;;  %5188 = vmatmul.msk.bf16.gmra.mxu2 %vm7331_vm5, %v7194_v44  ;;  %5316 = vmatmul.msk.bf16.gmra.mxu0 %vm7331_vm5, %v7215_v10  ;;  %v2525_v54 = vsel %vm2419_vm2, 0.0, %v2447_v55 }
 0x2d7   : > { %3233 = vmatmul.bf16.gmra.mxu3 %v7204_v52  ;;  %v2658_v63 = vrot.slane %v2525_v54, 1  ;;  %v3073_v53 = vrot.slane %v2525_v54, 2 }
 0x2d8   : > { %v2342_v39 = vadd.f32 %v7161_v1, %v2306_v46  ;;  %v8505_v46 = vld [vmem:[#allocation47_spill] sm:$0xff] }
 0x2d9   : > { %v1866_v5 = vpop.f32.mrf.mxu2  ;;  %v7404_v28 = vpop.f32.mrf.mxu1 }
 0x2da   : > { %v2374_v24 = vmax.f32 %v2342_v39, 0.0  ;;  %v1916_v11 = vadd.f32 %v1866_v5, %v7092_v15  ;;  %v2063_v29 = vpop.f32.mrf.mxu3  ;;  %v8506_v39 = vld [vmem:[#allocation46_spill] sm:$0xff] }
 0x2db   : > { %v2259_v37 = vpop.f32.mrf.mxu0  ;;  %v1730_v23 = vadd.f32 %v8506_v39, %v8505_v46 }
 0x2dc   : > { %v2448_v62 = vrot.slane %v2374_v24, 7  ;;  %v2113_v59 = vadd.f32 %v2063_v29, %v1916_v11 }
 0x2de   : > { %v2449_v30 = vsel %vm2419_vm2, %v2447_v55, %v2448_v62  ;;  %v2541_v3 = vsel %vm2419_vm2, %v2448_v62, 0.0  ;;  %v2307_v49 = vadd.f32 %v2257_v42, %v2113_v59 }
 0x2df   : > { %v2659_v45 = vrot.slane %v2449_v30, 1  ;;  %v2661_v17 = vrot.slane %v2541_v3, 1  ;;  %v7410_v38 = vpack.c.bf16 %v2449_v30, %v2447_v55  ;;  %v3074_v20 = vrot.slane %v2449_v30, 2 }
 0x2e0   : > { %v2343_v15 = vadd.f32 %v7161_v1, %v2307_v49  ;;  %v3076_v5 = vrot.slane %v2541_v3, 2 }
 0x2e1   : > { %v1868_v24 = vpop.f32.mrf.mxu2  ;;  %v7415_v11 = vpop.f32.mrf.mxu1  ;;  %v2660_v29 = vsel %vm428_vm0, %v2658_v63, %v2659_v45  ;;  %v2662_v62 = vsel %vm428_vm0, %v2659_v45, %v2661_v17  ;;  %v3075_v42 = vsel %vm848_vm1, %v3073_v53, %v3074_v20 }
 0x2e2   : > { %v2375_v54 = vmax.f32 %v2343_v15, 0.0  ;;  %v1917_v59 = vadd.f32 %v1868_v24, %v1730_v23  ;;  %v2065_v55 = vpop.f32.mrf.mxu3  ;;  %v7420_v31 = vpack.c.bf16 %v2662_v62, %v2660_v29  ;;  %v3077_v30 = vsel %vm848_vm1, %v3074_v20, %v3076_v5 }
 0x2e3   : > { %v2262_v46 = vpop.f32.mrf.mxu0  ;;  %v7423_v39 = vpack.c.bf16 %v3077_v30, %v3075_v42 }
 0x2e4   : > { %8507 = vst [vmem:[#allocation63_spill] sm:$0xff] %v7420_v31  ;;  %v2114_v3 = vadd.f32 %v2065_v55, %v1917_v59  ;;  %2858 = vmatmul.bf16.gmra.mxu1 %v7420_v31  ;;  %v2450_v49 = vrot.slane %v2375_v54, 7  ;;  %v5699_v59 = vld [vmem:[#allocation2 + $0x108] sm:$0xff]  ;;  %v8511_v31 = vld [vmem:[#allocation30_spill] sm:$0xff] }
 0x2e5   : > { %8508 = vst [vmem:[#allocation25_spill] sm:$0xff] %v7423_v39  ;;  %3604 = vmatpush.bf16.msrb.mxu1 %v5699_v59 }
 0x2e6   : > { %v2308_v52 = vadd.f32 %v2259_v37, %v2114_v3  ;;  %5192 = vmatmul.msk.bf16.gmra.mxu2 %vm7331_vm5, %v7215_v10  ;;  %5320 = vmatmul.msk.bf16.gmra.mxu0 %vm7331_vm5, %v7236_v8  ;;  %v2526_v45 = vsel %vm2419_vm2, 0.0, %v2450_v49 }
 0x2e7   : > { %3238 = vmatmul.bf16.gmra.mxu3 %v7225_v40  ;;  %v2663_v29 = vrot.slane %v2526_v45, 1 }
 0x2e8   : > { %v2344_v23 = vadd.f32 %v7161_v1, %v2308_v52  ;;  %v3078_v52 = vrot.slane %v2526_v45, 2 }
 0x2e9   : > { %v1871_v63 = vpop.f32.mrf.mxu2  ;;  %v7434_v53 = vpop.f32.mrf.mxu1 }
 0x2ea   : > { %v2376_v17 = vmax.f32 %v2344_v23, 0.0  ;;  %v1918_v37 = vadd.f32 %v1871_v63, %v7103_v34  ;;  %v2068_v20 = vpop.f32.mrf.mxu3  ;;  %v8510_v23 = vld [vmem:[#allocation48_spill] sm:$0xff] }
 0x2eb   : > { %v2264_v15 = vpop.f32.mrf.mxu0  ;;  %v1732_v34 = vadd.f32 %v8511_v31, %v8510_v23 }
 0x2ec   : > { %v2451_v5 = vrot.slane %v2376_v17, 7  ;;  %v2115_v24 = vadd.f32 %v2068_v20, %v1918_v37 }
 0x2ee   : > { %v2452_v62 = vsel %vm2419_vm2, %v2450_v49, %v2451_v5  ;;  %v2542_v42 = vsel %vm2419_vm2, %v2451_v5, 0.0  ;;  %v2309_v54 = vadd.f32 %v2262_v46, %v2115_v24 }
 0x2ef   : > { %v2664_v55 = vrot.slane %v2452_v62, 1  ;;  %v2666_v30 = vrot.slane %v2542_v42, 1  ;;  %v7440_v3 = vpack.c.bf16 %v2452_v62, %v2450_v49  ;;  %v3079_v40 = vrot.slane %v2452_v62, 2 }
 0x2f0   : > { %v2345_v63 = vadd.f32 %v7161_v1, %v2309_v54  ;;  %v3081_v17 = vrot.slane %v2542_v42, 2 }
 0x2f1   : > { %8509 = vst [vmem:[#allocation47_spill] sm:$0xff] %v7440_v3  ;;  %v1873_v37 = vpop.f32.mrf.mxu2  ;;  %v7445_v20 = vpop.f32.mrf.mxu1  ;;  %v2665_v5 = vsel %vm428_vm0, %v2663_v29, %v2664_v55  ;;  %v2667_v46 = vsel %vm428_vm0, %v2664_v55, %v2666_v30  ;;  %v3080_v45 = vsel %vm848_vm1, %v3078_v52, %v3079_v40 }
 0x2f2   : > { %v2377_v24 = vmax.f32 %v2345_v63, 0.0  ;;  %v1919_v49 = vadd.f32 %v1873_v37, %v1732_v34  ;;  %v2070_v10 = vpop.f32.mrf.mxu3  ;;  %v7450_v62 = vpack.c.bf16 %v2667_v46, %v2665_v5  ;;  %v3082_v31 = vsel %vm848_vm1, %v3079_v40, %v3081_v17  ;;  %v7466_v40 = vld [vmem:[%s8185_s2] ss:$0 sm:$0xff] }
 0x2f3   : > { %v2267_v23 = vpop.f32.mrf.mxu0  ;;  %v7453_v1 = vpack.c.bf16 %v3082_v31, %v3080_v45 }
 0x2f4   : > { %8512 = vst [vmem:[#allocation46_spill] sm:$0xff] %v7450_v62  ;;  %v2116_v42 = vadd.f32 %v2070_v10, %v1919_v49  ;;  %2863 = vmatmul.bf16.gmra.mxu1 %v7450_v62  ;;  %v2453_v54 = vrot.slane %v2377_v24, 7 }
 0x2f5   : > { %8513 = vst [vmem:[#allocation48_spill] sm:$0xff] %v7453_v1 }
 0x2f6   : > { %v2310_v59 = vadd.f32 %v2264_v15, %v2116_v42  ;;  %5196 = vmatmul.msk.bf16.gmra.mxu2 %vm7331_vm5, %v7236_v8  ;;  %5324 = vmatmul.msk.bf16.gmra.mxu0 %vm7331_vm5, %v7258_v35  ;;  %v2527_v15 = vsel %vm2419_vm2, 0.0, %v2453_v54 }
 0x2f7   : > { %3243 = vmatmul.bf16.gmra.mxu3 %v7251_v4  ;;  %v2668_v5 = vrot.slane %v2527_v15, 1  ;;  %v3083_v49 = vrot.slane %v2527_v15, 2 }
 0x2f8   : > { %v2346_v10 = vadd.f32 %v7466_v40, %v2310_v59 }
 0x2f9   : > { %v1876_v29 = vpop.f32.mrf.mxu2  ;;  %v7469_v52 = vpop.f32.mrf.mxu1 }
 0x2fa   : > { %v2378_v55 = vmax.f32 %v2346_v10, 0.0  ;;  %v1920_v30 = vadd.f32 %v1876_v29, %v7114_v36  ;;  %v2073_v34 = vpop.f32.mrf.mxu3  ;;  %v8515_v10 = vld [vmem:[#allocation49_spill] sm:$0xff] }
 0x2fb   : > { %v2269_v63 = vpop.f32.mrf.mxu0  ;;  %v1734_v62 = vadd.f32 %v8515_v10, %v7119_v16 }
 0x2fc   : > { %v2454_v17 = vrot.slane %v2378_v55, 7  ;;  %v2117_v37 = vadd.f32 %v2073_v34, %v1920_v30 }
 0x2fe   : > { %v2455_v46 = vsel %vm2419_vm2, %v2453_v54, %v2454_v17  ;;  %v2543_v45 = vsel %vm2419_vm2, %v2454_v17, 0.0  ;;  %v2311_v24 = vadd.f32 %v2267_v23, %v2117_v37 }
 0x2ff   : > { %v2669_v31 = vrot.slane %v2455_v46, 1  ;;  %v2671_v42 = vrot.slane %v2543_v45, 1  ;;  %v7475_v59 = vpack.c.bf16 %v2455_v46, %v2453_v54  ;;  %v3084_v4 = vrot.slane %v2455_v46, 2 }
 0x300   : > { %v2347_v36 = vadd.f32 %v7466_v40, %v2311_v24  ;;  %v3086_v29 = vrot.slane %v2543_v45, 2 }
 0x301   : > { %8514 = vst [vmem:[#allocation30_spill] sm:$0xff] %v7475_v59  ;;  %v1878_v55 = vpop.f32.mrf.mxu2  ;;  %v7480_v30 = vpop.f32.mrf.mxu1  ;;  %v2670_v34 = vsel %vm428_vm0, %v2668_v5, %v2669_v31  ;;  %v2672_v17 = vsel %vm428_vm0, %v2669_v31, %v2671_v42  ;;  %v3085_v23 = vsel %vm848_vm1, %v3083_v49, %v3084_v4  ;;  %v8518_v42 = vld [vmem:[#allocation35_spill] sm:$0xff] }
 0x302   : > { %v2379_v15 = vmax.f32 %v2347_v36, 0.0  ;;  %v1921_v37 = vadd.f32 %v1878_v55, %v1734_v62  ;;  %v2075_v54 = vpop.f32.mrf.mxu3  ;;  %v7485_v8 = vpack.c.bf16 %v2672_v17, %v2670_v34  ;;  %v3087_v46 = vsel %vm848_vm1, %v3084_v4, %v3086_v29 }
 0x303   : > { %v2272_v16 = vpop.f32.mrf.mxu0  ;;  %v7488_v10 = vpack.c.bf16 %v3087_v46, %v3085_v23 }
 0x304   : > { %8516 = vst [vmem:[#allocation49_spill] sm:$0xff] %v7485_v8  ;;  %v2118_v45 = vadd.f32 %v2075_v54, %v1921_v37  ;;  %2868 = vmatmul.bf16.gmra.mxu1 %v7485_v8  ;;  %v2456_v24 = vrot.slane %v2379_v15, 7  ;;  %v5698_v54 = vld [vmem:[#allocation2 + $0x100] sm:$0xff] }
 0x305   : > { %8517 = vst [vmem:[#allocation68_spill] sm:$0xff] %v7488_v10  ;;  %3605 = vmatpush.bf16.msrb.mxu1 %v5698_v54 }
 0x306   : > { %v2312_v25 = vadd.f32 %v2269_v63, %v2118_v45  ;;  %5200 = vmatmul.msk.bf16.gmra.mxu2 %vm7331_vm5, %v7258_v35  ;;  %5328 = vmatmul.msk.bf16.gmra.mxu0 %vm7331_vm5, %v7290_v56  ;;  %v2528_v49 = vsel %vm2419_vm2, 0.0, %v2456_v24  ;;  %v8521_v35 = vld [vmem:[#allocation52_spill] sm:$0xff] }
 0x307   : > { %3248 = vmatmul.bf16.gmra.mxu3 %v7273_v21  ;;  %v2673_v17 = vrot.slane %v2528_v49, 1 }
 0x308   : > { %v2348_v4 = vadd.f32 %v7466_v40, %v2312_v25  ;;  %v3088_v25 = vrot.slane %v2528_v49, 2 }
 0x309   : > { %v1881_v62 = vpop.f32.mrf.mxu2  ;;  %v7499_v5 = vpop.f32.mrf.mxu1 }
 0x30a   : > { %v2380_v31 = vmax.f32 %v2348_v4, 0.0  ;;  %v1922_v63 = vadd.f32 %v1881_v62, %v8518_v42  ;;  %v2078_v36 = vpop.f32.mrf.mxu3  ;;  %v8520_v4 = vld [vmem:[#allocation50_spill] sm:$0xff] }
 0x30b   : > { %v2274_v29 = vpop.f32.mrf.mxu0  ;;  %v1736_v62 = vadd.f32 %v8521_v35, %v8520_v4 }
 0x30c   : > { %v2457_v55 = vrot.slane %v2380_v31, 7  ;;  %v2119_v34 = vadd.f32 %v2078_v36, %v1922_v63 }
 0x30e   : > { %v2458_v23 = vsel %vm2419_vm2, %v2456_v24, %v2457_v55  ;;  %v2544_v15 = vsel %vm2419_vm2, %v2457_v55, 0.0  ;;  %v2313_v37 = vadd.f32 %v2272_v16, %v2119_v34 }
 0x30f   : > { %v2674_v46 = vrot.slane %v2458_v23, 1  ;;  %v2676_v45 = vrot.slane %v2544_v15, 1  ;;  %v7505_v21 = vpack.c.bf16 %v2458_v23, %v2456_v24  ;;  %v3089_v8 = vrot.slane %v2458_v23, 2 }
 0x310   : > { %v2349_v42 = vadd.f32 %v7466_v40, %v2313_v37  ;;  %v3091_v31 = vrot.slane %v2544_v15, 2 }
 0x311   : > { %8519 = vst [vmem:[#allocation35_spill] sm:$0xff] %v7505_v21  ;;  %v1883_v63 = vpop.f32.mrf.mxu2  ;;  %v7510_v36 = vpop.f32.mrf.mxu1  ;;  %v2675_v55 = vsel %vm428_vm0, %v2673_v17, %v2674_v46  ;;  %v2677_v16 = vsel %vm428_vm0, %v2674_v46, %v2676_v45  ;;  %v3090_v49 = vsel %vm848_vm1, %v3088_v25, %v3089_v8 }
 0x312   : > { %v2381_v34 = vmax.f32 %v2349_v42, 0.0  ;;  %v1923_v24 = vadd.f32 %v1883_v63, %v1736_v62  ;;  %v2080_v44 = vpop.f32.mrf.mxu3  ;;  %v7515_v23 = vpack.c.bf16 %v2677_v16, %v2675_v55  ;;  %v3092_v35 = vsel %vm848_vm1, %v3089_v8, %v3091_v31 }
 0x313   : > { %v2277_v4 = vpop.f32.mrf.mxu0  ;;  %v7518_v37 = vpack.c.bf16 %v3092_v35, %v3090_v49 }
 0x314   : > { %8522 = vst [vmem:[#allocation50_spill] sm:$0xff] %v7515_v23  ;;  %v2120_v15 = vadd.f32 %v2080_v44, %v1923_v24  ;;  %2873 = vmatmul.bf16.gmra.mxu1 %v7515_v23  ;;  %v2459_v54 = vrot.slane %v2381_v34, 7  ;;  %v5713_v34 = vld [vmem:[#allocation2 + $0x178] sm:$0xff] }
 0x315   : > { %8523 = vst [vmem:[#allocation52_spill] sm:$0xff] %v7518_v37  ;;  %3792 = vmatpush.bf16.msra.mxu2 %v5713_v34 }
 0x316   : > { %v2314_v32 = vadd.f32 %v2274_v29, %v2120_v15  ;;  %5204 = vmatmul.msk.bf16.gmra.mxu2 %vm7331_vm5, %v7290_v56  ;;  %5332 = vmatmul.msk.bf16.gmra.mxu0 %vm7331_vm5, %v7311_v13  ;;  %v2529_v44 = vsel %vm2419_vm2, 0.0, %v2459_v54 }
 0x317   : > { %3253 = vmatmul.bf16.gmra.mxu3 %v7301_v51  ;;  %v2678_v63 = vrot.slane %v2529_v44, 1  ;;  %v3093_v24 = vrot.slane %v2529_v44, 2 }
 0x318   : > { %v2350_v8 = vadd.f32 %v7466_v40, %v2314_v32  ;;  %v5721_v32 = vld [vmem:[#allocation2 + $0x1b8] sm:$0xff] }
 0x319   : > { %v1886_v17 = vpop.f32.mrf.mxu2  ;;  %v7529_v25 = vpop.f32.mrf.mxu1  ;;  %3978 = vmatpush.bf16.msra.mxu3 %v5721_v32  ;;  %v5729_v32 = vld [vmem:[#allocation2 + $0x1f8] sm:$0xff] }
 0x31a   : > { %v2382_v46 = vmax.f32 %v2350_v8, 0.0  ;;  %v1924_v29 = vadd.f32 %v1886_v17, %v7138_v14  ;;  %v2083_v45 = vpop.f32.mrf.mxu3  ;;  %v8525_v14 = vld [vmem:[#allocation40_spill] sm:$0xff]  ;;  %4164 = vmatpush.bf16.msra.mxu0 %v5729_v32 }
 0x31b   : > { %v2279_v62 = vpop.f32.mrf.mxu0  ;;  %v1738_v17 = vadd.f32 %v8525_v14, %v7145_v43  ;;  %v5737_v14 = vld [vmem:[#allocation2 + $0x238] sm:$0xff] }
 0x31c   : > { %v2460_v42 = vrot.slane %v2382_v46, 7  ;;  %v2121_v31 = vadd.f32 %v2083_v45, %v1924_v29  ;;  %4350 = vmatpush.bf16.msra.mxu1 %v5737_v14  ;;  %v1740_v14 = vadd.f32 %v7342_v0, %v7154_v19 }
 0x31e   : > { %v2461_v55 = vsel %vm2419_vm2, %v2459_v54, %v2460_v42  ;;  %v2545_v16 = vsel %vm2419_vm2, %v2460_v42, 0.0  ;;  %v2315_v49 = vadd.f32 %v2277_v4, %v2121_v31 }
 0x31f   : > { %v2679_v35 = vrot.slane %v2461_v55, 1  ;;  %v2681_v15 = vrot.slane %v2545_v16, 1  ;;  %v7535_v51 = vpack.c.bf16 %v2461_v55, %v2459_v54  ;;  %v3094_v8 = vrot.slane %v2461_v55, 2 }
 0x320   : > { %v2351_v46 = vadd.f32 %v7466_v40, %v2315_v49  ;;  %v3096_v29 = vrot.slane %v2545_v16, 2 }
 0x321   : > { %8524 = vst [vmem:[#allocation69_spill] sm:$0xff] %v7535_v51  ;;  %v1888_v45 = vpop.f32.mrf.mxu2  ;;  %v7540_v23 = vpop.f32.mrf.mxu1  ;;  %v2680_v4 = vsel %vm428_vm0, %v2678_v63, %v2679_v35  ;;  %v2682_v44 = vsel %vm428_vm0, %v2679_v35, %v2681_v15  ;;  %v3095_v42 = vsel %vm848_vm1, %v3093_v24, %v3094_v8 }
 0x322   : > { %v2383_v54 = vmax.f32 %v2351_v46, 0.0  ;;  %v1925_v31 = vadd.f32 %v1888_v45, %v1738_v17  ;;  %v2085_v55 = vpop.f32.mrf.mxu3  ;;  %v7545_v56 = vpack.c.bf16 %v2682_v44, %v2680_v4  ;;  %v3097_v43 = vsel %vm848_vm1, %v3094_v8, %v3096_v29 }
 0x323   : > { %v2282_v49 = vpop.f32.mrf.mxu0  ;;  %v7548_v34 = vpack.c.bf16 %v3097_v43, %v3095_v42 }
 0x324   : > { %v2122_v16 = vadd.f32 %v2085_v55, %v1925_v31  ;;  %2878 = vmatmul.bf16.gmra.mxu1 %v7545_v56  ;;  %v2462_v63 = vrot.slane %v2383_v54, 7 }
 0x325   : > { %8526 = vst [vmem:[#allocation40_spill] sm:$0xff] %v7548_v34 }
 0x326   : > { %v2316_v6 = vadd.f32 %v2279_v62, %v2122_v16  ;;  %5208 = vmatmul.msk.bf16.gmra.mxu2 %vm7331_vm5, %v7311_v13  ;;  %5336 = vmatmul.msk.bf16.gmra.mxu0 %vm7331_vm5, %v7352_v60  ;;  %v2530_v8 = vsel %vm2419_vm2, 0.0, %v2462_v63 }
 0x327   : > { %3258 = vmatmul.bf16.gmra.mxu3 %v7335_v12  ;;  %v2683_v44 = vrot.slane %v2530_v8, 1 }
 0x328   : > { %v2352_v24 = vadd.f32 %v7466_v40, %v2316_v6  ;;  %v3098_v6 = vrot.slane %v2530_v8, 2 }
 0x329   : > { %v1891_v35 = vpop.f32.mrf.mxu2  ;;  %v7559_v15 = vpop.f32.mrf.mxu1 }
 0x32a   : > { %v2384_v62 = vmax.f32 %v2352_v24, 0.0  ;;  %v1926_v17 = vadd.f32 %v1891_v35, %v7149_v57  ;;  %v2088_v46 = vpop.f32.mrf.mxu3 }
 0x32b   : > { %v2284_v29 = vpop.f32.mrf.mxu0 }
 0x32c   : > { %v2463_v45 = vrot.slane %v2384_v62, 7  ;;  %v2123_v4 = vadd.f32 %v2088_v46, %v1926_v17 }
 0x32e   : > { %v2464_v42 = vsel %vm2419_vm2, %v2462_v63, %v2463_v45  ;;  %v2546_v54 = vsel %vm2419_vm2, %v2463_v45, 0.0  ;;  %v2317_v31 = vadd.f32 %v2282_v49, %v2123_v4 }
 0x32f   : > { %v2684_v55 = vrot.slane %v2464_v42, 1  ;;  %v2686_v43 = vrot.slane %v2546_v54, 1  ;;  %v7565_v16 = vpack.c.bf16 %v2464_v42, %v2462_v63  ;;  %v3099_v32 = vrot.slane %v2464_v42, 2 }
 0x330   : > { %v2353_v57 = vadd.f32 %v7466_v40, %v2317_v31  ;;  %v3101_v24 = vrot.slane %v2546_v54, 2 }
 0x331   : > { %8527 = vst [vmem:[#allocation70_spill] sm:$0xff] %v7565_v16  ;;  %v1893_v35 = vpop.f32.mrf.mxu2  ;;  %v7570_v62 = vpop.f32.mrf.mxu1  ;;  %v2685_v17 = vsel %vm428_vm0, %v2683_v44, %v2684_v55  ;;  %v2687_v46 = vsel %vm428_vm0, %v2684_v55, %v2686_v43  ;;  %v3100_v49 = vsel %vm848_vm1, %v3098_v6, %v3099_v32  ;;  %v5712_v44 = vld [vmem:[#allocation2 + $0x170] sm:$0xff] }
 0x332   : > { %v2385_v8 = vmax.f32 %v2353_v57, 0.0  ;;  %v1927_v45 = vadd.f32 %v1893_v35, %v1740_v14  ;;  %v2090_v63 = vpop.f32.mrf.mxu3  ;;  %v7575_v4 = vpack.c.bf16 %v2687_v46, %v2685_v17  ;;  %v3102_v42 = vsel %vm848_vm1, %v3099_v32, %v3101_v24  ;;  %3793 = vmatpush.bf16.msra.mxu2 %v5712_v44  ;;  %v5720_v46 = vld [vmem:[#allocation2 + $0x1b0] sm:$0xff] }
 0x333   : > { %v3411_v19 = vpop.f32.mrf.mxu0  ;;  %v7578_v0 = vpack.c.bf16 %v3102_v42, %v3100_v49  ;;  %3979 = vmatpush.bf16.msra.mxu3 %v5720_v46 }
 0x334   : > { %v2124_v54 = vadd.f32 %v2090_v63, %v1927_v45  ;;  %2883 = vmatmul.bf16.gmra.mxu1 %v7575_v4  ;;  %v2465_v31 = vrot.slane %v2385_v8, 7 }
 0x335   : > { %8528 = vst [vmem:[#allocation71_spill] sm:$0xff] %v7578_v0 }
 0x336   : > { %v2318_v12 = vadd.f32 %v2284_v29, %v2124_v54  ;;  %5212 = vmatmul.msk.bf16.gmra.mxu2 %vm7331_vm5, %v7352_v60  ;;  %5340 = vmatmul.msk.bf16.gmra.mxu0 %vm7331_vm5, %v7380_v48  ;;  %v2531_v32 = vsel %vm2419_vm2, 0.0, %v2465_v31 }
 0x337   : > { %3263 = vmatmul.bf16.gmra.mxu3 %v7363_v47  ;;  %v3525_v49 = vrot.slane %v2531_v32, 1  ;;  %v3719_v45 = vrot.slane %v2531_v32, 2  ;;  %v5736_v47 = vld [vmem:[#allocation2 + $0x230] sm:$0xff] }
 0x338   : > { %v2354_v6 = vadd.f32 %v7466_v40, %v2318_v12  ;;  %4351 = vmatpush.bf16.msra.mxu1 %v5736_v47 }
 0x339   : > { %v7589_v55 = vpop.f32.mrf.mxu1  ;;  %v2946_v43 = vpop.f32.mrf.mxu2 }
 0x33a   : > { %v2386_v29 = vmax.f32 %v2354_v6, 0.0  ;;  %v2947_v14 = vadd.f32 %v2946_v43, %v7350_v61  ;;  %v3224_v57 = vpop.f32.mrf.mxu3 }
 0x33b   : > { %v3413_v24 = vpop.f32.mrf.mxu0 }
 0x33c   : > { %v2466_v35 = vrot.slane %v2386_v29, 7  ;;  %v3304_v17 = vadd.f32 %v3224_v57, %v2947_v14 }
 0x33e   : > { %v2547_v8 = vsel %vm2419_vm2, %v2466_v35, 0.0  ;;  %v2467_v12 = vsel %vm2419_vm2, %v2465_v31, %v2466_v35  ;;  %v7595_v40 = vadd.f32 %v3411_v19, %v3304_v17 }
 0x33f   : > { %v7597_v63 = vpack.c.bf16 %v2467_v12, %v2465_v31  ;;  %v3526_v42 = vrot.slane %v2467_v12, 1  ;;  %v3528_v54 = vrot.slane %v2547_v8, 1  ;;  %v3720_v44 = vrot.slane %v2467_v12, 2  ;;  %v5728_v12 = vld [vmem:[#allocation2 + $0x1f0] sm:$0xff] }
 0x340   : > { %v3722_v61 = vrot.slane %v2547_v8, 2  ;;  %4165 = vmatpush.bf16.msra.mxu0 %v5728_v12 }
 0x341   : > { %8529 = vst [vmem:[#allocation72_spill] sm:$0xff] %v7597_v63  ;;  %v7599_v6 = vpop.f32.mrf.mxu1  ;;  %v2948_v43 = vpop.f32.mrf.mxu2  ;;  %v3527_v29 = vsel %vm428_vm0, %v3525_v49, %v3526_v42  ;;  %v3529_v14 = vsel %vm428_vm0, %v3526_v42, %v3528_v54  ;;  %v3721_v57 = vsel %vm848_vm1, %v3719_v45, %v3720_v44 }
 0x342   : > { %v2949_v35 = vadd.f32 %v2948_v43, %v7374_v22  ;;  %v3226_v19 = vpop.f32.mrf.mxu3  ;;  %v7605_v17 = vpack.c.bf16 %v3529_v14, %v3527_v29  ;;  %v3723_v31 = vsel %vm848_vm1, %v3720_v44, %v3722_v61 }
 0x343   : > { %v3416_v32 = vpop.f32.mrf.mxu0  ;;  %v7608_v46 = vpack.c.bf16 %v3723_v31, %v3721_v57 }
 0x344   : > { %v3305_v8 = vadd.f32 %v3226_v19, %v2949_v35  ;;  %3606 = vmatmul.bf16.vlgmr.msrb.gmra.mxu1 %v7180_v27 }
 0x345   : > { %8530 = vst [vmem:[#allocation73_spill] sm:$0xff] %v7608_v46 }
 0x346   : > { %5216 = vmatmul.msk.bf16.gmra.mxu2 %vm7331_vm5, %v7380_v48  ;;  %5344 = vmatmul.msk.bf16.gmra.mxu0 %vm7331_vm5, %v7410_v38  ;;  %v7617_v22 = vadd.f32 %v3413_v24, %v3305_v8 }
 0x347   : > { %3268 = vmatmul.bf16.gmra.mxu3 %v7393_v9 }
 0x349   : > { %v7620_v49 = vpop.f32.mrf.mxu1  ;;  %v2951_v45 = vpop.f32.mrf.mxu2 }
 0x34a   : > { %v2952_v27 = vadd.f32 %v2951_v45, %v7385_v7  ;;  %v3229_v42 = vpop.f32.mrf.mxu3  ;;  %v5711_v7 = vld [vmem:[#allocation2 + $0x168] sm:$0xff] }
 0x34b   : > { %v3418_v54 = vpop.f32.mrf.mxu0  ;;  %3794 = vmatpush.bf16.msra.mxu2 %v5711_v7  ;;  %v5719_v45 = vld [vmem:[#allocation2 + $0x1a8] sm:$0xff] }
 0x34c   : > { %v3306_v44 = vadd.f32 %v3229_v42, %v2952_v27  ;;  %3980 = vmatpush.bf16.msra.mxu3 %v5719_v45  ;;  %v5735_v7 = vld [vmem:[#allocation2 + $0x228] sm:$0xff] }
 0x34d   : > { %4352 = vmatpush.bf16.msra.mxu1 %v5735_v7 }
 0x34e   : > { %v7623_v61 = vadd.f32 %v3416_v32, %v3306_v44 }
 0x351   : > { %v7625_v43 = vpop.f32.mrf.mxu1  ;;  %v2953_v29 = vpop.f32.mrf.mxu2 }
 0x352   : > { %v2954_v24 = vadd.f32 %v2953_v29, %v7404_v28  ;;  %v3231_v14 = vpop.f32.mrf.mxu3 }
 0x353   : > { %v3421_v57 = vpop.f32.mrf.mxu0 }
 0x354   : > { %v3307_v35 = vadd.f32 %v3231_v14, %v2954_v24  ;;  %3611 = vmatmul.bf16.gmra.mxu1 %v7201_v41 }
 0x356   : > { %5220 = vmatmul.msk.bf16.gmra.mxu2 %vm7331_vm5, %v7410_v38  ;;  %5348 = vmatmul.msk.bf16.gmra.mxu0 %vm7331_vm5, %v7440_v3  ;;  %v7635_v47 = vadd.f32 %v3418_v54, %v3307_v35  ;;  %v5727_v35 = vld [vmem:[#allocation2 + $0x1e8] sm:$0xff] }
 0x357   : > { %3273 = vmatmul.bf16.gmra.mxu3 %v7423_v39  ;;  %4166 = vmatpush.bf16.msra.mxu0 %v5727_v35  ;;  %v8535_v39 = vld [vmem:[#allocation45_spill] sm:$0xff] }
 0x359   : > { %v7638_v19 = vpop.f32.mrf.mxu1  ;;  %v2956_v28 = vpop.f32.mrf.mxu2 }
 0x35a   : > { %v2957_v31 = vadd.f32 %v2956_v28, %v7415_v11  ;;  %v3234_v32 = vpop.f32.mrf.mxu3 }
 0x35b   : > { %v3423_v8 = vpop.f32.mrf.mxu0 }
 0x35c   : > { %v3308_v12 = vadd.f32 %v3234_v32, %v2957_v31 }
 0x35e   : > { %v7641_v27 = vadd.f32 %v3421_v57, %v3308_v12 }
 0x361   : > { %v7643_v42 = vpop.f32.mrf.mxu1  ;;  %v2958_v54 = vpop.f32.mrf.mxu2 }
 0x362   : > { %v2959_v44 = vadd.f32 %v2958_v54, %v7434_v53  ;;  %v3236_v29 = vpop.f32.mrf.mxu3 }
 0x363   : > { %v3426_v24 = vpop.f32.mrf.mxu0 }
 0x364   : > { %v3309_v14 = vadd.f32 %v3236_v29, %v2959_v44  ;;  %3616 = vmatmul.bf16.gmra.mxu1 %v7222_v33 }
 0x366   : > { %5224 = vmatmul.msk.bf16.gmra.mxu2 %vm7331_vm5, %v7440_v3  ;;  %5352 = vmatmul.msk.bf16.gmra.mxu0 %vm7331_vm5, %v7475_v59  ;;  %v7653_v11 = vadd.f32 %v3423_v8, %v3309_v14 }
 0x367   : > { %3278 = vmatmul.bf16.gmra.mxu3 %v7453_v1  ;;  %v5734_v1 = vld [vmem:[#allocation2 + $0x220] sm:$0xff] }
 0x368   : > { %4353 = vmatpush.bf16.msra.mxu1 %v5734_v1  ;;  %v5723_v1 = vld [vmem:[#allocation2 + $0x1c8] sm:$0xff] }
 0x369   : > { %v7656_v53 = vpop.f32.mrf.mxu1  ;;  %v2961_v57 = vpop.f32.mrf.mxu2 }
 0x36a   : > { %v2962_v28 = vadd.f32 %v2961_v57, %v7445_v20  ;;  %v3239_v31 = vpop.f32.mrf.mxu3 }
 0x36b   : > { %v3428_v32 = vpop.f32.mrf.mxu0 }
 0x36c   : > { %v3310_v12 = vadd.f32 %v3239_v31, %v2962_v28 }
 0x36e   : > { %v7659_v45 = vadd.f32 %v3426_v24, %v3310_v12  ;;  %v5710_v24 = vld [vmem:[#allocation2 + $0x160] sm:$0xff] }
 0x36f   : > { %3795 = vmatpush.bf16.msra.mxu2 %v5710_v24  ;;  %v5718_v12 = vld [vmem:[#allocation2 + $0x1a0] sm:$0xff] }
 0x370   : > { %3981 = vmatpush.bf16.msra.mxu3 %v5718_v12  ;;  %v5726_v24 = vld [vmem:[#allocation2 + $0x1e0] sm:$0xff] }
 0x371   : > { %v7661_v54 = vpop.f32.mrf.mxu1  ;;  %v2963_v44 = vpop.f32.mrf.mxu2  ;;  %4167 = vmatpush.bf16.msra.mxu0 %v5726_v24  ;;  %v5707_v24 = vld [vmem:[#allocation2 + $0x148] sm:$0xff] }
 0x372   : > { %v2964_v8 = vadd.f32 %v2963_v44, %v7469_v52  ;;  %v3241_v29 = vpop.f32.mrf.mxu3 }
 0x373   : > { %v3431_v14 = vpop.f32.mrf.mxu0 }
 0x374   : > { %v3311_v46 = vadd.f32 %v3241_v29, %v2964_v8  ;;  %3621 = vmatmul.bf16.gmra.mxu1 %v7244_v18 }
 0x376   : > { %5228 = vmatmul.msk.bf16.gmra.mxu2 %vm7331_vm5, %v7475_v59  ;;  %5356 = vmatmul.msk.bf16.gmra.mxu0 %vm7331_vm5, %v7505_v21  ;;  %v7671_v20 = vadd.f32 %v3428_v32, %v3311_v46 }
 0x377   : > { %3283 = vmatmul.bf16.gmra.mxu3 %v7488_v10 }
 0x379   : > { %v7674_v35 = vpop.f32.mrf.mxu1  ;;  %v2966_v52 = vpop.f32.mrf.mxu2 }
 0x37a   : > { %v2967_v7 = vadd.f32 %v2966_v52, %v7480_v30  ;;  %v3244_v57 = vpop.f32.mrf.mxu3  ;;  %v5725_v52 = vld [vmem:[#allocation2 + $0x1d8] sm:$0xff] }
 0x37b   : > { %v3433_v28 = vpop.f32.mrf.mxu0  ;;  %4168 = vmatpush.bf16.msra.mxu0 %v5725_v52 }
 0x37c   : > { %v3312_v31 = vadd.f32 %v3244_v57, %v2967_v7 }
 0x37e   : > { %v7677_v44 = vadd.f32 %v3431_v14, %v3312_v31  ;;  %v5717_v14 = vld [vmem:[#allocation2 + $0x198] sm:$0xff] }
 0x37f   : > { %3982 = vmatpush.bf16.msra.mxu3 %v5717_v14 }
 0x381   : > { %v7679_v8 = vpop.f32.mrf.mxu1  ;;  %v2968_v46 = vpop.f32.mrf.mxu2 }
 0x382   : > { %v2969_v32 = vadd.f32 %v2968_v46, %v7499_v5  ;;  %v3246_v29 = vpop.f32.mrf.mxu3  ;;  %v5709_v5 = vld [vmem:[#allocation2 + $0x158] sm:$0xff] }
 0x383   : > { %v3436_v10 = vpop.f32.mrf.mxu0  ;;  %3796 = vmatpush.bf16.msra.mxu2 %v5709_v5 }
 0x384   : > { %v3313_v59 = vadd.f32 %v3246_v29, %v2969_v32  ;;  %3626 = vmatmul.bf16.gmra.mxu1 %v7270_v26  ;;  %v5724_v29 = vld [vmem:[#allocation2 + $0x1d0] sm:$0xff] }
 0x385   : > { %4169 = vmatpush.bf16.msra.mxu0 %v5724_v29 }
 0x386   : > { %5232 = vmatmul.msk.bf16.gmra.mxu2 %vm7331_vm5, %v7505_v21  ;;  %5360 = vmatmul.msk.bf16.gmra.mxu0 %vm7331_vm5, %v7535_v51  ;;  %v7689_v30 = vadd.f32 %v3433_v28, %v3313_v59  ;;  %v5708_v59 = vld [vmem:[#allocation2 + $0x150] sm:$0xff] }
 0x387   : > { %3288 = vmatmul.bf16.gmra.mxu3 %v7518_v37  ;;  %v5716_v28 = vld [vmem:[#allocation2 + $0x190] sm:$0xff]  ;;  %3797 = vmatpush.bf16.msra.mxu2 %v5708_v59  ;;  %v5715_v37 = vld [vmem:[#allocation2 + $0x188] sm:$0xff]  ;;  %v5722_v59 = vld [vmem:[#allocation2 + $0x1c0] sm:$0xff] }
 0x388   : > { %3983 = vmatpush.bf16.msra.mxu3 %v5716_v28 }
 0x389   : > { %v7692_v7 = vpop.f32.mrf.mxu1  ;;  %v2971_v57 = vpop.f32.mrf.mxu2  ;;  %4170 = vmatpush.bf16.msra.mxu0 %v5723_v1 }
 0x38a   : > { %v2972_v31 = vadd.f32 %v2971_v57, %v7510_v36  ;;  %v3249_v12 = vpop.f32.mrf.mxu3 }
 0x38b   : > { %v3438_v46 = vpop.f32.mrf.mxu0  ;;  %3798 = vmatpush.bf16.msra.mxu2 %v5707_v24 }
 0x38c   : > { %v3314_v32 = vadd.f32 %v3249_v12, %v2972_v31  ;;  %3984 = vmatpush.bf16.msra.mxu3 %v5715_v37  ;;  %v5706_v31 = vld [vmem:[#allocation2 + $0x140] sm:$0xff] }
 0x38d   : > { %v5714_v12 = vld [vmem:[#allocation2 + $0x180] sm:$0xff]  ;;  %4171 = vmatpush.bf16.msra.mxu0 %v5722_v59 }
 0x38e   : > { %v7695_v21 = vadd.f32 %v3436_v10, %v3314_v32 }
 0x38f   : > { %3799 = vmatpush.bf16.msra.mxu2 %v5706_v31 }
 0x390   : > { %3985 = vmatpush.bf16.msra.mxu3 %v5714_v12  ;;  %v5733_v12 = vld [vmem:[#allocation2 + $0x218] sm:$0xff] }
 0x391   : > { %v7697_v3 = vpop.f32.mrf.mxu1  ;;  %v2973_v5 = vpop.f32.mrf.mxu2  ;;  %4354 = vmatpush.bf16.msra.mxu1 %v5733_v12  ;;  %v8532_v12 = vld [vmem:[#allocation53_spill] sm:$0xff] }
 0x392   : > { %v2974_v36 = vadd.f32 %v2973_v5, %v7529_v25  ;;  %v3251_v14 = vpop.f32.mrf.mxu3 }
 0x393   : > { %v3441_v52 = vpop.f32.mrf.mxu0 }
 0x394   : > { %v3315_v57 = vadd.f32 %v3251_v14, %v2974_v36  ;;  %3631 = vmatmul.bf16.gmra.mxu1 %v7298_v50 }
 0x396   : > { %5236 = vmatmul.msk.bf16.gmra.mxu2 %vm7331_vm5, %v7535_v51  ;;  %5364 = vmatmul.msk.bf16.gmra.mxu0 %vm7331_vm5, %v7565_v16  ;;  %v7707_v10 = vadd.f32 %v3438_v46, %v3315_v57  ;;  %v5732_v51 = vld [vmem:[#allocation2 + $0x210] sm:$0xff] }
 0x397   : > { %3293 = vmatmul.bf16.gmra.mxu3 %v7548_v34  ;;  %v8534_v34 = vld [vmem:[#allocation65_spill] sm:$0xff]  ;;  %4355 = vmatpush.bf16.msra.mxu1 %v5732_v51 }
 0x399   : > { %v7710_v37 = vpop.f32.mrf.mxu1  ;;  %v2976_v25 = vpop.f32.mrf.mxu2 }
 0x39a   : > { %v2977_v32 = vadd.f32 %v2976_v25, %v7540_v23  ;;  %v3254_v28 = vpop.f32.mrf.mxu3 }
 0x39b   : > { %v3443_v29 = vpop.f32.mrf.mxu0 }
 0x39c   : > { %v3316_v24 = vadd.f32 %v3254_v28, %v2977_v32 }
 0x39e   : > { %v7713_v1 = vadd.f32 %v3441_v52, %v3316_v24 }
 0x3a1   : > { %v7715_v5 = vpop.f32.mrf.mxu1  ;;  %v2978_v36 = vpop.f32.mrf.mxu2 }
 0x3a2   : > { %v2979_v46 = vadd.f32 %v2978_v36, %v7559_v15  ;;  %v3256_v14 = vpop.f32.mrf.mxu3 }
 0x3a3   : > { %v3446_v57 = vpop.f32.mrf.mxu0 }
 0x3a4   : > { %v3317_v31 = vadd.f32 %v3256_v14, %v2979_v46  ;;  %3636 = vmatmul.bf16.gmra.mxu1 %v7324_v2 }
 0x3a6   : > { %5240 = vmatmul.msk.bf16.gmra.mxu2 %vm7331_vm5, %v7565_v16  ;;  %5368 = vmatmul.msk.bf16.gmra.mxu0 %vm7331_vm5, %v7597_v63  ;;  %v7725_v23 = vadd.f32 %v3443_v29, %v3317_v31 }
 0x3a7   : > { %3298 = vmatmul.bf16.gmra.mxu3 %v7578_v0  ;;  %v8531_v0 = vld [vmem:[#allocation62_spill] sm:$0xff] }
 0x3a9   : > { %v7728_v15 = vpop.f32.mrf.mxu1  ;;  %v2981_v52 = vpop.f32.mrf.mxu2 }
 0x3aa   : > { %v2982_v59 = vadd.f32 %v2981_v52, %v7570_v62  ;;  %v3259_v25 = vpop.f32.mrf.mxu3  ;;  %v8533_v52 = vld [vmem:[#allocation54_spill] sm:$0xff] }
 0x3ab   : > { %v3448_v32 = vpop.f32.mrf.mxu0 }
 0x3ac   : > { %v3318_v28 = vadd.f32 %v3259_v25, %v2982_v59 }
 0x3ae   : > { %v7731_v24 = vadd.f32 %v3446_v57, %v3318_v28 }
 0x3b1   : > { %v7733_v36 = vpop.f32.mrf.mxu1  ;;  %v2983_v46 = vpop.f32.mrf.mxu2 }
 0x3b2   : > { %v2984_v14 = vadd.f32 %v2983_v46, %v7589_v55  ;;  %v3261_v29 = vpop.f32.mrf.mxu3 }
 0x3b3   : > { %v3451_v31 = vpop.f32.mrf.mxu0 }
 0x3b4   : > { %v3319_v63 = vadd.f32 %v3261_v29, %v2984_v14  ;;  %3641 = vmatmul.bf16.gmra.mxu1 %v8531_v0 }
 0x3b6   : > { %3800 = vmatmul.bf16.vlgmr.msra.gmra.mxu2 %v8532_v12  ;;  %4172 = vmatmul.bf16.vlgmr.msra.gmra.mxu0 %v7201_v41  ;;  %v7739_v62 = vadd.f32 %v3448_v32, %v3319_v63 }
 0x3b7   : > { %5468 = vmatmul.msk.bf16.vlgmr.msra.gmra.mxu3 %vm7331_vm5, %v8533_v52 }
 0x3b9   : > { %v7744_v57 = vpop.f32.mrf.mxu1  ;;  %v2986_v59 = vpop.f32.mrf.mxu2 }
 0x3ba   : > { %v2987_v55 = vadd.f32 %v2986_v59, %v7599_v6  ;;  %v3264_v25 = vpop.f32.mrf.mxu3 }
 0x3bb   : > { %v3453_v28 = vpop.f32.mrf.mxu0 }
 0x3bc   : > { %v3320_v46 = vadd.f32 %v3264_v25, %v2987_v55 }
 0x3be   : > { %v7747_v14 = vadd.f32 %v3451_v31, %v3320_v46  ;;  %v8537_v31 = vld [vmem:[#allocation55_spill] sm:$0xff] }
 0x3c1   : > { %v2988_v29 = vpop.f32.mrf.mxu2  ;;  %v3607_v12 = vpop.f32.mrf.mxu1 }
 0x3c2   : > { %v2989_v41 = vadd.f32 %v2988_v29, %v7620_v49  ;;  %v3266_v63 = vpop.f32.mrf.mxu3  ;;  %v7751_v32 = vadd.f32 %v3607_v12, %v7595_v40 }
 0x3c3   : > { %v3456_v16 = vpop.f32.mrf.mxu0 }
 0x3c4   : > { %v3321_v52 = vadd.f32 %v3266_v63, %v2989_v41  ;;  %3646 = vmatmul.bf16.gmra.mxu1 %v8534_v34 }
 0x3c6   : > { %3805 = vmatmul.bf16.gmra.mxu2 %v8535_v39  ;;  %4177 = vmatmul.bf16.gmra.mxu0 %v7222_v33  ;;  %v7756_v6 = vadd.f32 %v3453_v28, %v3321_v52 }
 0x3c7   : > { %5472 = vmatmul.msk.bf16.gmra.mxu3 %vm7331_vm5, %v8537_v31 }
 0x3c8   : > { %8536 = vst [vmem:[#allocation62_spill] sm:$0xff] %v7756_v6  ;;  %v8538_v6 = vld [vmem:[#allocation63_spill] sm:$0xff] }
 0x3c9   : > { %v2991_v49 = vpop.f32.mrf.mxu2  ;;  %v3609_v59 = vpop.f32.mrf.mxu1 }
 0x3ca   : > { %v2992_v40 = vadd.f32 %v2991_v49, %v7625_v43  ;;  %v3269_v55 = vpop.f32.mrf.mxu3  ;;  %v7763_v25 = vadd.f32 %v3609_v59, %v7617_v22  ;;  %v8539_v43 = vld [vmem:[#allocation56_spill] sm:$0xff] }
 0x3cb   : > { %v3458_v46 = vpop.f32.mrf.mxu0 }
 0x3cc   : > { %v3322_v29 = vadd.f32 %v3269_v55, %v2992_v40 }
 0x3ce   : > { %v7765_v12 = vadd.f32 %v3456_v16, %v3322_v29  ;;  %v8541_v16 = vld [vmem:[#allocation59_spill] sm:$0xff] }
 0x3d1   : > { %v2993_v33 = vpop.f32.mrf.mxu2  ;;  %v3612_v28 = vpop.f32.mrf.mxu1 }
 0x3d2   : > { %v2994_v41 = vadd.f32 %v2993_v33, %v7638_v19  ;;  %v3271_v63 = vpop.f32.mrf.mxu3  ;;  %v7769_v52 = vadd.f32 %v3612_v28, %v7623_v61 }
 0x3d3   : > { %v3461_v51 = vpop.f32.mrf.mxu0 }
 0x3d4   : > { %v3323_v31 = vadd.f32 %v3271_v63, %v2994_v41  ;;  %3651 = vmatmul.bf16.gmra.mxu1 %v8538_v6 }
 0x3d6   : > { %3810 = vmatmul.bf16.gmra.mxu2 %v8539_v43  ;;  %4182 = vmatmul.bf16.gmra.mxu0 %v7244_v18  ;;  %v7774_v22 = vadd.f32 %v3458_v46, %v3323_v31 }
 0x3d7   : > { %5476 = vmatmul.msk.bf16.gmra.mxu3 %vm7331_vm5, %v8541_v16 }
 0x3d8   : > { %8540 = vst [vmem:[#allocation53_spill] sm:$0xff] %v7774_v22  ;;  %v8542_v22 = vld [vmem:[#allocation46_spill] sm:$0xff] }
 0x3d9   : > { %v2996_v49 = vpop.f32.mrf.mxu2  ;;  %v3614_v19 = vpop.f32.mrf.mxu1 }
 0x3da   : > { %v2997_v59 = vadd.f32 %v2996_v49, %v7643_v42  ;;  %v3274_v61 = vpop.f32.mrf.mxu3  ;;  %v7781_v40 = vadd.f32 %v3614_v19, %v7635_v47  ;;  %v5731_v42 = vld [vmem:[#allocation2 + $0x208] sm:$0xff]  ;;  %v8543_v49 = vld [vmem:[#allocation10_spill] sm:$0xff] }
 0x3db   : > { %v3463_v55 = vpop.f32.mrf.mxu0  ;;  %4356 = vmatpush.bf16.msra.mxu1 %v5731_v42 }
 0x3dc   : > { %v3324_v29 = vadd.f32 %v3274_v61, %v2997_v59 }
 0x3de   : > { %v7783_v33 = vadd.f32 %v3461_v51, %v3324_v29  ;;  %v8545_v51 = vld [vmem:[#allocation57_spill] sm:$0xff] }
 0x3e1   : > { %v2998_v28 = vpop.f32.mrf.mxu2  ;;  %v3617_v18 = vpop.f32.mrf.mxu1 }
 0x3e2   : > { %v2999_v46 = vadd.f32 %v2998_v28, %v7656_v53  ;;  %v3276_v41 = vpop.f32.mrf.mxu3  ;;  %v7787_v63 = vadd.f32 %v3617_v18, %v7641_v27 }
 0x3e3   : > { %v3466_v31 = vpop.f32.mrf.mxu0 }
 0x3e4   : > { %v3325_v16 = vadd.f32 %v3276_v41, %v2999_v46  ;;  %3656 = vmatmul.bf16.gmra.mxu1 %v8542_v22 }
 0x3e6   : > { %3815 = vmatmul.bf16.gmra.mxu2 %v8543_v49  ;;  %4187 = vmatmul.bf16.gmra.mxu0 %v7270_v26  ;;  %v7792_v47 = vadd.f32 %v3463_v55, %v3325_v16 }
 0x3e7   : > { %5480 = vmatmul.msk.bf16.gmra.mxu3 %vm7331_vm5, %v8545_v51 }
 0x3e8   : > { %8544 = vst [vmem:[#allocation54_spill] sm:$0xff] %v7792_v47  ;;  %v8546_v47 = vld [vmem:[#allocation49_spill] sm:$0xff] }
 0x3e9   : > { %v3001_v53 = vpop.f32.mrf.mxu2  ;;  %v3619_v19 = vpop.f32.mrf.mxu1 }
 0x3ea   : > { %v3002_v27 = vadd.f32 %v3001_v53, %v7661_v54  ;;  %v3279_v59 = vpop.f32.mrf.mxu3  ;;  %v7799_v61 = vadd.f32 %v3619_v19, %v7653_v11  ;;  %v8547_v54 = vld [vmem:[#allocation58_spill] sm:$0xff] }
 0x3eb   : > { %v3468_v29 = vpop.f32.mrf.mxu0 }
 0x3ec   : > { %v3326_v28 = vadd.f32 %v3279_v59, %v3002_v27 }
 0x3ee   : > { %v7801_v18 = vadd.f32 %v3466_v31, %v3326_v28  ;;  %v8549_v31 = vld [vmem:[#allocation11_spill] sm:$0xff] }
 0x3f1   : > { %v3003_v26 = vpop.f32.mrf.mxu2  ;;  %v3622_v55 = vpop.f32.mrf.mxu1 }
 0x3f2   : > { %v3004_v46 = vadd.f32 %v3003_v26, %v7674_v35  ;;  %v3281_v41 = vpop.f32.mrf.mxu3  ;;  %v7805_v16 = vadd.f32 %v3622_v55, %v7659_v45 }
 0x3f3   : > { %v3471_v42 = vpop.f32.mrf.mxu0 }
 0x3f4   : > { %v3327_v51 = vadd.f32 %v3281_v41, %v3004_v46  ;;  %3661 = vmatmul.bf16.gmra.mxu1 %v8546_v47 }
 0x3f6   : > { %3820 = vmatmul.bf16.gmra.mxu2 %v8547_v54  ;;  %4192 = vmatmul.bf16.gmra.mxu0 %v7298_v50  ;;  %v7810_v11 = vadd.f32 %v3468_v29, %v3327_v51 }
 0x3f7   : > { %5484 = vmatmul.msk.bf16.gmra.mxu3 %vm7331_vm5, %v8549_v31 }
 0x3f8   : > { %8548 = vst [vmem:[#allocation65_spill] sm:$0xff] %v7810_v11  ;;  %v8550_v11 = vld [vmem:[#allocation50_spill] sm:$0xff] }
 0x3f9   : > { %v3006_v53 = vpop.f32.mrf.mxu2  ;;  %v3624_v35 = vpop.f32.mrf.mxu1 }
 0x3fa   : > { %v3007_v19 = vadd.f32 %v3006_v53, %v7679_v8  ;;  %v3284_v45 = vpop.f32.mrf.mxu3  ;;  %v7817_v27 = vadd.f32 %v3624_v35, %v7671_v20  ;;  %v5730_v8 = vld [vmem:[#allocation2 + $0x200] sm:$0xff] }
 0x3fb   : > { %v3473_v59 = vpop.f32.mrf.mxu0  ;;  %v8551_v53 = vld [vmem:[#allocation16_spill] sm:$0xff]  ;;  %4357 = vmatpush.bf16.msra.mxu1 %v5730_v8 }
 0x3fc   : > { %v3328_v28 = vadd.f32 %v3284_v45, %v3007_v19 }
 0x3fe   : > { %v7819_v26 = vadd.f32 %v3471_v42, %v3328_v28 }
 0x401   : > { %v3008_v55 = vpop.f32.mrf.mxu2  ;;  %v3627_v50 = vpop.f32.mrf.mxu1 }
 0x402   : > { %v3009_v29 = vadd.f32 %v3008_v55, %v7692_v7  ;;  %v3286_v46 = vpop.f32.mrf.mxu3  ;;  %v7823_v41 = vadd.f32 %v3627_v50, %v7677_v44 }
 0x403   : > { %v3476_v51 = vpop.f32.mrf.mxu0 }
 0x404   : > { %v3329_v31 = vadd.f32 %v3286_v46, %v3009_v29  ;;  %3666 = vmatmul.bf16.gmra.mxu1 %v8550_v11 }
 0x406   : > { %3825 = vmatmul.bf16.gmra.mxu2 %v8551_v53  ;;  %4197 = vmatmul.bf16.gmra.mxu0 %v7324_v2  ;;  %v7828_v20 = vadd.f32 %v3473_v59, %v3329_v31 }
 0x407   : > { %5488 = vmatmul.msk.bf16.gmra.mxu3 %vm7331_vm5, %v7311_v13 }
 0x409   : > { %v3011_v7 = vpop.f32.mrf.mxu2  ;;  %v3629_v42 = vpop.f32.mrf.mxu1 }
 0x40a   : > { %v3012_v44 = vadd.f32 %v3011_v7, %v7697_v3  ;;  %v3289_v35 = vpop.f32.mrf.mxu3  ;;  %v7835_v19 = vadd.f32 %v3629_v42, %v7689_v30  ;;  %v8552_v3 = vld [vmem:[#allocation61_spill] sm:$0xff] }
 0x40b   : > { %v3478_v45 = vpop.f32.mrf.mxu0 }
 0x40c   : > { %v3330_v28 = vadd.f32 %v3289_v35, %v3012_v44 }
 0x40e   : > { %v7837_v55 = vadd.f32 %v3476_v51, %v3330_v28 }
 0x411   : > { %v3013_v2 = vpop.f32.mrf.mxu2  ;;  %v3632_v59 = vpop.f32.mrf.mxu1 }
 0x412   : > { %v3014_v50 = vadd.f32 %v3013_v2, %v7710_v37  ;;  %v3291_v29 = vpop.f32.mrf.mxu3  ;;  %v7841_v13 = vadd.f32 %v3632_v59, %v7695_v21 }
 0x413   : > { %v3481_v46 = vpop.f32.mrf.mxu0 }
 0x414   : > { %v3331_v31 = vadd.f32 %v3291_v29, %v3014_v50  ;;  %3671 = vmatmul.bf16.gmra.mxu1 %v7545_v56 }
 0x416   : > { %3830 = vmatmul.bf16.gmra.mxu2 %v8552_v3  ;;  %4202 = vmatmul.bf16.gmra.mxu0 %v8531_v0  ;;  %v7846_v30 = vadd.f32 %v3478_v45, %v3331_v31 }
 0x417   : > { %5492 = vmatmul.msk.bf16.gmra.mxu3 %vm7331_vm5, %v7352_v60 }
 0x419   : > { %v3016_v51 = vpop.f32.mrf.mxu2  ;;  %v3634_v37 = vpop.f32.mrf.mxu1 }
 0x41a   : > { %v3017_v8 = vadd.f32 %v3016_v51, %v7715_v5  ;;  %v3294_v21 = vpop.f32.mrf.mxu3  ;;  %v7853_v7 = vadd.f32 %v3634_v37, %v7707_v10  ;;  %v8553_v5 = vld [vmem:[#allocation64_spill] sm:$0xff] }
 0x41b   : > { %v3483_v42 = vpop.f32.mrf.mxu0 }
 0x41c   : > { %v3332_v44 = vadd.f32 %v3294_v21, %v3017_v8 }
 0x41e   : > { %v7855_v35 = vadd.f32 %v3481_v46, %v3332_v44 }
 0x421   : > { %v3018_v28 = vpop.f32.mrf.mxu2  ;;  %v3637_v0 = vpop.f32.mrf.mxu1 }
 0x422   : > { %v3019_v45 = vadd.f32 %v3018_v28, %v7728_v15  ;;  %v3296_v2 = vpop.f32.mrf.mxu3  ;;  %v7859_v59 = vadd.f32 %v3637_v0, %v7713_v1 }
 0x423   : > { %v3486_v60 = vpop.f32.mrf.mxu0 }
 0x424   : > { %v3333_v50 = vadd.f32 %v3296_v2, %v3019_v45  ;;  %3676 = vmatmul.bf16.gmra.mxu1 %v7575_v4 }
 0x426   : > { %3835 = vmatmul.bf16.gmra.mxu2 %v8553_v5  ;;  %4207 = vmatmul.bf16.gmra.mxu0 %v8534_v34  ;;  %v7864_v10 = vadd.f32 %v3483_v42, %v3333_v50 }
 0x427   : > { %5496 = vmatmul.msk.bf16.gmra.mxu3 %vm7331_vm5, %v7380_v48 }
 0x429   : > { %v3021_v29 = vpop.f32.mrf.mxu2  ;;  %v3639_v15 = vpop.f32.mrf.mxu1 }
 0x42a   : > { %v3022_v46 = vadd.f32 %v3021_v29, %v7733_v36  ;;  %v3299_v1 = vpop.f32.mrf.mxu3  ;;  %v7871_v31 = vadd.f32 %v3639_v15, %v7725_v23 }
 0x42b   : > { %v3488_v51 = vpop.f32.mrf.mxu0 }
 0x42c   : > { %v3334_v37 = vadd.f32 %v3299_v1, %v3022_v46 }
 0x42e   : > { %v7873_v8 = vadd.f32 %v3486_v60, %v3334_v37 }
 0x431   : > { %v3023_v21 = vpop.f32.mrf.mxu2  ;;  %v3642_v34 = vpop.f32.mrf.mxu1 }
 0x432   : > { %v3024_v42 = vadd.f32 %v3023_v21, %v7744_v57  ;;  %v3301_v44 = vpop.f32.mrf.mxu3  ;;  %v7877_v28 = vadd.f32 %v3642_v34, %v7731_v24  ;;  %v8555_v21 = vld [vmem:[#allocation47_spill] sm:$0xff] }
 0x433   : > { %v4173_v48 = vpop.f32.mrf.mxu0 }
 0x434   : > { %v3335_v0 = vadd.f32 %v3301_v44, %v3024_v42  ;;  %3681 = vmatmul.bf16.gmra.mxu1 %v7605_v17  ;;  %v8556_v42 = vld [vmem:[#allocation62_spill] sm:$0xff] }
 0x436   : > { %3840 = vmatmul.bf16.gmra.mxu2 %v7393_v9  ;;  %4212 = vmatmul.bf16.gmra.mxu0 %v8538_v6  ;;  %v7882_v23 = vadd.f32 %v3488_v51, %v3335_v0 }
 0x437   : > { %5500 = vmatmul.msk.bf16.gmra.mxu3 %vm7331_vm5, %v7410_v38 }
 0x439   : > { %v3644_v36 = vpop.f32.mrf.mxu1  ;;  %v3801_v57 = vpop.f32.mrf.mxu2 }
 0x43a   : > { %v7888_v45 = vadd.f32 %v3644_v36, %v7739_v62  ;;  %v3881_v24 = vadd.f32 %v3801_v57, %v7751_v32  ;;  %v3987_v2 = vpop.f32.mrf.mxu3  ;;  %v8554_v62 = vld [vmem:[#allocation25_spill] sm:$0xff] }
 0x43b   : > { %v4175_v60 = vpop.f32.mrf.mxu0 }
 0x43c   : > { %v4067_v50 = vadd.f32 %v3987_v2, %v3881_v24 }
 0x43e   : > { %v7891_v29 = vadd.f32 %v4173_v48, %v4067_v50 }
 0x441   : > { %v3647_v15 = vpop.f32.mrf.mxu1  ;;  %v3803_v6 = vpop.f32.mrf.mxu2 }
 0x442   : > { %v7894_v46 = vadd.f32 %v3647_v15, %v7747_v14  ;;  %v3882_v1 = vadd.f32 %v3803_v6, %v7763_v25  ;;  %v3989_v38 = vpop.f32.mrf.mxu3  ;;  %v8557_v6 = vld [vmem:[#allocation48_spill] sm:$0xff] }
 0x443   : > { %v4178_v51 = vpop.f32.mrf.mxu0 }
 0x444   : > { %v4068_v37 = vadd.f32 %v3989_v38, %v3882_v1  ;;  %4358 = vmatmul.bf16.vlgmr.msra.gmra.mxu1 %v8535_v39  ;;  %v8558_v1 = vld [vmem:[#allocation30_spill] sm:$0xff] }
 0x446   : > { %3845 = vmatmul.bf16.gmra.mxu2 %v8554_v62  ;;  %4217 = vmatmul.bf16.gmra.mxu0 %v8542_v22  ;;  %v7900_v32 = vadd.f32 %v4175_v60, %v4068_v37 }
 0x447   : > { %5504 = vmatmul.msk.bf16.gmra.mxu3 %vm7331_vm5, %v8555_v21 }
 0x449   : > { %v3649_v34 = vpop.f32.mrf.mxu1  ;;  %v3806_v14 = vpop.f32.mrf.mxu2 }
 0x44a   : > { %v7906_v44 = vadd.f32 %v3649_v34, %v8556_v42  ;;  %v3883_v25 = vadd.f32 %v3806_v14, %v7769_v52  ;;  %v3992_v48 = vpop.f32.mrf.mxu3 }
 0x44b   : > { %v4180_v39 = vpop.f32.mrf.mxu0 }
 0x44c   : > { %v4069_v0 = vadd.f32 %v3992_v48, %v3883_v25 }
 0x44e   : > { %v7909_v36 = vadd.f32 %v4178_v51, %v4069_v0  ;;  %v8559_v51 = vld [vmem:[#allocation53_spill] sm:$0xff] }
 0x451   : > { %v3652_v57 = vpop.f32.mrf.mxu1  ;;  %v3808_v22 = vpop.f32.mrf.mxu2 }
 0x452   : > { %v7912_v24 = vadd.f32 %v3652_v57, %v7765_v12  ;;  %v3884_v2 = vadd.f32 %v3808_v22, %v7781_v40  ;;  %v3994_v60 = vpop.f32.mrf.mxu3  ;;  %v8560_v57 = vld [vmem:[#allocation68_spill] sm:$0xff]  ;;  %v8561_v22 = vld [vmem:[#allocation35_spill] sm:$0xff] }
 0x453   : > { %v4183_v15 = vpop.f32.mrf.mxu0 }
 0x454   : > { %v4070_v50 = vadd.f32 %v3994_v60, %v3884_v2  ;;  %4363 = vmatmul.bf16.gmra.mxu1 %v8539_v43 }
 0x456   : > { %3850 = vmatmul.bf16.gmra.mxu2 %v8557_v6  ;;  %4222 = vmatmul.bf16.gmra.mxu0 %v8546_v47  ;;  %v7918_v52 = vadd.f32 %v4180_v39, %v4070_v50 }
 0x457   : > { %5508 = vmatmul.msk.bf16.gmra.mxu3 %vm7331_vm5, %v8558_v1 }
 0x459   : > { %v3654_v38 = vpop.f32.mrf.mxu1  ;;  %v3811_v12 = vpop.f32.mrf.mxu2 }
 0x45a   : > { %v7924_v37 = vadd.f32 %v3654_v38, %v8559_v51  ;;  %v3885_v40 = vadd.f32 %v3811_v12, %v7787_v63  ;;  %v3997_v21 = vpop.f32.mrf.mxu3 }
 0x45b   : > { %v4185_v14 = vpop.f32.mrf.mxu0 }
 0x45c   : > { %v4071_v43 = vadd.f32 %v3997_v21, %v3885_v40 }
 0x45e   : > { %v7927_v34 = vadd.f32 %v4183_v15, %v4071_v43 }
 0x461   : > { %v3657_v42 = vpop.f32.mrf.mxu1  ;;  %v3813_v47 = vpop.f32.mrf.mxu2 }
 0x462   : > { %v7930_v25 = vadd.f32 %v3657_v42, %v7783_v33  ;;  %v3886_v48 = vadd.f32 %v3813_v47, %v7799_v61  ;;  %v3999_v0 = vpop.f32.mrf.mxu3  ;;  %v8562_v33 = vld [vmem:[#allocation54_spill] sm:$0xff]  ;;  %v8563_v42 = vld [vmem:[#allocation52_spill] sm:$0xff]  ;;  %v8564_v47 = vld [vmem:[#allocation69_spill] sm:$0xff] }
 0x463   : > { %v4188_v1 = vpop.f32.mrf.mxu0 }
 0x464   : > { %v4072_v39 = vadd.f32 %v3999_v0, %v3886_v48  ;;  %4368 = vmatmul.bf16.gmra.mxu1 %v8543_v49 }
 0x466   : > { %3855 = vmatmul.bf16.gmra.mxu2 %v8560_v57  ;;  %4227 = vmatmul.bf16.gmra.mxu0 %v8550_v11  ;;  %v7936_v63 = vadd.f32 %v4185_v14, %v4072_v39 }
 0x467   : > { %5512 = vmatmul.msk.bf16.gmra.mxu3 %vm7331_vm5, %v8561_v22 }
 0x469   : > { %v3659_v2 = vpop.f32.mrf.mxu1  ;;  %v3816_v60 = vpop.f32.mrf.mxu2 }
 0x46a   : > { %v7942_v50 = vadd.f32 %v3659_v2, %v8562_v33  ;;  %v3887_v61 = vadd.f32 %v3816_v60, %v7805_v16  ;;  %v4002_v15 = vpop.f32.mrf.mxu3 }
 0x46b   : > { %v4190_v14 = vpop.f32.mrf.mxu0 }
 0x46c   : > { %v4073_v49 = vadd.f32 %v4002_v15, %v3887_v61 }
 0x46e   : > { %v7945_v38 = vadd.f32 %v4188_v1, %v4073_v49 }
 0x471   : > { %v3662_v12 = vpop.f32.mrf.mxu1  ;;  %v3818_v11 = vpop.f32.mrf.mxu2 }
 0x472   : > { %v7948_v51 = vadd.f32 %v3662_v12, %v7801_v18  ;;  %v3888_v40 = vadd.f32 %v3818_v11, %v7817_v27  ;;  %v4004_v21 = vpop.f32.mrf.mxu3  ;;  %v8565_v18 = vld [vmem:[#allocation65_spill] sm:$0xff] }
 0x474   : > { %v4074_v43 = vadd.f32 %v4004_v21, %v3888_v40  ;;  %4373 = vmatmul.bf16.gmra.mxu1 %v8547_v54  ;;  %v8566_v54 = vld [vmem:[#allocation40_spill] sm:$0xff] }
 0x476   : > { %3860 = vmatmul.bf16.gmra.mxu2 %v8563_v42  ;;  %4232 = vmatmul.bf16.gmra.mxu0 %v7545_v56  ;;  %v7954_v16 = vadd.f32 %v4190_v14, %v4074_v43  ;;  %v8567_v56 = vld [vmem:[#allocation70_spill] sm:$0xff] }
 0x477   : > { %5516 = vmatmul.msk.bf16.gmra.mxu3 %vm7331_vm5, %v8564_v47 }
 0x479   : > { %v3664_v48 = vpop.f32.mrf.mxu1  ;;  %v3821_v21 = vpop.f32.mrf.mxu2 }
 0x47a   : > { %v7960_v0 = vadd.f32 %v3664_v48, %v8565_v18  ;;  %v4007_v47 = vpop.f32.mrf.mxu3  ;;  %v8574_v48 = vld [vmem:[#allocation13_spill] sm:$0xff] }
 0x481   : > { %v3667_v27 = vpop.f32.mrf.mxu1 }
 0x482   : > { %v7963_v39 = vadd.f32 %v3667_v27, %v7819_v26  ;;  %v8568_v26 = vld [vmem:[#allocation71_spill] sm:$0xff]  ;;  %v4193_v27 = vpop.f32.mrf.mxu0 }
 0x484   : > { %4378 = vmatmul.bf16.gmra.mxu1 %v8551_v53  ;;  %v8569_v53 = vld [vmem:[#allocation72_spill] sm:$0xff] }
 0x486   : > { %3865 = vmatmul.bf16.gmra.mxu2 %v8566_v54  ;;  %4237 = vmatmul.bf16.gmra.mxu0 %v7575_v4 }
 0x487   : > { %5520 = vmatmul.msk.bf16.gmra.mxu3 %vm7331_vm5, %v8567_v56  ;;  %v3823_v56 = vpop.f32.mrf.mxu2 }
 0x489   : > { %v3669_v22 = vpop.f32.mrf.mxu1 }
 0x48a   : > { %v7972_v2 = vadd.f32 %v3669_v22, %v7828_v20 }
 0x491   : > { %v3672_v60 = vpop.f32.mrf.mxu1 }
 0x492   : > { %v7975_v33 = vadd.f32 %v3672_v60, %v7837_v55  ;;  %v8570_v55 = vld [vmem:[#allocation73_spill] sm:$0xff] }
 0x494   : > { %4383 = vmatmul.bf16.gmra.mxu1 %v8552_v3  ;;  %v8571_v3 = vld [vmem:[#allocation51_spill] sm:$0xff] }
 0x496   : > { %3870 = vmatmul.bf16.gmra.mxu2 %v8568_v26  ;;  %4242 = vmatmul.bf16.gmra.mxu0 %v7605_v17  ;;  %v8572_v17 = vmov 0.0|0.0  }
 0x497   : > { %5524 = vmatmul.msk.bf16.gmra.mxu3 %vm7331_vm5, %v8569_v53 }
 0x499   : > { %v3674_v4 = vpop.f32.mrf.mxu1 }
 0x49a   : > { %v7984_v61 = vadd.f32 %v3674_v4, %v7846_v30  ;;  %v8575_v4 = vld [vmem:[#allocation17_spill] sm:$0xff] }
 0x4a1   : > { %v3677_v20 = vpop.f32.mrf.mxu1 }
 0x4a2   : > { %v7987_v15 = vadd.f32 %v3677_v20, %v7855_v35  ;;  %v4009_v20 = vpop.f32.mrf.mxu3 }
 0x4a4   : > { %4388 = vmatmul.bf16.gmra.mxu1 %v8553_v5  ;;  %v8006_v5 = vld [vmem:[%s8187_s4] ss:$0 sm:$0xff] }
 0x4a6   : > { %3875 = vmatmul.bf16.gmra.mxu2 %v8570_v55  ;;  %4247 = vmatmul.bf16.gmra.mxu0 %v8571_v3 }
 0x4a7   : > { %4061 = vmatmul.bf16.gmra.mxu3 %v8572_v17 }
 0x4a9   : > { %v3679_v58 = vpop.f32.mrf.mxu1 }
 0x4aa   : > { %v7994_v1 = vadd.f32 %v3679_v58, %v7864_v10  ;;  %v4195_v58 = vpop.f32.mrf.mxu0 }
 0x4b1   : > { %v3682_v49 = vpop.f32.mrf.mxu1 }
 0x4b2   : > { %v7997_v30 = vadd.f32 %v3682_v49, %v7873_v8 }
 0x4b4   : > { %4393 = vmatmul.bf16.gmra.mxu1 %v7393_v9  ;;  %v8573_v9 = vld [vmem:[#allocation12_spill] sm:$0xff] }
 0x4b9   : > { %v3684_v35 = vpop.f32.mrf.mxu1 }
 0x4ba   : > { %v8001_v12 = vadd.f32 %v3684_v35, %v7882_v23  ;;  %v3826_v35 = vpop.f32.mrf.mxu2 }
 0x4c1   : > { %v4359_v11 = vpop.f32.mrf.mxu1 }
 0x4c2   : > { %v4439_v10 = vadd.f32 %v4359_v11, %v7891_v29 }
 0x4c4   : > { %v4475_v8 = vadd.f32 %v8006_v5, %v4439_v10  ;;  %4398 = vmatmul.bf16.gmra.mxu1 %v8554_v62  ;;  %v8576_v10 = vld [vmem:[#allocation18_spill] sm:$0xff] }
 0x4c6   : > { %v4507_v40 = vadd.f32 %v4475_v8, %v8573_v9  ;;  %v4012_v9 = vpop.f32.mrf.mxu3 }
 0x4c8   : > { %v4539_v23 = vmax.f32 %v4507_v40, 0.0 }
 0x4c9   : > { %v4361_v43 = vpop.f32.mrf.mxu1 }
 0x4ca   : > { %4571 = vst [vmem:[%s8015_s17] sm:$0xff] %v4539_v23  ;;  %v4440_v14 = vadd.f32 %v4361_v43, %v7900_v32  ;;  %v4198_v23 = vpop.f32.mrf.mxu0 }
 0x4cc   : > { %v4476_v29 = vadd.f32 %v8006_v5, %v4440_v14  ;;  %v3828_v14 = vpop.f32.mrf.mxu2 }
 0x4ce   : > { %v4508_v18 = vadd.f32 %v4476_v29, %v8574_v48 }
 0x4d0   : > { %v4540_v62 = vmax.f32 %v4508_v18, 0.0 }
 0x4d1   : > { %v4364_v22 = vpop.f32.mrf.mxu1 }
 0x4d2   : > { %4572 = vst [vmem:[%s8015_s17 + $0x8] sm:$0xff] %v4540_v62  ;;  %v4441_v60 = vadd.f32 %v4364_v22, %v7909_v36  ;;  %v4014_v22 = vpop.f32.mrf.mxu3 }
 0x4d4   : > { %v4477_v53 = vadd.f32 %v8006_v5, %v4441_v60  ;;  %4403 = vmatmul.bf16.gmra.mxu1 %v8557_v6 }
 0x4d6   : > { %v4509_v32 = vadd.f32 %v4477_v53, %v8575_v4  ;;  %v4200_v53 = vpop.f32.mrf.mxu0  ;;  %v8578_v4 = vld [vmem:[#allocation22_spill] sm:$0xff] }
 0x4d8   : > { %v4541_v3 = vmax.f32 %v4509_v32, 0.0  ;;  %v3831_v32 = vpop.f32.mrf.mxu2 }
 0x4d9   : > { %v4366_v17 = vpop.f32.mrf.mxu1 }
 0x4da   : > { %4573 = vst [vmem:[%s8015_s17 + $0x10] sm:$0xff] %v4541_v3  ;;  %v4442_v49 = vadd.f32 %v4366_v17, %v7918_v52  ;;  %v8577_v52 = vld [vmem:[#allocation21_spill] sm:$0xff] }
 0x4dc   : > { %v4478_v11 = vadd.f32 %v8006_v5, %v4442_v49 }
 0x4de   : > { %v4510_v36 = vadd.f32 %v4478_v11, %v8576_v10  ;;  %v4017_v11 = vpop.f32.mrf.mxu3  ;;  %v8579_v10 = vld [vmem:[#allocation26_spill] sm:$0xff] }
 0x4e0   : > { %v4542_v8 = vmax.f32 %v4510_v36, 0.0  ;;  %v3889_v36 = vadd.f32 %v3821_v21, %v7823_v41 }
 0x4e1   : > { %v4369_v40 = vpop.f32.mrf.mxu1 }
 0x4e2   : > { %4574 = vst [vmem:[%s8015_s17 + $0x18] sm:$0xff] %v4542_v8  ;;  %v4443_v6 = vadd.f32 %v4369_v40, %v7927_v34  ;;  %v4203_v8 = vpop.f32.mrf.mxu0 }
 0x4e4   : > { %v4479_v43 = vadd.f32 %v8006_v5, %v4443_v6  ;;  %4408 = vmatmul.bf16.gmra.mxu1 %v8560_v57  ;;  %v3833_v6 = vpop.f32.mrf.mxu2 }
 0x4e6   : > { %v4511_v29 = vadd.f32 %v4479_v43, %v8577_v52 }
 0x4e8   : > { %v4543_v48 = vmax.f32 %v4511_v29, 0.0  ;;  %v4075_v29 = vadd.f32 %v4007_v47, %v3889_v36 }
 0x4e9   : > { %v4371_v18 = vpop.f32.mrf.mxu1 }
 0x4ea   : > { %4575 = vst [vmem:[%s8015_s17 + $0x20] sm:$0xff] %v4543_v48  ;;  %v4444_v62 = vadd.f32 %v4371_v18, %v7936_v63  ;;  %v8580_v48 = vld [vmem:[#allocation27_spill] sm:$0xff]  ;;  %v4205_v21 = vpop.f32.mrf.mxu0 }
 0x4ec   : > { %v4480_v60 = vadd.f32 %v8006_v5, %v4444_v62  ;;  %v4019_v62 = vpop.f32.mrf.mxu3 }
 0x4ee   : > { %v4512_v34 = vadd.f32 %v4480_v60, %v8578_v4  ;;  %v4261_v4 = vadd.f32 %v4193_v27, %v4075_v29 }
 0x4f0   : > { %v4544_v3 = vmax.f32 %v4512_v34, 0.0 }
 0x4f1   : > { %v4374_v17 = vpop.f32.mrf.mxu1 }
 0x4f2   : > { %4576 = vst [vmem:[%s8015_s17 + $0x28] sm:$0xff] %v4544_v3  ;;  %v4445_v57 = vadd.f32 %v4374_v17, %v7945_v38  ;;  %v3836_v3 = vpop.f32.mrf.mxu2 }
 0x4f4   : > { %v4481_v49 = vadd.f32 %v8006_v5, %v4445_v57  ;;  %4413 = vmatmul.bf16.gmra.mxu1 %v8563_v42  ;;  %v3890_v42 = vadd.f32 %v3823_v56, %v7835_v19  ;;  %v4022_v56 = vpop.f32.mrf.mxu3 }
 0x4f6   : > { %v4513_v63 = vadd.f32 %v4481_v49, %v8579_v10  ;;  %v4076_v17 = vadd.f32 %v4009_v20, %v3890_v42  ;;  %v3891_v49 = vadd.f32 %v3826_v35, %v7841_v13 }
 0x4f8   : > { %v4545_v40 = vmax.f32 %v4513_v63, 0.0  ;;  %v4262_v19 = vadd.f32 %v4195_v58, %v4076_v17  ;;  %v4077_v36 = vadd.f32 %v4012_v9, %v3891_v49 }
 0x4f9   : > { %v4376_v43 = vpop.f32.mrf.mxu1 }
 0x4fa   : > { %4577 = vst [vmem:[%s8015_s17 + $0x30] sm:$0xff] %v4545_v40  ;;  %v4446_v52 = vadd.f32 %v4376_v43, %v7954_v16  ;;  %v8581_v16 = vld [vmem:[#allocation31_spill] sm:$0xff]  ;;  %v4208_v40 = vpop.f32.mrf.mxu0  ;;  %v3838_v20 = vpop.f32.mrf.mxu2 }
 0x4fc   : > { %v4482_v38 = vadd.f32 %v8006_v5, %v4446_v52  ;;  %v8582_v52 = vld [vmem:[#allocation32_spill] sm:$0xff]  ;;  %v4024_v58 = vpop.f32.mrf.mxu3 }
 0x4fe   : > { %v4514_v18 = vadd.f32 %v4482_v38, %v8580_v48  ;;  %v4263_v48 = vadd.f32 %v4198_v23, %v4077_v36 }
 0x500   : > { %v4546_v60 = vmax.f32 %v4514_v18, 0.0 }
 0x501   : > { %v4379_v41 = vpop.f32.mrf.mxu1 }
 0x502   : > { %4578 = vst [vmem:[%s8015_s17 + $0x38] sm:$0xff] %v4546_v60  ;;  %v4447_v34 = vadd.f32 %v4379_v41, %v4261_v4  ;;  %v4210_v9 = vpop.f32.mrf.mxu0  ;;  %v8583_v60 = vld [vmem:[#allocation36_spill] sm:$0xff]  ;;  %v3841_v41 = vpop.f32.mrf.mxu2 }
 0x504   : > { %v4483_v57 = vadd.f32 %v8006_v5, %v4447_v34  ;;  %4418 = vmatmul.bf16.gmra.mxu1 %v8566_v54  ;;  %v3892_v54 = vadd.f32 %v3828_v14, %v7853_v7  ;;  %v3893_v34 = vadd.f32 %v3831_v32, %v7859_v59 }
 0x506   : > { %v4515_v47 = vadd.f32 %v4483_v57, %v8581_v16  ;;  %v4078_v18 = vadd.f32 %v4014_v22, %v3892_v54  ;;  %v4079_v57 = vadd.f32 %v4017_v11, %v3893_v34  ;;  %v4027_v22 = vpop.f32.mrf.mxu3  ;;  %v8585_v11 = vld [vmem:[#allocation41_spill] sm:$0xff] }
 0x508   : > { %v4547_v10 = vmax.f32 %v4515_v47, 0.0  ;;  %v4264_v14 = vadd.f32 %v4200_v53, %v4078_v18  ;;  %v8584_v47 = vld [vmem:[#allocation37_spill] sm:$0xff] }
 0x509   : > { %v4381_v63 = vpop.f32.mrf.mxu1 }
 0x50a   : > { %4579 = vst [vmem:[%s8015_s17 + $0x40] sm:$0xff] %v4547_v10  ;;  %v4448_v27 = vadd.f32 %v4381_v63, %v4262_v19  ;;  %v4213_v10 = vpop.f32.mrf.mxu0  ;;  %v4265_v63 = vadd.f32 %v4203_v8, %v4079_v57  ;;  %v3897_v57 = vadd.f32 %v3841_v41, %v7894_v46 }
 0x50c   : > { %v4484_v43 = vadd.f32 %v8006_v5, %v4448_v27  ;;  %v3843_v27 = vpop.f32.mrf.mxu2 }
 0x50e   : > { %v4516_v29 = vadd.f32 %v4484_v43, %v8582_v52  ;;  %v4029_v52 = vpop.f32.mrf.mxu3 }
 0x510   : > { %v4548_v38 = vmax.f32 %v4516_v29, 0.0  ;;  %v3895_v29 = vadd.f32 %v3836_v3, %v7877_v28 }
 0x511   : > { %v4384_v13 = vpop.f32.mrf.mxu1 }
 0x512   : > { %4580 = vst [vmem:[%s8015_s17 + $0x48] sm:$0xff] %v4548_v38  ;;  %v4449_v35 = vadd.f32 %v4384_v13, %v4263_v48  ;;  %v4215_v38 = vpop.f32.mrf.mxu0  ;;  %v4081_v13 = vadd.f32 %v4022_v56, %v3895_v29  ;;  %v8590_v29 = vld [vmem:[#allocation14_spill] sm:$0xff] }
 0x514   : > { %v4485_v42 = vadd.f32 %v8006_v5, %v4449_v35  ;;  %4423 = vmatmul.bf16.gmra.mxu1 %v8568_v26  ;;  %v3894_v26 = vadd.f32 %v3833_v6, %v7871_v31  ;;  %v3846_v48 = vpop.f32.mrf.mxu2  ;;  %v8586_v35 = vld [vmem:[#allocation42_spill] sm:$0xff] }
 0x516   : > { %v4517_v4 = vadd.f32 %v4485_v42, %v8583_v60  ;;  %v4080_v53 = vadd.f32 %v4019_v62, %v3894_v26  ;;  %v4267_v60 = vadd.f32 %v4208_v40, %v4081_v13 }
 0x518   : > { %v4549_v7 = vmax.f32 %v4517_v4, 0.0  ;;  %v4266_v6 = vadd.f32 %v4205_v21, %v4080_v53  ;;  %v4032_v4 = vpop.f32.mrf.mxu3 }
 0x519   : > { %v4386_v17 = vpop.f32.mrf.mxu1 }
 0x51a   : > { %4581 = vst [vmem:[%s8015_s17 + $0x50] sm:$0xff] %v4549_v7  ;;  %v4450_v23 = vadd.f32 %v4386_v17, %v4264_v14  ;;  %v4218_v34 = vpop.f32.mrf.mxu0  ;;  %v8587_v14 = vld [vmem:[#allocation60_spill] sm:$0xff] }
 0x51b   : > { %v8588_v17 = vld [vmem:[#allocation8_spill] sm:$0xff] }
 0x51c   : > { %v4486_v16 = vadd.f32 %v8006_v5, %v4450_v23  ;;  %v3848_v56 = vpop.f32.mrf.mxu2 }
 0x51e   : > { %v4518_v49 = vadd.f32 %v4486_v16, %v8584_v47 }
 0x520   : > { %v4550_v19 = vmax.f32 %v4518_v49, 0.0  ;;  %v4034_v47 = vpop.f32.mrf.mxu3  ;;  %v4083_v49 = vadd.f32 %v4027_v22, %v3897_v57 }
 0x521   : > { %v4389_v59 = vpop.f32.mrf.mxu1 }
 0x522   : > { %4582 = vst [vmem:[%s8015_s17 + $0x58] sm:$0xff] %v4550_v19  ;;  %v4451_v32 = vadd.f32 %v4389_v59, %v4265_v63  ;;  %v4220_v26 = vpop.f32.mrf.mxu0  ;;  %v8589_v19 = vld [vmem:[#allocation9_spill] sm:$0xff] }
 0x524   : > { %v4487_v36 = vadd.f32 %v8006_v5, %v4451_v32  ;;  %4428 = vmatmul.bf16.gmra.mxu1 %v8570_v55  ;;  %v3896_v55 = vadd.f32 %v3838_v20, %v7888_v45  ;;  %v3851_v59 = vpop.f32.mrf.mxu2  ;;  %v3898_v32 = vadd.f32 %v3843_v27, %v7906_v44 }
 0x526   : > { %v4519_v43 = vadd.f32 %v4487_v36, %v8585_v11  ;;  %v4082_v21 = vadd.f32 %v4024_v58, %v3896_v55  ;;  %v4269_v36 = vadd.f32 %v4213_v10, %v4083_v49  ;;  %v3900_v55 = vadd.f32 %v3848_v56, %v7924_v37 }
 0x528   : > { %v4551_v31 = vmax.f32 %v4519_v43, 0.0  ;;  %v4268_v20 = vadd.f32 %v4210_v9, %v4082_v21  ;;  %v4084_v9 = vadd.f32 %v4029_v52, %v3898_v32  ;;  %v4037_v43 = vpop.f32.mrf.mxu3 }
 0x529   : > { %v4391_v54 = vpop.f32.mrf.mxu1 }
 0x52a   : > { %4583 = vst [vmem:[%s8015_s17 + $0x60] sm:$0xff] %v4551_v31  ;;  %v4452_v8 = vadd.f32 %v4391_v54, %v4266_v6  ;;  %v3899_v31 = vadd.f32 %v3846_v48, %v7912_v24  ;;  %v4223_v6 = vpop.f32.mrf.mxu0 }
 0x52c   : > { %v4488_v62 = vadd.f32 %v8006_v5, %v4452_v8  ;;  %v4270_v8 = vadd.f32 %v4215_v38, %v4084_v9  ;;  %v3853_v13 = vpop.f32.mrf.mxu2  ;;  %v4085_v10 = vadd.f32 %v4032_v4, %v3899_v31 }
 0x52d   : > { %v3902_v49 = vadd.f32 %v3853_v13, %v7942_v50 }
 0x52e   : > { %v4520_v18 = vadd.f32 %v4488_v62, %v8586_v35  ;;  %v8591_v35 = vld [vmem:[#allocation15_spill] sm:$0xff] }
 0x530   : > { %v4552_v42 = vmax.f32 %v4520_v18, 0.0  ;;  %v4039_v18 = vpop.f32.mrf.mxu3 }
 0x531   : > { %v4394_v28 = vpop.f32.mrf.mxu1 }
 0x532   : > { %4584 = vst [vmem:[%s8015_s17 + $0x68] sm:$0xff] %v4552_v42  ;;  %v4453_v3 = vadd.f32 %v4394_v28, %v4267_v60  ;;  %v4271_v60 = vadd.f32 %v4218_v34, %v4085_v10  ;;  %v4225_v48 = vpop.f32.mrf.mxu0 }
 0x534   : > { %v4489_v7 = vadd.f32 %v8006_v5, %v4453_v3  ;;  %4433 = vmatmul.bf16.gmra.mxu1 %v8587_v14  ;;  %v3856_v38 = vpop.f32.mrf.mxu2  ;;  %v4086_v3 = vadd.f32 %v4034_v47, %v3900_v55  ;;  %v3901_v14 = vadd.f32 %v3851_v59, %v7930_v25  ;;  %v4088_v59 = vadd.f32 %v4039_v18, %v3902_v49  ;;  %v8596_v55 = vld [vmem:[#allocation28_spill] sm:$0xff] }
 0x535   : > { %v3903_v9 = vadd.f32 %v3856_v38, %v7948_v51 }
 0x536   : > { %v4521_v23 = vadd.f32 %v4489_v7, %v8588_v17  ;;  %v8592_v7 = vld [vmem:[#allocation19_spill] sm:$0xff]  ;;  %v4087_v34 = vadd.f32 %v4037_v43, %v3901_v14  ;;  %v4274_v43 = vadd.f32 %v4225_v48, %v4088_v59  ;;  %v8597_v14 = vld [vmem:[#allocation29_spill] sm:$0xff] }
 0x538   : > { %v4553_v45 = vmax.f32 %v4521_v23, 0.0  ;;  %v4272_v23 = vadd.f32 %v4220_v26, %v4086_v3  ;;  %v4042_v57 = vpop.f32.mrf.mxu3 }
 0x539   : > { %v4396_v16 = vpop.f32.mrf.mxu1 }
 0x53a   : > { %4585 = vst [vmem:[%s8015_s17 + $0x70] sm:$0xff] %v4553_v45  ;;  %v4454_v40 = vadd.f32 %v4396_v16, %v4268_v20  ;;  %v4228_v45 = vpop.f32.mrf.mxu0 }
 0x53c   : > { %v4490_v58 = vadd.f32 %v8006_v5, %v4454_v40  ;;  %v3858_v16 = vpop.f32.mrf.mxu2  ;;  %v8593_v40 = vld [vmem:[#allocation20_spill] sm:$0xff] }
 0x53d   : > { %v3904_v13 = vadd.f32 %v3858_v16, %v7960_v0 }
 0x53e   : > { %v4522_v63 = vadd.f32 %v4490_v58, %v8589_v19  ;;  %v4273_v19 = vadd.f32 %v4223_v6, %v4087_v34 }
 0x540   : > { %v4554_v53 = vmax.f32 %v4522_v63, 0.0  ;;  %v4044_v26 = vpop.f32.mrf.mxu3 }
 0x541   : > { %v4399_v46 = vpop.f32.mrf.mxu1 }
 0x542   : > { %4586 = vst [vmem:[%s8015_s17 + $0x78] sm:$0xff] %v4554_v53  ;;  %v4455_v41 = vadd.f32 %v4399_v46, %v4269_v36  ;;  %v4230_v53 = vpop.f32.mrf.mxu0  ;;  %v8594_v36 = vld [vmem:[#allocation23_spill] sm:$0xff] }
 0x544   : > { %v4491_v11 = vadd.f32 %v8006_v5, %v4455_v41  ;;  %v3861_v41 = vpop.f32.mrf.mxu2 }
 0x546   : > { %v4523_v22 = vadd.f32 %v4491_v11, %v8590_v29 }
 0x548   : > { %v4555_v54 = vmax.f32 %v4523_v22, 0.0  ;;  %v4089_v22 = vadd.f32 %v4042_v57, %v3903_v9  ;;  %v4047_v6 = vpop.f32.mrf.mxu3 }
 0x549   : > { %v4401_v44 = vpop.f32.mrf.mxu1 }
 0x54a   : > { %4587 = vst [vmem:[%s8015_s17 + $0x80] sm:$0xff] %v4555_v54  ;;  %v4456_v27 = vadd.f32 %v4401_v44, %v4270_v8  ;;  %v8595_v54 = vld [vmem:[#allocation24_spill] sm:$0xff]  ;;  %v4233_v44 = vpop.f32.mrf.mxu0  ;;  %v4275_v10 = vadd.f32 %v4228_v45, %v4089_v22 }
 0x54c   : > { %v4492_v62 = vadd.f32 %v8006_v5, %v4456_v27 }
 0x54e   : > { %v4524_v52 = vadd.f32 %v4492_v62, %v8591_v35  ;;  %v3863_v62 = vpop.f32.mrf.mxu2 }
 0x550   : > { %v4556_v42 = vmax.f32 %v4524_v52, 0.0  ;;  %v4090_v52 = vadd.f32 %v4044_v26, %v3904_v13 }
 0x551   : > { %v4404_v24 = vpop.f32.mrf.mxu1 }
 0x552   : > { %4588 = vst [vmem:[%s8015_s17 + $0x88] sm:$0xff] %v4556_v42  ;;  %v4457_v28 = vadd.f32 %v4404_v24, %v4271_v60  ;;  %v4049_v60 = vpop.f32.mrf.mxu3  ;;  %v3905_v24 = vadd.f32 %v3861_v41, %v7963_v39  ;;  %v4235_v38 = vpop.f32.mrf.mxu0 }
 0x554   : > { %v4493_v21 = vadd.f32 %v8006_v5, %v4457_v28  ;;  %v4276_v28 = vadd.f32 %v4230_v53, %v4090_v52  ;;  %v8601_v52 = vld [vmem:[#allocation39_spill] sm:$0xff] }
 0x556   : > { %v4525_v4 = vadd.f32 %v4493_v21, %v8592_v7  ;;  %v3866_v21 = vpop.f32.mrf.mxu2  ;;  %v4091_v7 = vadd.f32 %v4047_v6, %v3905_v24  ;;  %v8600_v6 = vld [vmem:[#allocation38_spill] sm:$0xff] }
 0x558   : > { %v4557_v17 = vmax.f32 %v4525_v4, 0.0 }
 0x559   : > { %v4406_v37 = vpop.f32.mrf.mxu1 }
 0x55a   : > { %4589 = vst [vmem:[%s8015_s17 + $0x90] sm:$0xff] %v4557_v17  ;;  %v4458_v56 = vadd.f32 %v4406_v37, %v4272_v23  ;;  %v3906_v23 = vadd.f32 %v3863_v62, %v7972_v2  ;;  %v4277_v37 = vadd.f32 %v4233_v44, %v4091_v7 }
 0x55c   : > { %v4494_v20 = vadd.f32 %v8006_v5, %v4458_v56  ;;  %v4052_v56 = vpop.f32.mrf.mxu3  ;;  %v4092_v45 = vadd.f32 %v4049_v60, %v3906_v23 }
 0x55e   : > { %v4526_v47 = vadd.f32 %v4494_v20, %v8593_v40  ;;  %v4238_v20 = vpop.f32.mrf.mxu0  ;;  %v3868_v40 = vpop.f32.mrf.mxu2 }
 0x55f   : > { %v3908_v9 = vadd.f32 %v3868_v40, %v7984_v61 }
 0x560   : > { %v4558_v58 = vmax.f32 %v4526_v47, 0.0  ;;  %v8598_v47 = vld [vmem:[#allocation33_spill] sm:$0xff] }
 0x561   : > { %v4409_v25 = vpop.f32.mrf.mxu1 }
 0x562   : > { %4590 = vst [vmem:[%s8015_s17 + $0x98] sm:$0xff] %v4558_v58  ;;  %v4459_v63 = vadd.f32 %v4409_v25, %v4273_v19  ;;  %v3907_v58 = vadd.f32 %v3866_v21, %v7975_v33  ;;  %v4278_v25 = vadd.f32 %v4235_v38, %v4092_v45  ;;  %v8602_v21 = vld [vmem:[#allocation43_spill] sm:$0xff]  ;;  %v8603_v45 = vld [vmem:[#allocation44_spill] sm:$0xff] }
 0x564   : > { %v4495_v32 = vadd.f32 %v8006_v5, %v4459_v63  ;;  %v4054_v26 = vpop.f32.mrf.mxu3  ;;  %v4093_v59 = vadd.f32 %v4052_v56, %v3907_v58 }
 0x566   : > { %v4527_v46 = vadd.f32 %v4495_v32, %v8594_v36  ;;  %v4240_v53 = vpop.f32.mrf.mxu0  ;;  %v8599_v36 = vld [vmem:[#allocation34_spill] sm:$0xff]  ;;  %v3871_v41 = vpop.f32.mrf.mxu2 }
 0x567   : > { %v3909_v13 = vadd.f32 %v3871_v41, %v7987_v15 }
 0x568   : > { %v4559_v11 = vmax.f32 %v4527_v46, 0.0 }
 0x569   : > { %v4411_v50 = vpop.f32.mrf.mxu1 }
 0x56a   : > { %4591 = vst [vmem:[%s8015_s17 + $0xa0] sm:$0xff] %v4559_v11  ;;  %v4460_v29 = vadd.f32 %v4411_v50, %v4274_v43  ;;  %v4279_v43 = vadd.f32 %v4238_v20, %v4093_v59 }
 0x56c   : > { %v4496_v31 = vadd.f32 %v8006_v5, %v4460_v29  ;;  %v4094_v29 = vadd.f32 %v4054_v26, %v3908_v9 }
 0x56e   : > { %v4528_v8 = vadd.f32 %v4496_v31, %v8595_v54  ;;  %v4057_v31 = vpop.f32.mrf.mxu3 }
 0x570   : > { %v4560_v27 = vmax.f32 %v4528_v8, 0.0  ;;  %v4243_v8 = vpop.f32.mrf.mxu0 }
 0x571   : > { %v4414_v51 = vpop.f32.mrf.mxu1 }
 0x572   : > { %4592 = vst [vmem:[%s8015_s17 + $0xa8] sm:$0xff] %v4560_v27  ;;  %v4461_v35 = vadd.f32 %v4414_v51, %v4275_v10  ;;  %v4280_v27 = vadd.f32 %v4240_v53, %v4094_v29  ;;  %v3873_v10 = vpop.f32.mrf.mxu2  ;;  %v4095_v51 = vadd.f32 %v4057_v31, %v3909_v13 }
 0x574   : > { %v4497_v18 = vadd.f32 %v8006_v5, %v4461_v35  ;;  %v4281_v24 = vadd.f32 %v4243_v8, %v4095_v51 }
 0x576   : > { %v4529_v42 = vadd.f32 %v4497_v18, %v8596_v55  ;;  %v4059_v55 = vpop.f32.mrf.mxu3 }
 0x578   : > { %v4561_v48 = vmax.f32 %v4529_v42, 0.0  ;;  %v3910_v42 = vadd.f32 %v3873_v10, %v7994_v1 }
 0x579   : > { %v4416_v0 = vpop.f32.mrf.mxu1 }
 0x57a   : > { %4593 = vst [vmem:[%s8015_s17 + $0xb0] sm:$0xff] %v4561_v48  ;;  %v4462_v3 = vadd.f32 %v4416_v0, %v4276_v28  ;;  %v4245_v28 = vpop.f32.mrf.mxu0  ;;  %v3876_v0 = vpop.f32.mrf.mxu2  ;;  %v4096_v38 = vadd.f32 %v4059_v55, %v3910_v42 }
 0x57c   : > { %v4498_v4 = vadd.f32 %v8006_v5, %v4462_v3  ;;  %v4282_v23 = vadd.f32 %v4245_v28, %v4096_v38 }
 0x57e   : > { %v4530_v17 = vadd.f32 %v4498_v4, %v8597_v14  ;;  %v4062_v4 = vpop.f32.mrf.mxu3  ;;  %v3911_v14 = vadd.f32 %v3876_v0, %v7997_v30 }
 0x580   : > { %v4562_v57 = vmax.f32 %v4530_v17, 0.0  ;;  %v4097_v56 = vadd.f32 %v4062_v4, %v3911_v14 }
 0x581   : > { %v4419_v39 = vpop.f32.mrf.mxu1 }
 0x582   : > { %4594 = vst [vmem:[%s8015_s17 + $0xb8] sm:$0xff] %v4562_v57  ;;  %v4463_v34 = vadd.f32 %v4419_v39, %v4277_v37  ;;  %v4248_v37 = vpop.f32.mrf.mxu0 }
 0x584   : > { %v4499_v16 = vadd.f32 %v8006_v5, %v4463_v34  ;;  %v3878_v34 = vpop.f32.mrf.mxu2 }
 0x585   : > { %v3912_v40 = vadd.f32 %v3878_v34, %v8001_v12 }
 0x586   : > { %v4531_v49 = vadd.f32 %v4499_v16, %v8598_v47  ;;  %v4283_v16 = vadd.f32 %v4248_v37, %v4097_v56  ;;  %v4064_v30 = vpop.f32.mrf.mxu3 }
 0x588   : > { %v4563_v19 = vmax.f32 %v4531_v49, 0.0 }
 0x589   : > { %v4421_v2 = vpop.f32.mrf.mxu1 }
 0x58a   : > { %4595 = vst [vmem:[%s8015_s17 + $0xc0] sm:$0xff] %v4563_v19  ;;  %v4464_v63 = vadd.f32 %v4421_v2, %v4278_v25  ;;  %v4098_v19 = vadd.f32 %v4064_v30, %v3912_v40  ;;  %v4250_v2 = vpop.f32.mrf.mxu0 }
 0x58c   : > { %v4500_v32 = vadd.f32 %v8006_v5, %v4464_v63  ;;  %v8604_v63 = vld [vmem:[#allocation66_spill] sm:$0xff]  ;;  %v4284_v59 = vadd.f32 %v4250_v2, %v4098_v19 }
 0x58e   : > { %v4532_v46 = vadd.f32 %v4500_v32, %v8599_v36 }
 0x590   : > { %v4564_v11 = vmax.f32 %v4532_v46, 0.0  ;;  %v8605_v46 = vld [vmem:[#allocation67_spill] sm:$0xff] }
 0x591   : > { %v4424_v33 = vpop.f32.mrf.mxu1 }
 0x592   : > { %4596 = vst [vmem:[%s8015_s17 + $0xc8] sm:$0xff] %v4564_v11  ;;  %v4465_v50 = vadd.f32 %v4424_v33, %v4279_v43 }
 0x594   : > { %v4501_v22 = vadd.f32 %v8006_v5, %v4465_v50 }
 0x596   : > { %v4533_v54 = vadd.f32 %v4501_v22, %v8600_v6 }
 0x598   : > { %v4565_v44 = vmax.f32 %v4533_v54, 0.0 }
 0x599   : > { %v4426_v61 = vpop.f32.mrf.mxu1 }
 0x59a   : > { %4597 = vst [vmem:[%s8015_s17 + $0xd0] sm:$0xff] %v4565_v44  ;;  %v4466_v62 = vadd.f32 %v4426_v61, %v4280_v27 }
 0x59c   : > { %v4502_v35 = vadd.f32 %v8006_v5, %v4466_v62 }
 0x59e   : > { %v4534_v18 = vadd.f32 %v4502_v35, %v8601_v52 }
 0x5a0   : > { %v4566_v60 = vmax.f32 %v4534_v18, 0.0 }
 0x5a1   : > { %v4429_v48 = vpop.f32.mrf.mxu1 }
 0x5a2   : > { %4598 = vst [vmem:[%s8015_s17 + $0xd8] sm:$0xff] %v4566_v60  ;;  %v4467_v15 = vadd.f32 %v4429_v48, %v4281_v24 }
 0x5a4   : > { %v4503_v3 = vadd.f32 %v8006_v5, %v4467_v15 }
 0x5a6   : > { %v4535_v7 = vadd.f32 %v4503_v3, %v8602_v21 }
 0x5a8   : > { %v4567_v17 = vmax.f32 %v4535_v7, 0.0 }
 0x5a9   : > { %v4431_v1 = vpop.f32.mrf.mxu1 }
 0x5aa   : > { %4599 = vst [vmem:[%s8015_s17 + $0xe0] sm:$0xff] %v4567_v17  ;;  %v4468_v57 = vadd.f32 %v4431_v1, %v4282_v23 }
 0x5ac   : > { %v4504_v39 = vadd.f32 %v8006_v5, %v4468_v57 }
 0x5ae   : > { %v4536_v20 = vadd.f32 %v4504_v39, %v8603_v45 }
 0x5b0   : > { %v4568_v47 = vmax.f32 %v4536_v20, 0.0 }
 0x5b1   : > { %v4434_v49 = vpop.f32.mrf.mxu1 }
 0x5b2   : > { %4600 = vst [vmem:[%s8015_s17 + $0xe8] sm:$0xff] %v4568_v47  ;;  %v4469_v58 = vadd.f32 %v4434_v49, %v4283_v16 }
 0x5b4   : > { %v4505_v25 = vadd.f32 %v8006_v5, %v4469_v58 }
 0x5b6   : > { %v4537_v26 = vadd.f32 %v4505_v25, %v8604_v63 }
 0x5b8   : > { %v4569_v32 = vmax.f32 %v4537_v26, 0.0 }
 0x5b9   : > { %v4436_v53 = vpop.f32.mrf.mxu1 }
 0x5ba   : > { %4601 = vst [vmem:[%s8015_s17 + $0xf0] sm:$0xff] %v4569_v32  ;;  %v4470_v12 = vadd.f32 %v4436_v53, %v4284_v59 }
 0x5bc   : > { %v4506_v36 = vadd.f32 %v8006_v5, %v4470_v12 }
 0x5be   : > { %v4538_v41 = vadd.f32 %v4506_v36, %v8605_v46 }
 0x5c0   : > { %v4570_v9 = vmax.f32 %v4538_v41, 0.0 }
 0x5c2   : > { %4602 = vst [vmem:[%s8015_s17 + $0xf8] sm:$0xff] %v4570_v9 }
 0x5c3   : > { %5924 = shalt.err (!%p5921_p8)
}
 0x5c4   : > { %s5971_s14 = smov 128   ;;  %s5972_s15 = smov 8  }
 0x5c5   : > { %5804 = dma.vmem_to_hbm [thread:$0]  (%p6041_p5), %s4617_s6, 4096, %s4619_s7, %s4604_s22, %s5971_s14, %s5971_s14, %s5972_s15  }
 0x5c6 PF: > { %p5816_p9 = scmp.ge.s32.totalorder %s5963_s21, 2  ;;  %s4633_s17 = sand.u32 1, %s5951_s18  }
 0x5c7   : > { %s4634_s23 = scalar_lea.sflag [#allocation4], %s4633_s17 }
 0x5c8   : > { %p5811_p10 = pnand %p5816_p9, %p6045_p6 }
 0x5ca   : > { %p5812_p11 = pneg %p5811_p10 }
 0x5cc   : > { %5946 = dma.done.wait (%p5812_p11), %s4634_s23, 4096  }
 0x5cd   : > { %5948 = vsyncadd (%p5812_p11), %s4634_s23, 4294963200  ;;  %p16_p12 = scmp.ge.s32.totalorder %s6028_s24, 4   ;;  %s8606_s18 = smov %s5955_s19 }
 0x5ce   : > { %s8607_s19 = smov %s5959_s20  ;;  %s8608_s20 = smov %s6039_s27 }
 0x5cf   : > { %s8609_s21 = smov %s6028_s24  ;;  %18 = sbr.rel (!%p16_p12) target bundleno = 4 (0x4), region = 96 }
 0x5d4   :  { %4640 = vsyncpa [#allocation3], 1 }
 0x5d5   :  { %4642 = vsyncpa [#allocation3 + $0x1], 1 }
 0x5d6   :  { %4643 = vsyncpa [#allocation4], 1 }
 0x5d7   :  { %4645 = vsyncpa [#allocation4 + $0x1], 1 }

</bundles_post_ra>
